<compile_context>
chip_gen: v7x
topology: tpu7x:2x2x1
jax: 0.10.0
libtpu: 0.0.40
codegen_flags: <defaults>
</compile_context>

<pallas_src>
import jax
import jax.numpy as jnp
from jax import lax
from jax.experimental import pallas as pl
from jax.experimental.pallas import tpu as pltpu

EPS = 1e-5


def _round_up(x, m):
    return ((x + m - 1) // m) * m


def _vmem_limit_bytes():
    """Per-generation VMEM budget: ~48 MiB on v7x (64 MiB/TC), ~96 MiB on
    v5e/v6e (128 MiB physical)."""
    try:
        cap = int(pltpu.get_tpu_info().vmem_capacity_bytes)
    except Exception:
        cap = 64 * 1024 * 1024          # conservative (v7x-sized) fallback
    return int(min(int(0.75 * cap), 100 * 1024 * 1024))


# --------------------------------------------------------------------------
# glue: bilinear 2x upsample, NHWC, matches nn.Upsample(scale_factor=2,
# mode='bilinear', align_corners=False).  Closed-form 2-phase decomposition:
#   out[2i]   = 0.25*x[i-1] + 0.75*x[i]      (edge-clamped)
#   out[2i+1] = 0.75*x[i]   + 0.25*x[i+1]    (edge-clamped)
# -> contiguous slices + interleave, no gather HLOs, stays in bf16.
# --------------------------------------------------------------------------
def upsample_2x_fast(x):
    def up_axis(x, axis):
        size = x.shape[axis]
        first = lax.slice_in_dim(x, 0, 1, axis=axis)
        last = lax.slice_in_dim(x, size - 1, size, axis=axis)
        xm = jnp.concatenate(
            [first, lax.slice_in_dim(x, 0, size - 1, axis=axis)], axis=axis)
        xp = jnp.concatenate(
            [lax.slice_in_dim(x, 1, size, axis=axis), last], axis=axis)
        xf, xmf, xpf = (a.astype(jnp.float32) for a in (x, xm, xp))
        even = 0.25 * xmf + 0.75 * xf
        odd = 0.75 * xf + 0.25 * xpf
        out = jnp.stack([even, odd], axis=axis + 1)
        shape = list(x.shape)
        shape[axis] = 2 * size
        return out.reshape(shape).astype(x.dtype)

    return up_axis(up_axis(x, 1), 2)


def upsample_bilinear_2x_ref(x):
    """Gather-based f32 reference (only used to validate the fast path)."""
    n, h, w, c = x.shape

    def coords(out_size, in_size):
        i = jnp.arange(out_size, dtype=jnp.float32)
        src = jnp.clip((i + 0.5) / 2.0 - 0.5, 0.0, in_size - 1.0)
        i0 = jnp.floor(src).astype(jnp.int32)
        i1 = jnp.minimum(i0 + 1, in_size - 1)
        w1 = src - i0.astype(jnp.float32)
        return i0, i1, 1.0 - w1, w1

    h0, h1, wh0, wh1 = coords(2 * h, h)
    v0, v1, wv0, wv1 = coords(2 * w, w)
    rows = (x[:, h0, :, :] * wh0[None, :, None, None]
            + x[:, h1, :, :] * wh1[None, :, None, None])
    out = (rows[:, :, v0, :] * wv0[None, None, :, None]
           + rows[:, :, v1, :] * wv1[None, None, :, None])
    return out


# --------------------------------------------------------------------------
# Kernel 1: 1x1 conv (bf16 MXU matmul, f32 acc) + folded BN.  Runs at the LOW
# resolution (hoisted before the upsample -- exact: conv1x1/BN are per-pixel
# affine maps and the bilinear weights sum to 1, so Up(BN(Conv(x))) ==
# BN(Conv(Up(x))); ReLU6 + residual stay after).  Emits bf16.
# --------------------------------------------------------------------------
def _pw_bn_kernel(x_ref, w_ref, s_ref, b_ref, o_ref):
    # x_ref: (TM, Cin) bf16   w_ref: (Cin, Cout) bf16   s/b: (1, Cout) f32
    y = jnp.dot(x_ref[...], w_ref[...], preferred_element_type=jnp.float32)
    o_ref[...] = (y * s_ref[...] + b_ref[...]).astype(o_ref.dtype)


def pointwise_bn(x, w, scale, bias, *, tm=1024, vmem_limit=None):
    # x: (M, Cin), w: (Cin, Cout), scale/bias: (1, Cout) -> (M, Cout) bf16
    m, cin = x.shape
    cout = w.shape[1]
    tm = min(tm, _round_up(m, 8))
    # v7x has 2 TensorCores: keep the "parallel" grid at >= 2 steps.
    if m > 8 and pl.cdiv(m, tm) < 2:
        tm = _round_up(pl.cdiv(m, 2), 8)
    if vmem_limit is None:
        vmem_limit = _vmem_limit_bytes()
    # TODO(synk): with Cin/Cout << 128 the lane dim is mostly padding; a
    # (rows, W*C)-packed lane-dense layout would recover VPU/store efficiency.
    return pl.pallas_call(
        _pw_bn_kernel,
        out_shape=jax.ShapeDtypeStruct((m, cout), jnp.bfloat16),
        grid_spec=pltpu.PrefetchScalarGridSpec(
            num_scalar_prefetch=0,
            grid=(pl.cdiv(m, tm),),
            in_specs=[
                pl.BlockSpec((tm, cin), lambda i: (i, 0)),
                pl.BlockSpec((cin, cout), lambda i: (0, 0)),
                pl.BlockSpec((1, cout), lambda i: (0, 0)),
                pl.BlockSpec((1, cout), lambda i: (0, 0)),
            ],
            out_specs=pl.BlockSpec((tm, cout), lambda i: (i, 0)),
        ),
        compiler_params=pltpu.CompilerParams(
            dimension_semantics=("parallel",),
            vmem_limit_bytes=vmem_limit),
    )(x.astype(jnp.bfloat16), w.astype(jnp.bfloat16), scale, bias)


# --------------------------------------------------------------------------
# Kernels 2/3: fused 3x3 conv (pad=1) + bias + folded BN + ReLU, row-tiled
# with a 3-row halo.  The FIRST instance additionally fuses the residual-add
# + ReLU6 prologue (x2 + clip(upsampled, 0, 6)) so the combined activation is
# built in VMEM instead of round-tripping HBM.  Each of the 9 filter taps is
# a shifted (rows, Cin) @ (Cin, Cout) bf16 matmul with f32 accumulation.
# TODO(synk): collapse the 9 taps into one im2col big-K matmul and emit a
# lane-dense (TH, Wp*Cout) output; fuse the two 3x3 stages to keep the tile
# resident in VMEM (would remove ~1/3 of remaining HBM traffic).
# --------------------------------------------------------------------------
def _make_conv3x3_kernel(tap_offsets, fuse_residual):
    def conv_tail(x, w_ref, s_ref, b_ref, o_ref):
        r = o_ref.shape[1]
        cout = o_ref.shape[2]
        acc = jnp.zeros((r, cout), jnp.float32)
        for t, off in enumerate(tap_offsets):
            acc = acc + jnp.dot(x[off:off + r, :], w_ref[t],
                                preferred_element_type=jnp.float32)
        o_ref[0] = jnp.maximum(acc * s_ref[...] + b_ref[...],
                               0.0).astype(o_ref.dtype)

    if fuse_residual:
        def kernel(u_ref, x2_ref, w_ref, s_ref, b_ref, o_ref):
            # residual + ReLU6 prologue in f32 (v5e VPU is f32-only); the
            # zero padding commutes: 0 + clip(0, 0, 6) == 0.
            x = (x2_ref[0].astype(jnp.float32)
                 + jnp.clip(u_ref[0].astype(jnp.float32), 0.0, 6.0))
            conv_tail(x.astype(jnp.bfloat16), w_ref, s_ref, b_ref, o_ref)
    else:
        def kernel(x_ref, w_ref, s_ref, b_ref, o_ref):
            conv_tail(x_ref[0], w_ref, s_ref, b_ref, o_ref)
    return kernel


def conv3x3_bn_relu(inputs, w_taps, scale, bias, *, out_dtype,
                    tile_h=None, vmem_limit=None):
    # inputs: 1 or 2 NHWC tensors of identical shape; 2 inputs -> fused
    # prologue x2 + clip(u, 0, 6).  w_taps: (9, Cin, Cout).
    n, h, w, cin = inputs[0].shape
    cout = w_taps.shape[-1]
    wp = w + 2

    if vmem_limit is None:
        vmem_limit = _vmem_limit_bytes()
    if tile_h is None:
        # double-buffered per-tile-row working set: bf16 halo'd inputs + output
        out_size = jnp.dtype(out_dtype).itemsize
        per_row = 2 * (wp * cin * 2 * len(inputs) + wp * cout * out_size)
        tile_h = int(max(8, min(128, (vmem_limit // 2) // max(per_row, 1))))
    th = min(tile_h, h)
    nt = -(-h // th)                      # ceil div
    if n * nt < 2 and h > 8:              # keep >= 2 steps for v7x's two TCs
        th = -(-h // 2)
        nt = -(-h // th)
    hr = nt * th

    # conv zero-pad (1 all around) + pad H up to a tile multiple; then gather
    # halo'd tiles of TH+3 padded rows (1 top halo, 2 bottom halo: the extra
    # bottom row keeps every shifted tap slice of the flattened tile in
    # bounds).  With the large default tile the duplication is ~(TH+3)/TH.
    # TODO(synk): replace with a manual halo DMA (memory_space=pl.ANY +
    # pltpu.make_async_copy) to remove the re-tiled HBM copy entirely.
    row_idx = jnp.arange(nt)[:, None] * th + jnp.arange(th + 3)[None, :]

    def halo_tiles(x):
        xpad = jnp.pad(x.astype(jnp.bfloat16),
                       ((0, 0), (1, hr - h + 2), (1, 1), (0, 0)))
        return xpad[:, row_idx].reshape(n * nt, (th + 3) * wp, x.shape[-1])

    r = th * wp
    tap_offsets = tuple(dy * wp + dx for dy in range(3) for dx in range(3))
    kernel = _make_conv3x3_kernel(tap_offsets,
                                  fuse_residual=(len(inputs) == 2))

    in_specs = ([pl.BlockSpec((1, (th + 3) * wp, cin), lambda i: (i, 0, 0))
                 for _ in inputs]
                + [pl.BlockSpec((9, cin, cout), lambda i: (0, 0, 0)),
                   pl.BlockSpec((1, cout), lambda i: (0, 0)),
                   pl.BlockSpec((1, cout), lambda i: (0, 0))])

    out = pl.pallas_call(
        kernel,
        out_shape=jax.ShapeDtypeStruct((n * nt, r, cout), out_dtype),
        grid_spec=pltpu.PrefetchScalarGridSpec(
            num_scalar_prefetch=0,
            grid=(n * nt,),
            in_specs=in_specs,
            out_specs=pl.BlockSpec((1, r, cout), lambda i: (i, 0, 0)),
        ),
        compiler_params=pltpu.CompilerParams(
            dimension_semantics=("parallel",),
            vmem_limit_bytes=vmem_limit),
    )(*[halo_tiles(x) for x in inputs],
      w_taps.astype(jnp.bfloat16), scale, bias)

    # drop the 2 junk columns per row + any padded-up rows, restore NHWC
    return out.reshape(n, hr, wp, cout)[:, :h, :w, :]


# --------------------------------------------------------------------------
# up.forward
# --------------------------------------------------------------------------
def up_forward(params, x1_nchw, x2_nchw):
    x1 = jnp.transpose(x1_nchw, (0, 2, 3, 1))      # -> NHWC
    x2 = jnp.transpose(x2_nchw, (0, 2, 3, 1))
    n, h, w, cin = x1.shape
    cout = params["layer_w"].shape[1]

    # 1x1 conv + BN BEFORE the upsample (exact commute); 4x fewer MXU flops,
    # no (N,2H,2W,Cin) intermediate in HBM.  bf16 out.
    z = pointwise_bn(x1.reshape(n * h * w, cin), params["layer_w"],
                     params["layer_scale"], params["layer_bias"])
    z = z.reshape(n, h, w, cout)

    u = upsample_2x_fast(z)                        # (N, 2H, 2W, Cout) bf16

    # ReLU6 + residual add are fused into the first conv kernel's prologue.
    x = conv3x3_bn_relu([u, x2], params["dc1_w"], params["dc1_scale"],
                        params["dc1_bias"], out_dtype=jnp.bfloat16)
    x = conv3x3_bn_relu([x], params["dc2_w"], params["dc2_scale"],
                        params["dc2_bias"], out_dtype=jnp.float32)
    return jnp.transpose(x, (0, 3, 1, 2))          # -> NCHW


# --------------------------------------------------------------------------
# deterministic parameter init (PyTorch layouts), then fold for the kernels
# --------------------------------------------------------------------------
def make_raw_params(key, in_ch, out_ch):
    ks = iter(jax.random.split(key, 24))

    def nrm(shape, scale):
        return (scale * jax.random.normal(next(ks), shape)).astype(jnp.float32)

    def uni(shape, lo, hi):
        return jax.random.uniform(next(ks), shape, minval=lo,
                                  maxval=hi).astype(jnp.float32)

    def bn_params(c):
        return (uni((c,), 0.5, 1.5),   # gamma
                nrm((c,), 0.1),        # beta
                nrm((c,), 0.1),        # running_mean
                uni((c,), 0.5, 1.5))   # running_var

    return {
        "w1":   nrm((out_ch, in_ch, 1, 1), 0.4),     # Conv_1x1 weight (no bias)
        "bn1":  bn_params(out_ch),
        "wc1":  nrm((out_ch, out_ch, 3, 3), 0.25),   # double_conv conv1
        "bc1":  nrm((out_ch,), 0.1),
        "bnc1": bn_params(out_ch),
        "wc2":  nrm((out_ch, out_ch, 3, 3), 0.25),   # double_conv conv2
        "bc2":  nrm((out_ch,), 0.1),
        "bnc2": bn_params(out_ch),
    }


def fold_params(raw):
    def fold_bn(bnp, conv_bias=None):
        g, be, m, v = bnp
        s = g / jnp.sqrt(v + EPS)
        b = be - m * s
        if conv_bias is not None:
            b = b + conv_bias * s
        return s.reshape(1, -1), b.reshape(1, -1)

    def taps(wc):  # (Cout, Cin, 3, 3) -> (9, Cin, Cout), tap index = dy*3+dx
        return jnp.transpose(wc, (2, 3, 1, 0)).reshape(9, wc.shape[1], wc.shape[0])

    s1, b1 = fold_bn(raw["bn1"])
    sc1, bc1 = fold_bn(raw["bnc1"], raw["bc1"])
    sc2, bc2 = fold_bn(raw["bnc2"], raw["bc2"])
    return {
        "layer_w": raw["w1"][:, :, 0, 0].T,          # (Cin, Cout)
        "layer_scale": s1, "layer_bias": b1,
        "dc1_w": taps(raw["wc1"]), "dc1_scale": sc1, "dc1_bias": bc1,
        "dc2_w": taps(raw["wc2"]), "dc2_scale": sc2, "dc2_bias": bc2,
    }


# --------------------------------------------------------------------------
# pure-JAX reference (NCHW, lax.conv, original op order) for correctness
# --------------------------------------------------------------------------
def reference_forward(raw, x1, x2):
    def conv2d(x, w, b=None, padding=0):
        y = lax.conv_general_dilated(
            x, w, window_strides=(1, 1),
            padding=[(padding, padding), (padding, padding)],
            dimension_numbers=("NCHW", "OIHW", "NCHW"),
            precision=lax.Precision.HIGHEST)
        if b is not None:
            y = y + b.reshape(1, -1, 1, 1)
        return y

    def bn(x, p):
        g, be, m, v = p
        inv = (g / jnp.sqrt(v + EPS)).reshape(1, -1, 1, 1)
        return (x - m.reshape(1, -1, 1, 1)) * inv + be.reshape(1, -1, 1, 1)

    x1u = jnp.transpose(
        upsample_bilinear_2x_ref(jnp.transpose(x1, (0, 2, 3, 1))), (0, 3, 1, 2))
    y = jnp.clip(bn(conv2d(x1u, raw["w1"]), raw["bn1"]), 0.0, 6.0)
    x = x2 + y
    x = jnp.maximum(bn(conv2d(x, raw["wc1"], raw["bc1"], 1), raw["bnc1"]), 0.0)
    x = jnp.maximum(bn(conv2d(x, raw["wc2"], raw["bc2"], 1), raw["bnc2"]), 0.0)
    return x


if __name__ == "__main__":
    key = jax.random.PRNGKey(0)
    k1, k2, k3 = jax.random.split(key, 3)

    n, in_ch, out_ch, h, w = 2, 8, 4, 8, 8          # small shapes
    x1 = jax.random.normal(k1, (n, in_ch, h, w), jnp.float32)           # NCHW
    x2 = jax.random.normal(k2, (n, out_ch, 2 * h, 2 * w), jnp.float32)  # NCHW

    raw = make_raw_params(k3, in_ch, out_ch)
    params = fold_params(raw)

    out = jax.jit(up_forward)(params, x1, x2)
    out = jax.block_until_ready(out)

    ref = reference_forward(raw, x1, x2)
    assert out.shape == ref.shape == (n, out_ch, 2 * h, 2 * w)
    # bf16 MXU matmuls + bf16 inter-stage tensors => relative RMS tolerance
    rel = float(jnp.sqrt(jnp.mean((out - ref) ** 2))
                / (jnp.sqrt(jnp.mean(ref ** 2)) + 1e-6))
    assert rel < 5e-2, f"rel rms err {rel}"
    print("KERNEL_OK")
</pallas_src>

<mosaic_0001>
module attributes {stable_mosaic.version = 11 : i64} {
  func.func @_pw_bn_kernel(%arg0: i32, %arg1: memref<64x8xbf16, #tpu.memory_space<vmem>>, %arg2: memref<8x4xbf16, #tpu.memory_space<vmem>>, %arg3: memref<1x4xf32, #tpu.memory_space<vmem>>, %arg4: memref<1x4xf32, #tpu.memory_space<vmem>>, %arg5: memref<64x4xbf16, #tpu.memory_space<vmem>>) attributes {dimension_semantics = [#tpu.dimension_semantics<parallel>], iteration_bounds = array<i64: 2>, scalar_prefetch = 0 : i64, scratch_operands = 0 : i64, tpu.core_type = #tpu.core_type<tc>, window_params = [{transform_indices = @transform_0, window_bounds = array<i64: 64, 8>}, {pipeline_mode = #tpu.pipeline_mode<synchronous>, transform_indices = @transform_1, window_bounds = array<i64: 8, 4>}, {pipeline_mode = #tpu.pipeline_mode<synchronous>, transform_indices = @transform_2, window_bounds = array<i64: 1, 4>}, {pipeline_mode = #tpu.pipeline_mode<synchronous>, transform_indices = @transform_3, window_bounds = array<i64: 1, 4>}, {transform_indices = @transform_4, window_bounds = array<i64: 64, 4>}]} {
    %c0 = arith.constant 0 : index
    %c0_0 = arith.constant 0 : index
    %0 = vector.load %arg1[%c0, %c0_0] : memref<64x8xbf16, #tpu.memory_space<vmem>>, vector<64x8xbf16>
    %c0_1 = arith.constant 0 : index
    %c0_2 = arith.constant 0 : index
    %1 = vector.load %arg2[%c0_1, %c0_2] : memref<8x4xbf16, #tpu.memory_space<vmem>>, vector<8x4xbf16>
    %cst = arith.constant dense<0.000000e+00> : vector<64x4xf32>
    %2 = tpu.matmul %0, %1, %cst {dimension_numbers = #tpu.dot_dimension_numbers<[1], [0], [0], [1], [0, 0, 1, 1], [], []>} : vector<64x8xbf16>, vector<8x4xbf16>, vector<64x4xf32> -> vector<64x4xf32>
    %c0_3 = arith.constant 0 : index
    %c0_4 = arith.constant 0 : index
    %3 = vector.load %arg3[%c0_3, %c0_4] : memref<1x4xf32, #tpu.memory_space<vmem>>, vector<1x4xf32>
    %4 = vector.broadcast %3 : vector<1x4xf32> to vector<64x4xf32>
    %5 = arith.mulf %2, %4 : vector<64x4xf32>
    %c0_5 = arith.constant 0 : index
    %c0_6 = arith.constant 0 : index
    %6 = vector.load %arg4[%c0_5, %c0_6] : memref<1x4xf32, #tpu.memory_space<vmem>>, vector<1x4xf32>
    %7 = vector.broadcast %6 : vector<1x4xf32> to vector<64x4xf32>
    %8 = arith.addf %5, %7 : vector<64x4xf32>
    %9 = arith.truncf %8 : vector<64x4xf32> to vector<64x4xbf16>
    %c0_7 = arith.constant 0 : index
    %c0_8 = arith.constant 0 : index
    %10 = vector.load %arg5[%c0_7, %c0_8] : memref<64x4xbf16, #tpu.memory_space<vmem>>, vector<64x4xbf16>
    tpu.vector_store %arg5[%c0_7, %c0_8], %9 {strides = array<i32>} : memref<64x4xbf16, #tpu.memory_space<vmem>>, vector<64x4xbf16>,
    return
  }
  func.func @transform_0(%arg0: i32) -> (i32, i32) {
    %c0_i32 = arith.constant 0 : i32
    %c0_i32_0 = arith.constant 0 : i32
    return %arg0, %c0_i32 : i32, i32
  }
  func.func @transform_1(%arg0: i32) -> (i32, i32) {
    %c0_i32 = arith.constant 0 : i32
    %c0_i32_0 = arith.constant 0 : i32
    %c0_i32_1 = arith.constant 0 : i32
    return %c0_i32, %c0_i32_0 : i32, i32
  }
  func.func @transform_2(%arg0: i32) -> (i32, i32) {
    %c0_i32 = arith.constant 0 : i32
    %c0_i32_0 = arith.constant 0 : i32
    %c0_i32_1 = arith.constant 0 : i32
    return %c0_i32, %c0_i32_0 : i32, i32
  }
  func.func @transform_3(%arg0: i32) -> (i32, i32) {
    %c0_i32 = arith.constant 0 : i32
    %c0_i32_0 = arith.constant 0 : i32
    %c0_i32_1 = arith.constant 0 : i32
    return %c0_i32, %c0_i32_0 : i32, i32
  }
  func.func @transform_4(%arg0: i32) -> (i32, i32) {
    %c0_i32 = arith.constant 0 : i32
    %c0_i32_0 = arith.constant 0 : i32
    return %arg0, %c0_i32 : i32, i32
  }
}

module attributes {stable_mosaic.version = 11 : i64} {
  func.func @kernel(%arg0: i32, %arg1: memref<1x342x4xbf16, #tpu.memory_space<vmem>>, %arg2: memref<1x342x4xbf16, #tpu.memory_space<vmem>>, %arg3: memref<9x4x4xbf16, #tpu.memory_space<vmem>>, %arg4: memref<1x4xf32, #tpu.memory_space<vmem>>, %arg5: memref<1x4xf32, #tpu.memory_space<vmem>>, %arg6: memref<1x288x4xbf16, #tpu.memory_space<vmem>>) attributes {dimension_semantics = [#tpu.dimension_semantics<parallel>], iteration_bounds = array<i64: 2>, scalar_prefetch = 0 : i64, scratch_operands = 0 : i64, tpu.core_type = #tpu.core_type<tc>, window_params = [{transform_indices = @transform_0, window_bounds = array<i64: 1, 342, 4>}, {transform_indices = @transform_1, window_bounds = array<i64: 1, 342, 4>}, {pipeline_mode = #tpu.pipeline_mode<synchronous>, transform_indices = @transform_2, window_bounds = array<i64: 9, 4, 4>}, {pipeline_mode = #tpu.pipeline_mode<synchronous>, transform_indices = @transform_3, window_bounds = array<i64: 1, 4>}, {pipeline_mode = #tpu.pipeline_mode<synchronous>, transform_indices = @transform_4, window_bounds = array<i64: 1, 4>}, {transform_indices = @transform_5, window_bounds = array<i64: 1, 288, 4>}]} {
    %c0 = arith.constant 0 : index
    %c0_0 = arith.constant 0 : index
    %c0_1 = arith.constant 0 : index
    %0 = vector.load %arg2[%c0, %c0_0, %c0_1] : memref<1x342x4xbf16, #tpu.memory_space<vmem>>, vector<1x342x4xbf16>
    %1 = vector.shape_cast %0 : vector<1x342x4xbf16> to vector<342x4xbf16>
    %2 = arith.extf %1 : vector<342x4xbf16> to vector<342x4xf32>
    %c0_2 = arith.constant 0 : index
    %c0_3 = arith.constant 0 : index
    %c0_4 = arith.constant 0 : index
    %3 = vector.load %arg1[%c0_2, %c0_3, %c0_4] : memref<1x342x4xbf16, #tpu.memory_space<vmem>>, vector<1x342x4xbf16>
    %4 = vector.shape_cast %3 : vector<1x342x4xbf16> to vector<342x4xbf16>
    %5 = arith.extf %4 : vector<342x4xbf16> to vector<342x4xf32>
    %cst = arith.constant 0.000000e+00 : f32
    %cst_5 = arith.constant 6.000000e+00 : f32
    %6 = vector.broadcast %cst : f32 to vector<342x4xf32>
    %7 = arith.maximumf %6, %5 : vector<342x4xf32>
    %8 = vector.broadcast %cst_5 : f32 to vector<342x4xf32>
    %9 = arith.minimumf %8, %7 : vector<342x4xf32>
    %10 = arith.addf %2, %9 : vector<342x4xf32>
    %11 = arith.truncf %10 : vector<342x4xf32> to vector<342x4xbf16>
    %cst_6 = arith.constant 0.000000e+00 : f32
    %12 = vector.broadcast %cst_6 : f32 to vector<288x4xf32>
    %13 = vector.extract_strided_slice %11 {offsets = [0, 0], sizes = [288, 4], strides = [1, 1]} : vector<342x4xbf16> to vector<288x4xbf16>
    %c0_7 = arith.constant 0 : index
    %c0_8 = arith.constant 0 : index
    %c0_9 = arith.constant 0 : index
    %14 = vector.load %arg3[%c0_7, %c0_8, %c0_9] : memref<9x4x4xbf16, #tpu.memory_space<vmem>>, vector<1x4x4xbf16>
    %15 = vector.shape_cast %14 : vector<1x4x4xbf16> to vector<4x4xbf16>
    %cst_10 = arith.constant dense<0.000000e+00> : vector<288x4xf32>
    %16 = tpu.matmul %13, %15, %cst_10 {dimension_numbers = #tpu.dot_dimension_numbers<[1], [0], [0], [1], [0, 0, 1, 1], [], []>} : vector<288x4xbf16>, vector<4x4xbf16>, vector<288x4xf32> -> vector<288x4xf32>
    %17 = arith.addf %12, %16 : vector<288x4xf32>
    %18 = vector.extract_strided_slice %11 {offsets = [1, 0], sizes = [288, 4], strides = [1, 1]} : vector<342x4xbf16> to vector<288x4xbf16>
    %c1 = arith.constant 1 : index
    %c0_11 = arith.constant 0 : index
    %c0_12 = arith.constant 0 : index
    %19 = vector.load %arg3[%c1, %c0_11, %c0_12] : memref<9x4x4xbf16, #tpu.memory_space<vmem>>, vector<1x4x4xbf16>
    %20 = vector.shape_cast %19 : vector<1x4x4xbf16> to vector<4x4xbf16>
    %cst_13 = arith.constant dense<0.000000e+00> : vector<288x4xf32>
    %21 = tpu.matmul %18, %20, %cst_13 {dimension_numbers = #tpu.dot_dimension_numbers<[1], [0], [0], [1], [0, 0, 1, 1], [], []>} : vector<288x4xbf16>, vector<4x4xbf16>, vector<288x4xf32> -> vector<288x4xf32>
    %22 = arith.addf %17, %21 : vector<288x4xf32>
    %23 = vector.extract_strided_slice %11 {offsets = [2, 0], sizes = [288, 4], strides = [1, 1]} : vector<342x4xbf16> to vector<288x4xbf16>
    %c2 = arith.constant 2 : index
    %c0_14 = arith.constant 0 : index
    %c0_15 = arith.constant 0 : index
    %24 = vector.load %arg3[%c2, %c0_14, %c0_15] : memref<9x4x4xbf16, #tpu.memory_space<vmem>>, vector<1x4x4xbf16>
    %25 = vector.shape_cast %24 : vector<1x4x4xbf16> to vector<4x4xbf16>
    %cst_16 = arith.constant dense<0.000000e+00> : vector<288x4xf32>
    %26 = tpu.matmul %23, %25, %cst_16 {dimension_numbers = #tpu.dot_dimension_numbers<[1], [0], [0], [1], [0, 0, 1, 1], [], []>} : vector<288x4xbf16>, vector<4x4xbf16>, vector<288x4xf32> -> vector<288x4xf32>
    %27 = arith.addf %22, %26 : vector<288x4xf32>
    %28 = vector.extract_strided_slice %11 {offsets = [18, 0], sizes = [288, 4], strides = [1, 1]} : vector<342x4xbf16> to vector<288x4xbf16>
    %c3 = arith.constant 3 : index
    %c0_17 = arith.constant 0 : index
    %c0_18 = arith.constant 0 : index
    %29 = vector.load %arg3[%c3, %c0_17, %c0_18] : memref<9x4x4xbf16, #tpu.memory_space<vmem>>, vector<1x4x4xbf16>
    %30 = vector.shape_cast %29 : vector<1x4x4xbf16> to vector<4x4xbf16>
    %cst_19 = arith.constant dense<0.000000e+00> : vector<288x4xf32>
    %31 = tpu.matmul %28, %30, %cst_19 {dimension_numbers = #tpu.dot_dimension_numbers<[1], [0], [0], [1], [0, 0, 1, 1], [], []>} : vector<288x4xbf16>, vector<4x4xbf16>, vector<288x4xf32> -> vector<288x4xf32>
    %32 = arith.addf %27, %31 : vector<288x4xf32>
    %33 = vector.extract_strided_slice %11 {offsets = [19, 0], sizes = [288, 4], strides = [1, 1]} : vector<342x4xbf16> to vector<288x4xbf16>
    %c4 = arith.constant 4 : index
    %c0_20 = arith.constant 0 : index
    %c0_21 = arith.constant 0 : index
    %34 = vector.load %arg3[%c4, %c0_20, %c0_21] : memref<9x4x4xbf16, #tpu.memory_space<vmem>>, vector<1x4x4xbf16>
    %35 = vector.shape_cast %34 : vector<1x4x4xbf16> to vector<4x4xbf16>
    %cst_22 = arith.constant dense<0.000000e+00> : vector<288x4xf32>
    %36 = tpu.matmul %33, %35, %cst_22 {dimension_numbers = #tpu.dot_dimension_numbers<[1], [0], [0], [1], [0, 0, 1, 1], [], []>} : vector<288x4xbf16>, vector<4x4xbf16>, vector<288x4xf32> -> vector<288x4xf32>
    %37 = arith.addf %32, %36 : vector<288x4xf32>
    %38 = vector.extract_strided_slice %11 {offsets = [20, 0], sizes = [288, 4], strides = [1, 1]} : vector<342x4xbf16> to vector<288x4xbf16>
    %c5 = arith.constant 5 : index
    %c0_23 = arith.constant 0 : index
    %c0_24 = arith.constant 0 : index
    %39 = vector.load %arg3[%c5, %c0_23, %c0_24] : memref<9x4x4xbf16, #tpu.memory_space<vmem>>, vector<1x4x4xbf16>
    %40 = vector.shape_cast %39 : vector<1x4x4xbf16> to vector<4x4xbf16>
    %cst_25 = arith.constant dense<0.000000e+00> : vector<288x4xf32>
    %41 = tpu.matmul %38, %40, %cst_25 {dimension_numbers = #tpu.dot_dimension_numbers<[1], [0], [0], [1], [0, 0, 1, 1], [], []>} : vector<288x4xbf16>, vector<4x4xbf16>, vector<288x4xf32> -> vector<288x4xf32>
    %42 = arith.addf %37, %41 : vector<288x4xf32>
    %43 = vector.extract_strided_slice %11 {offsets = [36, 0], sizes = [288, 4], strides = [1, 1]} : vector<342x4xbf16> to vector<288x4xbf16>
    %c6 = arith.constant 6 : index
    %c0_26 = arith.constant 0 : index
    %c0_27 = arith.constant 0 : index
    %44 = vector.load %arg3[%c6, %c0_26, %c0_27] : memref<9x4x4xbf16, #tpu.memory_space<vmem>>, vector<1x4x4xbf16>
    %45 = vector.shape_cast %44 : vector<1x4x4xbf16> to vector<4x4xbf16>
    %cst_28 = arith.constant dense<0.000000e+00> : vector<288x4xf32>
    %46 = tpu.matmul %43, %45, %cst_28 {dimension_numbers = #tpu.dot_dimension_numbers<[1], [0], [0], [1], [0, 0, 1, 1], [], []>} : vector<288x4xbf16>, vector<4x4xbf16>, vector<288x4xf32> -> vector<288x4xf32>
    %47 = arith.addf %42, %46 : vector<288x4xf32>
    %48 = vector.extract_strided_slice %11 {offsets = [37, 0], sizes = [288, 4], strides = [1, 1]} : vector<342x4xbf16> to vector<288x4xbf16>
    %c7 = arith.constant 7 : index
    %c0_29 = arith.constant 0 : index
    %c0_30 = arith.constant 0 : index
    %49 = vector.load %arg3[%c7, %c0_29, %c0_30] : memref<9x4x4xbf16, #tpu.memory_space<vmem>>, vector<1x4x4xbf16>
    %50 = vector.shape_cast %49 : vector<1x4x4xbf16> to vector<4x4xbf16>
    %cst_31 = arith.constant dense<0.000000e+00> : vector<288x4xf32>
    %51 = tpu.matmul %48, %50, %cst_31 {dimension_numbers = #tpu.dot_dimension_numbers<[1], [0], [0], [1], [0, 0, 1, 1], [], []>} : vector<288x4xbf16>, vector<4x4xbf16>, vector<288x4xf32> -> vector<288x4xf32>
    %52 = arith.addf %47, %51 : vector<288x4xf32>
    %53 = vector.extract_strided_slice %11 {offsets = [38, 0], sizes = [288, 4], strides = [1, 1]} : vector<342x4xbf16> to vector<288x4xbf16>
    %c8 = arith.constant 8 : index
    %c0_32 = arith.constant 0 : index
    %c0_33 = arith.constant 0 : index
    %54 = vector.load %arg3[%c8, %c0_32, %c0_33] : memref<9x4x4xbf16, #tpu.memory_space<vmem>>, vector<1x4x4xbf16>
    %55 = vector.shape_cast %54 : vector<1x4x4xbf16> to vector<4x4xbf16>
    %cst_34 = arith.constant dense<0.000000e+00> : vector<288x4xf32>
    %56 = tpu.matmul %53, %55, %cst_34 {dimension_numbers = #tpu.dot_dimension_numbers<[1], [0], [0], [1], [0, 0, 1, 1], [], []>} : vector<288x4xbf16>, vector<4x4xbf16>, vector<288x4xf32> -> vector<288x4xf32>
    %57 = arith.addf %52, %56 : vector<288x4xf32>
    %c0_35 = arith.constant 0 : index
    %c0_36 = arith.constant 0 : index
    %58 = vector.load %arg4[%c0_35, %c0_36] : memref<1x4xf32, #tpu.memory_space<vmem>>, vector<1x4xf32>
    %59 = vector.broadcast %58 : vector<1x4xf32> to vector<288x4xf32>
    %60 = arith.mulf %57, %59 : vector<288x4xf32>
    %c0_37 = arith.constant 0 : index
    %c0_38 = arith.constant 0 : index
    %61 = vector.load %arg5[%c0_37, %c0_38] : memref<1x4xf32, #tpu.memory_space<vmem>>, vector<1x4xf32>
    %62 = vector.broadcast %61 : vector<1x4xf32> to vector<288x4xf32>
    %63 = arith.addf %60, %62 : vector<288x4xf32>
    %cst_39 = arith.constant 0.000000e+00 : f32
    %64 = vector.broadcast %cst_39 : f32 to vector<288x4xf32>
    %65 = arith.maximumf %63, %64 : vector<288x4xf32>
    %66 = arith.truncf %65 : vector<288x4xf32> to vector<288x4xbf16>
    %c0_40 = arith.constant 0 : index
    %c0_41 = arith.constant 0 : index
    %c0_42 = arith.constant 0 : index
    %67 = vector.load %arg6[%c0_40, %c0_41, %c0_42] : memref<1x288x4xbf16, #tpu.memory_space<vmem>>, vector<1x288x4xbf16>
    %68 = vector.shape_cast %67 : vector<1x288x4xbf16> to vector<288x4xbf16>
    %69 = vector.shape_cast %66 : vector<288x4xbf16> to vector<1x288x4xbf16>
    tpu.vector_store %arg6[%c0_40, %c0_41, %c0_42], %69 {strides = array<i32>} : memref<1x288x4xbf16, #tpu.memory_space<vmem>>, vector<1x288x4xbf16>,
    return
  }
  func.func @transform_0(%arg0: i32) -> (i32, i32, i32) {
    %c0_i32 = arith.constant 0 : i32
    %c0_i32_0 = arith.constant 0 : i32
    %c0_i32_1 = arith.constant 0 : i32
    return %arg0, %c0_i32, %c0_i32_0 : i32, i32, i32
  }
  func.func @transform_1(%arg0: i32) -> (i32, i32, i32) {
    %c0_i32 = arith.constant 0 : i32
    %c0_i32_0 = arith.constant 0 : i32
    %c0_i32_1 = arith.constant 0 : i32
    return %arg0, %c0_i32, %c0_i32_0 : i32, i32, i32
  }
  func.func @transform_2(%arg0: i32) -> (i32, i32, i32) {
    %c0_i32 = arith.constant 0 : i32
    %c0_i32_0 = arith.constant 0 : i32
    %c0_i32_1 = arith.constant 0 : i32
    %c0_i32_2 = arith.constant 0 : i32
    return %c0_i32, %c0_i32_0, %c0_i32_1 : i32, i32, i32
  }
  func.func @transform_3(%arg0: i32) -> (i32, i32) {
    %c0_i32 = arith.constant 0 : i32
    %c0_i32_0 = arith.constant 0 : i32
    %c0_i32_1 = arith.constant 0 : i32
    return %c0_i32, %c0_i32_0 : i32, i32
  }
  func.func @transform_4(%arg0: i32) -> (i32, i32) {
    %c0_i32 = arith.constant 0 : i32
    %c0_i32_0 = arith.constant 0 : i32
    %c0_i32_1 = arith.constant 0 : i32
    return %c0_i32, %c0_i32_0 : i32, i32
  }
  func.func @transform_5(%arg0: i32) -> (i32, i32, i32) {
    %c0_i32 = arith.constant 0 : i32
    %c0_i32_0 = arith.constant 0 : i32
    %c0_i32_1 = arith.constant 0 : i32
    return %arg0, %c0_i32, %c0_i32_0 : i32, i32, i32
  }
}

module attributes {stable_mosaic.version = 11 : i64} {
  func.func @kernel(%arg0: i32, %arg1: memref<1x342x4xbf16, #tpu.memory_space<vmem>>, %arg2: memref<9x4x4xbf16, #tpu.memory_space<vmem>>, %arg3: memref<1x4xf32, #tpu.memory_space<vmem>>, %arg4: memref<1x4xf32, #tpu.memory_space<vmem>>, %arg5: memref<1x288x4xf32, #tpu.memory_space<vmem>>) attributes {dimension_semantics = [#tpu.dimension_semantics<parallel>], iteration_bounds = array<i64: 2>, scalar_prefetch = 0 : i64, scratch_operands = 0 : i64, tpu.core_type = #tpu.core_type<tc>, window_params = [{transform_indices = @transform_0, window_bounds = array<i64: 1, 342, 4>}, {pipeline_mode = #tpu.pipeline_mode<synchronous>, transform_indices = @transform_1, window_bounds = array<i64: 9, 4, 4>}, {pipeline_mode = #tpu.pipeline_mode<synchronous>, transform_indices = @transform_2, window_bounds = array<i64: 1, 4>}, {pipeline_mode = #tpu.pipeline_mode<synchronous>, transform_indices = @transform_3, window_bounds = array<i64: 1, 4>}, {transform_indices = @transform_4, window_bounds = array<i64: 1, 288, 4>}]} {
    %c0 = arith.constant 0 : index
    %c0_0 = arith.constant 0 : index
    %c0_1 = arith.constant 0 : index
    %0 = vector.load %arg1[%c0, %c0_0, %c0_1] : memref<1x342x4xbf16, #tpu.memory_space<vmem>>, vector<1x342x4xbf16>
    %1 = vector.shape_cast %0 : vector<1x342x4xbf16> to vector<342x4xbf16>
    %cst = arith.constant 0.000000e+00 : f32
    %2 = vector.broadcast %cst : f32 to vector<288x4xf32>
    %3 = vector.extract_strided_slice %1 {offsets = [0, 0], sizes = [288, 4], strides = [1, 1]} : vector<342x4xbf16> to vector<288x4xbf16>
    %c0_2 = arith.constant 0 : index
    %c0_3 = arith.constant 0 : index
    %c0_4 = arith.constant 0 : index
    %4 = vector.load %arg2[%c0_2, %c0_3, %c0_4] : memref<9x4x4xbf16, #tpu.memory_space<vmem>>, vector<1x4x4xbf16>
    %5 = vector.shape_cast %4 : vector<1x4x4xbf16> to vector<4x4xbf16>
    %cst_5 = arith.constant dense<0.000000e+00> : vector<288x4xf32>
    %6 = tpu.matmul %3, %5, %cst_5 {dimension_numbers = #tpu.dot_dimension_numbers<[1], [0], [0], [1], [0, 0, 1, 1], [], []>} : vector<288x4xbf16>, vector<4x4xbf16>, vector<288x4xf32> -> vector<288x4xf32>
    %7 = arith.addf %2, %6 : vector<288x4xf32>
    %8 = vector.extract_strided_slice %1 {offsets = [1, 0], sizes = [288, 4], strides = [1, 1]} : vector<342x4xbf16> to vector<288x4xbf16>
    %c1 = arith.constant 1 : index
    %c0_6 = arith.constant 0 : index
    %c0_7 = arith.constant 0 : index
    %9 = vector.load %arg2[%c1, %c0_6, %c0_7] : memref<9x4x4xbf16, #tpu.memory_space<vmem>>, vector<1x4x4xbf16>
    %10 = vector.shape_cast %9 : vector<1x4x4xbf16> to vector<4x4xbf16>
    %cst_8 = arith.constant dense<0.000000e+00> : vector<288x4xf32>
    %11 = tpu.matmul %8, %10, %cst_8 {dimension_numbers = #tpu.dot_dimension_numbers<[1], [0], [0], [1], [0, 0, 1, 1], [], []>} : vector<288x4xbf16>, vector<4x4xbf16>, vector<288x4xf32> -> vector<288x4xf32>
    %12 = arith.addf %7, %11 : vector<288x4xf32>
    %13 = vector.extract_strided_slice %1 {offsets = [2, 0], sizes = [288, 4], strides = [1, 1]} : vector<342x4xbf16> to vector<288x4xbf16>
    %c2 = arith.constant 2 : index
    %c0_9 = arith.constant 0 : index
    %c0_10 = arith.constant 0 : index
    %14 = vector.load %arg2[%c2, %c0_9, %c0_10] : memref<9x4x4xbf16, #tpu.memory_space<vmem>>, vector<1x4x4xbf16>
    %15 = vector.shape_cast %14 : vector<1x4x4xbf16> to vector<4x4xbf16>
    %cst_11 = arith.constant dense<0.000000e+00> : vector<288x4xf32>
    %16 = tpu.matmul %13, %15, %cst_11 {dimension_numbers = #tpu.dot_dimension_numbers<[1], [0], [0], [1], [0, 0, 1, 1], [], []>} : vector<288x4xbf16>, vector<4x4xbf16>, vector<288x4xf32> -> vector<288x4xf32>
    %17 = arith.addf %12, %16 : vector<288x4xf32>
    %18 = vector.extract_strided_slice %1 {offsets = [18, 0], sizes = [288, 4], strides = [1, 1]} : vector<342x4xbf16> to vector<288x4xbf16>
    %c3 = arith.constant 3 : index
    %c0_12 = arith.constant 0 : index
    %c0_13 = arith.constant 0 : index
    %19 = vector.load %arg2[%c3, %c0_12, %c0_13] : memref<9x4x4xbf16, #tpu.memory_space<vmem>>, vector<1x4x4xbf16>
    %20 = vector.shape_cast %19 : vector<1x4x4xbf16> to vector<4x4xbf16>
    %cst_14 = arith.constant dense<0.000000e+00> : vector<288x4xf32>
    %21 = tpu.matmul %18, %20, %cst_14 {dimension_numbers = #tpu.dot_dimension_numbers<[1], [0], [0], [1], [0, 0, 1, 1], [], []>} : vector<288x4xbf16>, vector<4x4xbf16>, vector<288x4xf32> -> vector<288x4xf32>
    %22 = arith.addf %17, %21 : vector<288x4xf32>
    %23 = vector.extract_strided_slice %1 {offsets = [19, 0], sizes = [288, 4], strides = [1, 1]} : vector<342x4xbf16> to vector<288x4xbf16>
    %c4 = arith.constant 4 : index
    %c0_15 = arith.constant 0 : index
    %c0_16 = arith.constant 0 : index
    %24 = vector.load %arg2[%c4, %c0_15, %c0_16] : memref<9x4x4xbf16, #tpu.memory_space<vmem>>, vector<1x4x4xbf16>
    %25 = vector.shape_cast %24 : vector<1x4x4xbf16> to vector<4x4xbf16>
    %cst_17 = arith.constant dense<0.000000e+00> : vector<288x4xf32>
    %26 = tpu.matmul %23, %25, %cst_17 {dimension_numbers = #tpu.dot_dimension_numbers<[1], [0], [0], [1], [0, 0, 1, 1], [], []>} : vector<288x4xbf16>, vector<4x4xbf16>, vector<288x4xf32> -> vector<288x4xf32>
    %27 = arith.addf %22, %26 : vector<288x4xf32>
    %28 = vector.extract_strided_slice %1 {offsets = [20, 0], sizes = [288, 4], strides = [1, 1]} : vector<342x4xbf16> to vector<288x4xbf16>
    %c5 = arith.constant 5 : index
    %c0_18 = arith.constant 0 : index
    %c0_19 = arith.constant 0 : index
    %29 = vector.load %arg2[%c5, %c0_18, %c0_19] : memref<9x4x4xbf16, #tpu.memory_space<vmem>>, vector<1x4x4xbf16>
    %30 = vector.shape_cast %29 : vector<1x4x4xbf16> to vector<4x4xbf16>
    %cst_20 = arith.constant dense<0.000000e+00> : vector<288x4xf32>
    %31 = tpu.matmul %28, %30, %cst_20 {dimension_numbers = #tpu.dot_dimension_numbers<[1], [0], [0], [1], [0, 0, 1, 1], [], []>} : vector<288x4xbf16>, vector<4x4xbf16>, vector<288x4xf32> -> vector<288x4xf32>
    %32 = arith.addf %27, %31 : vector<288x4xf32>
    %33 = vector.extract_strided_slice %1 {offsets = [36, 0], sizes = [288, 4], strides = [1, 1]} : vector<342x4xbf16> to vector<288x4xbf16>
    %c6 = arith.constant 6 : index
    %c0_21 = arith.constant 0 : index
    %c0_22 = arith.constant 0 : index
    %34 = vector.load %arg2[%c6, %c0_21, %c0_22] : memref<9x4x4xbf16, #tpu.memory_space<vmem>>, vector<1x4x4xbf16>
    %35 = vector.shape_cast %34 : vector<1x4x4xbf16> to vector<4x4xbf16>
    %cst_23 = arith.constant dense<0.000000e+00> : vector<288x4xf32>
    %36 = tpu.matmul %33, %35, %cst_23 {dimension_numbers = #tpu.dot_dimension_numbers<[1], [0], [0], [1], [0, 0, 1, 1], [], []>} : vector<288x4xbf16>, vector<4x4xbf16>, vector<288x4xf32> -> vector<288x4xf32>
    %37 = arith.addf %32, %36 : vector<288x4xf32>
    %38 = vector.extract_strided_slice %1 {offsets = [37, 0], sizes = [288, 4], strides = [1, 1]} : vector<342x4xbf16> to vector<288x4xbf16>
    %c7 = arith.constant 7 : index
    %c0_24 = arith.constant 0 : index
    %c0_25 = arith.constant 0 : index
    %39 = vector.load %arg2[%c7, %c0_24, %c0_25] : memref<9x4x4xbf16, #tpu.memory_space<vmem>>, vector<1x4x4xbf16>
    %40 = vector.shape_cast %39 : vector<1x4x4xbf16> to vector<4x4xbf16>
    %cst_26 = arith.constant dense<0.000000e+00> : vector<288x4xf32>
    %41 = tpu.matmul %38, %40, %cst_26 {dimension_numbers = #tpu.dot_dimension_numbers<[1], [0], [0], [1], [0, 0, 1, 1], [], []>} : vector<288x4xbf16>, vector<4x4xbf16>, vector<288x4xf32> -> vector<288x4xf32>
    %42 = arith.addf %37, %41 : vector<288x4xf32>
    %43 = vector.extract_strided_slice %1 {offsets = [38, 0], sizes = [288, 4], strides = [1, 1]} : vector<342x4xbf16> to vector<288x4xbf16>
    %c8 = arith.constant 8 : index
    %c0_27 = arith.constant 0 : index
    %c0_28 = arith.constant 0 : index
    %44 = vector.load %arg2[%c8, %c0_27, %c0_28] : memref<9x4x4xbf16, #tpu.memory_space<vmem>>, vector<1x4x4xbf16>
    %45 = vector.shape_cast %44 : vector<1x4x4xbf16> to vector<4x4xbf16>
    %cst_29 = arith.constant dense<0.000000e+00> : vector<288x4xf32>
    %46 = tpu.matmul %43, %45, %cst_29 {dimension_numbers = #tpu.dot_dimension_numbers<[1], [0], [0], [1], [0, 0, 1, 1], [], []>} : vector<288x4xbf16>, vector<4x4xbf16>, vector<288x4xf32> -> vector<288x4xf32>
    %47 = arith.addf %42, %46 : vector<288x4xf32>
    %c0_30 = arith.constant 0 : index
    %c0_31 = arith.constant 0 : index
    %48 = vector.load %arg3[%c0_30, %c0_31] : memref<1x4xf32, #tpu.memory_space<vmem>>, vector<1x4xf32>
    %49 = vector.broadcast %48 : vector<1x4xf32> to vector<288x4xf32>
    %50 = arith.mulf %47, %49 : vector<288x4xf32>
    %c0_32 = arith.constant 0 : index
    %c0_33 = arith.constant 0 : index
    %51 = vector.load %arg4[%c0_32, %c0_33] : memref<1x4xf32, #tpu.memory_space<vmem>>, vector<1x4xf32>
    %52 = vector.broadcast %51 : vector<1x4xf32> to vector<288x4xf32>
    %53 = arith.addf %50, %52 : vector<288x4xf32>
    %cst_34 = arith.constant 0.000000e+00 : f32
    %54 = vector.broadcast %cst_34 : f32 to vector<288x4xf32>
    %55 = arith.maximumf %53, %54 : vector<288x4xf32>
    %c0_35 = arith.constant 0 : index
    %c0_36 = arith.constant 0 : index
    %c0_37 = arith.constant 0 : index
    %56 = vector.load %arg5[%c0_35, %c0_36, %c0_37] : memref<1x288x4xf32, #tpu.memory_space<vmem>>, vector<1x288x4xf32>
    %57 = vector.shape_cast %56 : vector<1x288x4xf32> to vector<288x4xf32>
    %58 = vector.shape_cast %55 : vector<288x4xf32> to vector<1x288x4xf32>
    tpu.vector_store %arg5[%c0_35, %c0_36, %c0_37], %58 {strides = array<i32>} : memref<1x288x4xf32, #tpu.memory_space<vmem>>, vector<1x288x4xf32>,
    return
  }
  func.func @transform_0(%arg0: i32) -> (i32, i32, i32) {
    %c0_i32 = arith.constant 0 : i32
    %c0_i32_0 = arith.constant 0 : i32
    %c0_i32_1 = arith.constant 0 : i32
    return %arg0, %c0_i32, %c0_i32_0 : i32, i32, i32
  }
  func.func @transform_1(%arg0: i32) -> (i32, i32, i32) {
    %c0_i32 = arith.constant 0 : i32
    %c0_i32_0 = arith.constant 0 : i32
    %c0_i32_1 = arith.constant 0 : i32
    %c0_i32_2 = arith.constant 0 : i32
    return %c0_i32, %c0_i32_0, %c0_i32_1 : i32, i32, i32
  }
  func.func @transform_2(%arg0: i32) -> (i32, i32) {
    %c0_i32 = arith.constant 0 : i32
    %c0_i32_0 = arith.constant 0 : i32
    %c0_i32_1 = arith.constant 0 : i32
    return %c0_i32, %c0_i32_0 : i32, i32
  }
  func.func @transform_3(%arg0: i32) -> (i32, i32) {
    %c0_i32 = arith.constant 0 : i32
    %c0_i32_0 = arith.constant 0 : i32
    %c0_i32_1 = arith.constant 0 : i32
    return %c0_i32, %c0_i32_0 : i32, i32
  }
  func.func @transform_4(%arg0: i32) -> (i32, i32, i32) {
    %c0_i32 = arith.constant 0 : i32
    %c0_i32_0 = arith.constant 0 : i32
    %c0_i32_1 = arith.constant 0 : i32
    return %arg0, %c0_i32, %c0_i32_0 : i32, i32, i32
  }
}

</mosaic_0001>

<bundles_post_ra>
// kernel: up_forward.3
= control target key start
LH: loop header
LB: loop body
LE: loop exit
PB: predicated region body
PF: predicated region fallthrough
CT: control target
= control target key end

     0   :  { %s541_s15 = smov 0   ;;  %s578_s0 = inlined_call_operand.vmem [shape: bf16[128,8], index: 0, kind: input, shape index: {}]   ;;  %s579_s1 = inlined_call_operand.vmem [shape: bf16[8,4], index: 1, kind: input, shape index: {}]   ;;  %s580_s2 = inlined_call_operand.vmem [shape: f32[1,4], index: 2, kind: input, shape index: {}]   ;;  %s581_s3 = inlined_call_operand.vmem [shape: f32[1,4], index: 3, kind: input, shape index: {}]   ;;  %s582_s4 = inlined_call_operand.vmem [shape: bf16[128,4], index: 4, kind: output, shape index: {}]  }
   0x1 LB: > { %s440_s16 = sadd.s32 4294967295, %s514_s15   ;;  %p444_p0 = scmp.ge.s32.totalorder %s514_s15, 1  ;;  %s514_s15 = sphi %s541_s15, %s14_s15  }
   0x2   : > { %p163_p1 = scmp.lt.s32.totalorder %s514_s15, 3 }
   0x4   : > { %p164_p2 = pnand %p444_p0, %p163_p1 }
   0x5   : > { %v210_v0 = vld [vmem:[%s579_s1] sm:$0xf] (!%p164_p2)  ;;  %vm244_vm0 = vcmask (!%p164_p2), 1043456   ;;  %s445_s19 = sshll.u32 (!%p164_p2), %s440_s16, 3  ;;  %vm231_vm1 = vcmask (!%p164_p2), 64512   ;;  %vm375_vm2 = vcmask (!%p164_p2), 27648  }
   0x6   : > { %167 = sbr.rel (%p164_p2) target bundleno = 240 (0xf0), region = 36  ;;  %494 = vmatprep.subr.msk.bf16.mxu0 (!%p164_p2), %vm244_vm0, %v210_v0  ;;  %495 = vmatprep.subr.msk.bf16.mxu1 (!%p164_p2), %vm244_vm0, %v210_v0  ;;  %v246_v1 = vsel (!%p164_p2), %vm244_vm0, %v210_v0, 0  ;;  %p190_p3 = scmp.lt.s32.totalorder (!%p164_p2), %s445_s19, 15  ;;  %v457_v6 = vld [vmem:[%s580_s2] ss:$0 sm:$0xff] (!%p164_p2) }
   0x7   : > { %483 = vmatpush3.bf16.msra.mxu0 (!%p164_p2), %v246_v1  ;;  %493 = vmatpush3.bf16.msra.mxu1 (!%p164_p2), %v246_v1  ;;  %v458_v8 = vld [vmem:[%s581_s3] ss:$0 sm:$0xff] (!%p164_p2) }
   0xd   : > { %s584_s19 = smov (!%p190_p3, %s445_s19), 15 }
   0xe   : > { %s446_s20 = sshll.u32 %s584_s19, 2 }
   0xf   : > { %s193_s23 = scalar_lea.vmem %s578_s0, %s446_s20  ;;  %s199_s30 = scalar_lea.vmem %s582_s4, %s446_s20 }
  0x10   : > { %v504_v2 = vld [vmem:[%s193_s23] sm:$0xff]   ;;  %v505_v3 = vld [vmem:[%s193_s23 + $0x10] sm:$0xff]   ;;  %v506_v4 = vld [vmem:[%s193_s23 + $0x8] sm:$0xff]  }
  0x11   : > { %484 = vmatprep.mubr.msk.bf16.mxu0 %vm231_vm1, %v504_v2  ;;  %488 = vmatprep.mubr.msk.bf16.mxu1 %vm231_vm1, %v505_v3  ;;  %v507_v5 = vld [vmem:[%s193_s23 + $0x18] sm:$0xff]  }
  0x12   : > { %485 = vmatmul.mubr.msk.bf16.vlgmr.msra.gmra.mrb[0].mxu0 %vm231_vm1, %v506_v4  ;;  %489 = vmatmul.mubr.msk.bf16.vlgmr.msra.gmra.mrb[0].mxu1 %vm231_vm1, %v507_v5 }
  0xe5   : > { %v486_v7 = vpop.f32.mrb[0].mxu0  ;;  %v490_v10 = vpop.f32.mrb[0].mxu1 }
  0xe6   : > { %v322_v9 = vmul.f32 %v486_v7, %v457_v6  ;;  %v282_v11 = vpop.f32.mrb[1].mxu0  ;;  %v326_v12 = vmul.f32 %v490_v10, %v457_v6  ;;  %v298_v14 = vpop.f32.mrb[1].mxu1 }
  0xe7   : > { %v320_v13 = vmul.f32 %v457_v6, %v282_v11  ;;  %v487_v15 = vpop.f32.mrb[2].mxu0  ;;  %v324_v17 = vmul.f32 %v457_v6, %v298_v14  ;;  %v491_v19 = vpop.f32.mrb[2].mxu1 }
  0xe8   : > { %v337_v16 = vadd.f32 %v458_v8, %v322_v9  ;;  %v323_v18 = vmul.f32 %v487_v15, %v457_v6  ;;  %v285_v20 = vpop.f32.mrb[3].mxu0  ;;  %v341_v21 = vadd.f32 %v458_v8, %v326_v12  ;;  %v327_v23 = vmul.f32 %v491_v19, %v457_v6  ;;  %v301_v25 = vpop.f32.mrb[3].mxu1 }
  0xe9   : > { %v335_v22 = vadd.f32 %v458_v8, %v320_v13  ;;  %v321_v24 = vmul.f32 %v457_v6, %v285_v20  ;;  %v339_v27 = vadd.f32 %v458_v8, %v324_v17  ;;  %v325_v29 = vmul.f32 %v457_v6, %v301_v25 }
  0xea   : > { %v471_v26 = vpack.c.bf16 %v337_v16, %v337_v16  ;;  %v338_v28 = vadd.f32 %v458_v8, %v323_v18  ;;  %v475_v30 = vpack.c.bf16 %v341_v21, %v341_v21  ;;  %v342_v32 = vadd.f32 %v458_v8, %v327_v23 }
  0xeb   : > { %v469_v31 = vpack.c.bf16 %v335_v22, %v335_v22  ;;  %v336_v33 = vadd.f32 %v458_v8, %v321_v24  ;;  %v473_v34 = vpack.c.bf16 %v339_v27, %v339_v27  ;;  %v340_v36 = vadd.f32 %v458_v8, %v325_v29 }
  0xec   : > { %378 = vst.msk [vmem:[%s199_s30 + $0x8] sm:$0xf] %vm375_vm2, %v471_v26  ;;  %v472_v35 = vpack.c.bf16 %v338_v28, %v338_v28  ;;  %382 = vst.msk [vmem:[%s199_s30 + $0x18] sm:$0xf] %vm375_vm2, %v475_v30  ;;  %v476_v37 = vpack.c.bf16 %v342_v32, %v342_v32 }
  0xed   : > { %376 = vst.msk [vmem:[%s199_s30] sm:$0xf] %vm375_vm2, %v469_v31  ;;  %v470_v38 = vpack.c.bf16 %v336_v33, %v336_v33  ;;  %380 = vst.msk [vmem:[%s199_s30 + $0x10] sm:$0xf] %vm375_vm2, %v473_v34  ;;  %v474_v39 = vpack.c.bf16 %v340_v36, %v340_v36 }
  0xee   : > { %379 = vst.msk [vmem:[%s199_s30 + $0xc] sm:$0xf] %vm375_vm2, %v472_v35  ;;  %383 = vst.msk [vmem:[%s199_s30 + $0x1c] sm:$0xf] %vm375_vm2, %v476_v37 }
  0xef   : > { %377 = vst.msk [vmem:[%s199_s30 + $0x4] sm:$0xf] %vm375_vm2, %v470_v38  ;;  %381 = vst.msk [vmem:[%s199_s30 + $0x14] sm:$0xf] %vm375_vm2, %v474_v39 }
  0xf0 PF: > { %s14_s15 = sadd.s32 1, %s514_s15  }
  0xf1   : > { %p11_p4 = scmp.ge.s32.totalorder %s14_s15, 4  }
  0xf3   :  { %13 = sbr.rel (!%p11_p4) target bundleno = 1 (0x1), region = 66 }

// kernel: up_forward.4
= control target key start
LH: loop header
LB: loop body
LE: loop exit
PB: predicated region body
PF: predicated region fallthrough
CT: control target
= control target key end

     0   :  { %s4964_s18 = smov 0   ;;  %s6094_s0 = inlined_call_operand.vmem [shape: bf16[2,342,4], index: 0, kind: input, shape index: {}]   ;;  %s6095_s1 = inlined_call_operand.vmem [shape: bf16[2,342,4], index: 1, kind: input, shape index: {}]   ;;  %s6096_s2 = inlined_call_operand.vmem [shape: bf16[9,4,4], index: 2, kind: input, shape index: {}]   ;;  %s6097_s3 = inlined_call_operand.vmem [shape: f32[1,4], index: 3, kind: input, shape index: {}]   ;;  %s6098_s4 = inlined_call_operand.vmem [shape: f32[1,4], index: 4, kind: input, shape index: {}]   ;;  %s6099_s5 = inlined_call_operand.vmem [shape: bf16[2,288,4], index: 5, kind: output, shape index: {}]  }
   0x1 LB: > { %s3640_s19 = sadd.s32 4294967295, %s4932_s18   ;;  %p3644_p0 = scmp.ge.s32.totalorder %s4932_s18, 1  ;;  %s4932_s18 = sphi %s4964_s18, %s15_s18  }
   0x2   : > { %p197_p1 = scmp.lt.s32.totalorder %s4932_s18, 3 }
   0x4   : > { %p198_p2 = pnand %p3644_p0, %p197_p1 }
   0x6   : > { %201 = sbr.rel (%p198_p2) target bundleno = 600 (0x258), region = 40 }
   0xd   : > { %vm768_vm0 = vcmask 1041408   ;;  %v3723_v0 = vld [vmem:[%s6096_s2 + $0x8] sm:$0x3]  ;;  %v3648_v1 = vld [vmem:[%s6096_s2 + $0x2] sm:$0x3]  ;;  %p230_p3 = scmp.lt.s32.totalorder %s3640_s19, 1 }
   0xe   : > { %4909 = vmatprep.subr.msk.bf16.mxu0 %vm768_vm0, %v3723_v0  ;;  %4905 = vmatprep.subr.msk.bf16.mxu1 %vm768_vm0, %v3648_v1  ;;  %v4981_v2 = vsel %vm768_vm0, %v3723_v0, 0  ;;  %v770_v3 = vsel %vm768_vm0, %v3648_v1, 0  ;;  %v3742_v4 = vld [vmem:[%s6096_s2 + $0xa] sm:$0x3]  ;;  %v561_v5 = vld [vmem:[%s6096_s2] sm:$0x3] }
   0xf   : > { %6138 = vst [vmem:[#allocation2_spill] sm:$0xff] %v4981_v2  ;;  %4426 = vmatpush3.bf16.msra.mxu0 %v4981_v2  ;;  %4274 = vmatpush3.bf16.msra.mxu1 %v770_v3  ;;  %s6187_s19 = smov (!%p230_p3, %s3640_s19), 1  ;;  %v5010_v9 = vsel %vm768_vm0, %v3742_v4, 0  ;;  %v5013_v10 = vsel %vm768_vm0, %v561_v5, 0  ;;  %vm564_vm1 = vsmask.f32 7424 }
  0x10   : > { %4911 = vmatprep.subr.msk.bf16.mxu0 %vm768_vm0, %v3742_v4  ;;  %s4915_s28 = smul.u32 172, %s6187_s19  ;;  %4906 = vmatprep.subr.msk.bf16.mxu1 %vm768_vm0, %v561_v5  ;;  %vm713_vm2 = vcmask 31744   ;;  %vm1720_vm3 = vsmask.f32 6400  ;;  %vm2075_vm4 = vcmask 1045504   ;;  %vm1186_vm6 = vcmask 1046528  }
  0x11   : > { %vm2609_vm5 = vsmask.f32 5376  ;;  %vm2962_vm7 = vcmask 1044480   ;;  %vm3536_vm8 = vcmask 27648  }
  0x12   : > { %s4999_s6 = scalar_lea.vmem %s6094_s0, %s4915_s28  ;;  %s5004_s9 = scalar_lea.vmem %s6095_s1, %s4915_s28 }
  0x13   : > { %v3895_v6 = vld [vmem:[%s5004_s9] sm:$0xff]   ;;  %v4062_v7 = vld [vmem:[%s5004_s9 + $0x8] sm:$0xff]   ;;  %v4063_v16 = vld [vmem:[%s5004_s9 + $0x10] sm:$0xff]   ;;  %s4916_s28 = smul.u32 144, %s6187_s19 }
  0x14   : > { %v3979_v8 = vld [vmem:[%s4999_s6] sm:$0xff]   ;;  %v3896_v11 = vunpack.c.l.bf16 %v3895_v6  ;;  %v3897_v12 = vunpack.c.h.bf16 %v3895_v6  ;;  %v3900_v13 = vunpack.c.l.bf16 %v4062_v7  ;;  %v3901_v14 = vunpack.c.h.bf16 %v4062_v7  ;;  %v4082_v15 = vld [vmem:[%s4999_s6 + $0x8] sm:$0xff]   ;;  %v4083_v17 = vld [vmem:[%s4999_s6 + $0x10] sm:$0xff]  }
  0x15   : > { %v3980_v18 = vunpack.c.l.bf16 %v3979_v8  ;;  %v3981_v19 = vunpack.c.h.bf16 %v3979_v8  ;;  %v3984_v20 = vunpack.c.l.bf16 %v4082_v15  ;;  %v3985_v21 = vunpack.c.h.bf16 %v4082_v15  ;;  %v4064_v22 = vld [vmem:[%s5004_s9 + $0x18] sm:$0xff]   ;;  %v5021_v44 = vld [vmem:[%s5004_s9 + $0x20] sm:$0xff]  }
  0x16   : > { %v3904_v23 = vunpack.c.l.bf16 %v4063_v16  ;;  %v3905_v24 = vunpack.c.h.bf16 %v4063_v16  ;;  %v3988_v25 = vunpack.c.l.bf16 %v4083_v17  ;;  %v3989_v26 = vunpack.c.h.bf16 %v4083_v17  ;;  %v4084_v31 = vld [vmem:[%s4999_s6 + $0x18] sm:$0xff]   ;;  %v4085_v49 = vld [vmem:[%s4999_s6 + $0x20] sm:$0xff]  }
  0x17   : > { %v414_v27 = vmax.f32 %v3980_v18, 0.0  ;;  %v415_v28 = vmax.f32 %v3981_v19, 0.0  ;;  %v416_v29 = vmax.f32 %v3984_v20, 0.0  ;;  %v417_v30 = vmax.f32 %v3985_v21, 0.0 }
  0x18   : > { %v418_v32 = vmax.f32 %v3988_v25, 0.0  ;;  %v419_v33 = vmax.f32 %v3989_v26, 0.0  ;;  %v3908_v34 = vunpack.c.l.bf16 %v4064_v22  ;;  %v3909_v35 = vunpack.c.h.bf16 %v4064_v22  ;;  %v4066_v25 = vld [vmem:[%s5004_s9 + $0x28] sm:$0xff]  }
  0x19   : > { %v456_v36 = vmin.f32 %v414_v27, 6.0  ;;  %v457_v37 = vmin.f32 %v415_v28, 6.0  ;;  %v458_v38 = vmin.f32 %v416_v29, 6.0  ;;  %v459_v39 = vmin.f32 %v417_v30, 6.0  ;;  %v4086_v30 = vld [vmem:[%s4999_s6 + $0x28] sm:$0xff]  }
  0x1a   : > { %v460_v40 = vmin.f32 %v418_v32, 6.0  ;;  %v461_v41 = vmin.f32 %v419_v33, 6.0  ;;  %v3992_v42 = vunpack.c.l.bf16 %v4084_v31  ;;  %v3993_v43 = vunpack.c.h.bf16 %v4084_v31 }
  0x1b   : > { %v498_v45 = vadd.f32 %v3896_v11, %v456_v36  ;;  %v499_v46 = vadd.f32 %v3897_v12, %v457_v37  ;;  %v500_v47 = vadd.f32 %v3900_v13, %v458_v38  ;;  %v501_v48 = vadd.f32 %v3901_v14, %v459_v39  ;;  %v5067_v36 = vld [vmem:[%s6096_s2 + $0x4] sm:$0x3] }
  0x1c   : > { %v502_v50 = vadd.f32 %v3904_v23, %v460_v40  ;;  %v503_v51 = vadd.f32 %v3905_v24, %v461_v41  ;;  %v420_v52 = vmax.f32 %v3992_v42, 0.0  ;;  %v421_v53 = vmax.f32 %v3993_v43, 0.0  ;;  %v4087_v41 = vld [vmem:[%s4999_s6 + $0x30] sm:$0xff]  }
  0x1d   : > { %v5024_v54 = vpack.c.bf16 %v499_v46, %v498_v45  ;;  %v5026_v55 = vpack.c.bf16 %v501_v48, %v500_v47  ;;  %v3912_v56 = vunpack.c.l.bf16 %v5021_v44  ;;  %v3913_v57 = vunpack.c.h.bf16 %v5021_v44  ;;  %v4068_v46 = vld [vmem:[%s5004_s9 + $0x38] sm:$0xff]  }
  0x1e   : > { %v5030_v58 = vpack.c.bf16 %v503_v51, %v502_v50  ;;  %v462_v59 = vmin.f32 %v420_v52, 6.0  ;;  %v463_v60 = vmin.f32 %v421_v53, 6.0  ;;  %v3996_v61 = vunpack.c.l.bf16 %v4085_v49  ;;  %v4088_v51 = vld [vmem:[%s4999_s6 + $0x38] sm:$0xff]  }
  0x1f   : > { %v566_v62 = vshrl.u32 %v5024_v54, 16  ;;  %v568_v63 = vshll.u32 %v5024_v54, 16  ;;  %v573_v0 = vshll.u32 %v5026_v55, 16  ;;  %v577_v1 = vshrl.u32 %v5026_v55, 16 }
  0x20   : > { %v5037_v3 = vshll.u32 %v5030_v58, 16  ;;  %v5040_v4 = vshrl.u32 %v5030_v58, 16  ;;  %v504_v5 = vadd.f32 %v3908_v34, %v462_v59  ;;  %v505_v6 = vadd.f32 %v3909_v35, %v463_v60  ;;  %v4067_v35 = vld [vmem:[%s5004_s9 + $0x30] sm:$0xff]  }
  0x21   : > { %v570_v7 = vrot.slane %v568_v63, 1  ;;  %v575_v8 = vrot.slane %v573_v0, 1  ;;  %v1721_v11 = vrot.slane %v577_v1, 1  ;;  %v1722_v12 = vrot.slane %v573_v0, 2 }
  0x22   : > { %v1724_v13 = vrot.slane %v5040_v4, 1  ;;  %v1725_v14 = vrot.slane %v5037_v3, 2  ;;  %v583_v15 = vrot.slane %v5037_v3, 1  ;;  %v5045_v16 = vpack.c.bf16 %v505_v6, %v504_v5 }
  0x23   : > { %v571_v17 = vor.u32 %v570_v7, %v566_v62  ;;  %v579_v18 = vor.u32 %v577_v1, %v575_v8  ;;  %v1723_v19 = vor.u32 %v1722_v12, %v1721_v11  ;;  %v3997_v20 = vunpack.c.h.bf16 %v4085_v49 }
  0x24   : > { %v1726_v21 = vor.u32 %v1725_v14, %v1724_v13  ;;  %v5048_v22 = vshll.u32 %v5045_v16, 16  ;;  %v5051_v23 = vshrl.u32 %v5045_v16, 16  ;;  %v587_v24 = vor.u32 %v5040_v4, %v583_v15 }
  0x25   : > { %v576_v26 = vsel %vm564_vm1, %v571_v17, %v575_v8  ;;  %v584_v27 = vsel %vm564_vm1, %v579_v18, %v583_v15  ;;  %v422_v28 = vmax.f32 %v3996_v61, 0.0  ;;  %v423_v29 = vmax.f32 %v3997_v20, 0.0 }
  0x26   : > { %4275 = vmatprep.mubr.msk.bf16.mxu1 %vm713_vm2, %v576_v26  ;;  %v1727_v31 = vsel %vm1720_vm3, %v1723_v19, %v1726_v21  ;;  %v1728_v32 = vrot.slane %v5051_v23, 1  ;;  %v1729_v33 = vrot.slane %v5048_v22, 2  ;;  %v591_v34 = vrot.slane %v5048_v22, 1  ;;  %v4069_v26 = vld [vmem:[%s5004_s9 + $0x40] sm:$0xff]  }
  0x27   : > { %4427 = vmatprep.mubr.msk.bf16.mxu0 %vm713_vm2, %v1727_v31  ;;  %4276 = vmatmul.mubr.msk.bf16.vlgmr.msra.gmra.mrb[0].mxu1 %vm713_vm2, %v584_v27  ;;  %v464_v37 = vmin.f32 %v422_v28, 6.0  ;;  %v465_v38 = vmin.f32 %v423_v29, 6.0  ;;  %v3916_v39 = vunpack.c.l.bf16 %v4066_v25  ;;  %v3917_v40 = vunpack.c.h.bf16 %v4066_v25 }
  0x28   : > { %v1730_v42 = vor.u32 %v1729_v33, %v1728_v32  ;;  %v592_v43 = vsel %vm564_vm1, %v587_v24, %v591_v34  ;;  %v595_v44 = vor.u32 %v5051_v23, %v591_v34  ;;  %4312 = vmatpush3.bf16.msra.mxu1 %v5013_v10  ;;  %v4000_v45 = vunpack.c.l.bf16 %v4086_v30  ;;  %v5084_v10 = vld [vmem:[%s6096_s2 + $0xc] sm:$0x3] }
  0x29   : > { %4279 = vmatprep.mubr.msk.bf16.mxu1 %vm713_vm2, %v592_v43  ;;  %v506_v47 = vadd.f32 %v3912_v56, %v464_v37  ;;  %v507_v48 = vadd.f32 %v3913_v57, %v465_v38  ;;  %v4001_v49 = vunpack.c.h.bf16 %v4086_v30  ;;  %v3920_v50 = vunpack.c.l.bf16 %v4067_v35  ;;  %4907 = vmatprep.subr.msk.bf16.mxu1 %vm768_vm0, %v5067_v36  ;;  %v4089_v30 = vld [vmem:[%s4999_s6 + $0x40] sm:$0xff]  }
  0x2a   : > { %v1731_v52 = vsel %vm1720_vm3, %v1726_v21, %v1730_v42  ;;  %v424_v53 = vmax.f32 %v4000_v45, 0.0  ;;  %v3921_v59 = vunpack.c.h.bf16 %v4067_v35  ;;  %v4004_v60 = vunpack.c.l.bf16 %v4087_v41 }
  0x2b   : > { %4428 = vmatmul.mubr.msk.bf16.vlgmr.msra.gmra.mrb[0].mxu0 %vm713_vm2, %v1731_v52  ;;  %v5087_v56 = vpack.c.bf16 %v507_v48, %v506_v47  ;;  %v425_v57 = vmax.f32 %v4001_v49, 0.0  ;;  %v4005_v61 = vunpack.c.h.bf16 %v4087_v41  ;;  %v3924_v62 = vunpack.c.l.bf16 %v4068_v46 }
  0x2c   : > { %4464 = vmatpush3.bf16.msra.mxu0 %v5010_v9  ;;  %v466_v63 = vmin.f32 %v424_v53, 6.0  ;;  %v426_v0 = vmax.f32 %v4004_v60, 0.0  ;;  %v3925_v1 = vunpack.c.h.bf16 %v4068_v46  ;;  %v4008_v5 = vunpack.c.l.bf16 %v4088_v51 }
  0x2d   : > { %v5091_v6 = vshll.u32 %v5087_v56, 16  ;;  %v5094_v7 = vshrl.u32 %v5087_v56, 16  ;;  %v467_v8 = vmin.f32 %v425_v57, 6.0  ;;  %v427_v11 = vmax.f32 %v4005_v61, 0.0  ;;  %4912 = vmatprep.subr.msk.bf16.mxu0 %vm768_vm0, %v5084_v10 }
  0x2e   : > { %v508_v12 = vadd.f32 %v3916_v39, %v466_v63  ;;  %v468_v13 = vmin.f32 %v426_v0, 6.0  ;;  %v4009_v9 = vunpack.c.h.bf16 %v4088_v51  ;;  %v428_v14 = vmax.f32 %v4008_v5, 0.0 }
  0x2f   : > { %v1732_v15 = vrot.slane %v5094_v7, 1  ;;  %v1733_v17 = vrot.slane %v5091_v6, 2  ;;  %v599_v18 = vrot.slane %v5091_v6, 1  ;;  %v509_v19 = vadd.f32 %v3917_v40, %v467_v8 }
  0x30   : > { %v469_v20 = vmin.f32 %v427_v11, 6.0  ;;  %v510_v21 = vadd.f32 %v3920_v50, %v468_v13  ;;  %v429_v24 = vmax.f32 %v4009_v9, 0.0  ;;  %v470_v25 = vmin.f32 %v428_v14, 6.0  ;;  %v4090_v11 = vld [vmem:[%s4999_s6 + $0x48] sm:$0xff]  }
  0x31   : > { %v1734_v27 = vor.u32 %v1733_v17, %v1732_v15  ;;  %v600_v28 = vsel %vm564_vm1, %v595_v44, %v599_v18  ;;  %v5103_v29 = vpack.c.bf16 %v509_v19, %v508_v12  ;;  %v603_v31 = vor.u32 %v5094_v7, %v599_v18  ;;  %v4070_v15 = vld [vmem:[%s5004_s9 + $0x48] sm:$0xff]  }
  0x32   : > { %4280 = vmatmul.mubr.msk.bf16.gmra.mrb[4].mxu1 %vm713_vm2, %v600_v28  ;;  %v511_v32 = vadd.f32 %v3921_v59, %v469_v20  ;;  %v471_v33 = vmin.f32 %v429_v24, 6.0  ;;  %v512_v34 = vadd.f32 %v3924_v62, %v470_v25  ;;  %v3928_v39 = vunpack.c.l.bf16 %v4069_v26 }
  0x33   : > { %v1735_v35 = vsel %vm1720_vm3, %v1730_v42, %v1734_v27  ;;  %v5110_v37 = vshll.u32 %v5103_v29, 16  ;;  %v5113_v38 = vshrl.u32 %v5103_v29, 16  ;;  %v4012_v43 = vunpack.c.l.bf16 %v4089_v30 }
  0x34   : > { %4431 = vmatprep.mubr.msk.bf16.mxu0 %vm713_vm2, %v1735_v35  ;;  %v5116_v40 = vpack.c.bf16 %v511_v32, %v510_v21  ;;  %v513_v41 = vadd.f32 %v3925_v1, %v471_v33  ;;  %v4013_v44 = vunpack.c.h.bf16 %v4089_v30  ;;  %v3929_v47 = vunpack.c.h.bf16 %v4069_v26  ;;  %v4091_v26 = vld [vmem:[%s4999_s6 + $0x50] sm:$0xff]  }
  0x35   : > { %v1736_v45 = vrot.slane %v5113_v38, 1  ;;  %v1737_v46 = vrot.slane %v5110_v37, 2  ;;  %v607_v42 = vrot.slane %v5110_v37, 1  ;;  %v430_v51 = vmax.f32 %v4012_v43, 0.0  ;;  %v4071_v33 = vld [vmem:[%s5004_s9 + $0x50] sm:$0xff]  }
  0x36   : > { %v5122_v48 = vshll.u32 %v5116_v40, 16  ;;  %v5125_v49 = vshrl.u32 %v5116_v40, 16  ;;  %v5127_v50 = vpack.c.bf16 %v513_v41, %v512_v34  ;;  %v431_v60 = vmax.f32 %v4013_v44, 0.0 }
  0x37   : > { %v1738_v52 = vor.u32 %v1737_v46, %v1736_v45  ;;  %v608_v53 = vsel %vm564_vm1, %v603_v31, %v607_v42  ;;  %v611_v59 = vor.u32 %v5113_v38, %v607_v42  ;;  %v472_v5 = vmin.f32 %v430_v51, 6.0 }
  0x38   : > { %6139 = vst [vmem:[#allocation3_spill] sm:$0xff] %v5122_v48  ;;  %4283 = vmatprep.mubr.msk.bf16.mxu1 %vm713_vm2, %v608_v53  ;;  %v1740_v57 = vrot.slane %v5125_v49, 1  ;;  %v1741_v61 = vrot.slane %v5122_v48, 2  ;;  %v615_v62 = vrot.slane %v5122_v48, 1  ;;  %v5136_v63 = vshll.u32 %v5127_v50, 16 }
  0x39   : > { %v1739_v0 = vsel %vm1720_vm3, %v1734_v27, %v1738_v52  ;;  %v5140_v1 = vshrl.u32 %v5127_v50, 16  ;;  %v473_v8 = vmin.f32 %v431_v60, 6.0  ;;  %v514_v19 = vadd.f32 %v3928_v39, %v472_v5 }
  0x3a   : > { %6140 = vst [vmem:[#allocation4_spill] sm:$0xff] %v5136_v63  ;;  %4432 = vmatmul.mubr.msk.bf16.gmra.mrb[4].mxu0 %vm713_vm2, %v1739_v0  ;;  %v1742_v12 = vor.u32 %v1741_v61, %v1740_v57  ;;  %v616_v13 = vsel %vm564_vm1, %v611_v59, %v615_v62  ;;  %v1745_v9 = vrot.slane %v5136_v63, 2  ;;  %v619_v14 = vor.u32 %v5125_v49, %v615_v62  ;;  %v4092_v61 = vld [vmem:[%s4999_s6 + $0x58] sm:$0xff]  }
  0x3b   : > { %6141 = vst [vmem:[#allocation5_spill] sm:$0xff] %v5140_v1  ;;  %4284 = vmatmul.mubr.msk.bf16.gmra.mrb[8].mxu1 %vm713_vm2, %v616_v13  ;;  %v1744_v17 = vrot.slane %v5140_v1, 1  ;;  %v623_v18 = vrot.slane %v5136_v63, 1  ;;  %v515_v20 = vadd.f32 %v3929_v47, %v473_v8  ;;  %v4016_v24 = vunpack.c.l.bf16 %v4090_v11 }
  0x3c   : > { %v1743_v21 = vsel %vm1720_vm3, %v1738_v52, %v1742_v12  ;;  %v4017_v25 = vunpack.c.h.bf16 %v4090_v11  ;;  %v5155_v27 = vsel %vm768_vm0, %v5084_v10, 0  ;;  %v3932_v32 = vunpack.c.l.bf16 %v4070_v15  ;;  %v4072_v52 = vld [vmem:[%s5004_s9 + $0x58] sm:$0xff]  }
  0x3d   : > { %4435 = vmatprep.mubr.msk.bf16.mxu0 %vm713_vm2, %v1743_v21  ;;  %v1746_v28 = vor.u32 %v1745_v9, %v1744_v17  ;;  %v624_v30 = vsel %vm564_vm1, %v619_v14, %v623_v18  ;;  %v5159_v31 = vpack.c.bf16 %v515_v20, %v514_v19  ;;  %v627_v34 = vor.u32 %v5140_v1, %v623_v18  ;;  %v4073_v19 = vld [vmem:[%s5004_s9 + $0x60] sm:$0xff]  }
  0x3e   : > { %4287 = vmatprep.mubr.msk.bf16.mxu1 %vm713_vm2, %v624_v30  ;;  %v3933_v35 = vunpack.c.h.bf16 %v4070_v15  ;;  %v432_v39 = vmax.f32 %v4016_v24, 0.0  ;;  %v433_v41 = vmax.f32 %v4017_v25, 0.0  ;;  %v4020_v45 = vunpack.c.l.bf16 %v4091_v26 }
  0x3f   : > { %v1747_v10 = vsel %vm1720_vm3, %v1742_v12, %v1746_v28  ;;  %v5166_v43 = vshll.u32 %v5159_v31, 16  ;;  %v5169_v44 = vshrl.u32 %v5159_v31, 16  ;;  %v3936_v47 = vunpack.c.l.bf16 %v4071_v33 }
  0x40   : > { %v474_v46 = vmin.f32 %v432_v39, 6.0  ;;  %v475_v42 = vmin.f32 %v433_v41, 6.0  ;;  %v4021_v51 = vunpack.c.h.bf16 %v4091_v26  ;;  %v434_v57 = vmax.f32 %v4020_v45, 0.0 }
  0x41   : > { %6142 = vst [vmem:[#allocation6_spill] sm:$0xff] %v5166_v43  ;;  %6143 = vst [vmem:[#allocation7_spill] sm:$0xff] %v5169_v44  ;;  %v1748_v53 = vrot.slane %v5169_v44, 1  ;;  %v1749_v59 = vrot.slane %v5166_v43, 2  ;;  %v631_v60 = vrot.slane %v5166_v43, 1  ;;  %v3937_v5 = vunpack.c.h.bf16 %v4071_v33 }
  0x42   : > { %4436 = vmatmul.mubr.msk.bf16.gmra.mrb[8].mxu0 %vm713_vm2, %v1747_v10  ;;  %v516_v62 = vadd.f32 %v3932_v32, %v474_v46  ;;  %v517_v0 = vadd.f32 %v3933_v35, %v475_v42  ;;  %v435_v8 = vmax.f32 %v4021_v51, 0.0  ;;  %v476_v13 = vmin.f32 %v434_v57, 6.0 }
  0x43   : > { %v1750_v11 = vor.u32 %v1749_v59, %v1748_v53  ;;  %v632_v12 = vsel %vm564_vm1, %v627_v34, %v631_v60  ;;  %v3940_v9 = vunpack.c.l.bf16 %v4072_v52  ;;  %v4024_v17 = vunpack.c.l.bf16 %v4092_v61  ;;  %v4093_v34 = vld [vmem:[%s4999_s6 + $0x60] sm:$0xff]  }
  0x44   : > { %4288 = vmatmul.mubr.msk.bf16.gmra.mrb[12].mxu1 %vm713_vm2, %v632_v12  ;;  %v5179_v14 = vpack.c.bf16 %v517_v0, %v516_v62  ;;  %v477_v15 = vmin.f32 %v435_v8, 6.0  ;;  %v4025_v18 = vunpack.c.h.bf16 %v4092_v61  ;;  %v635_v21 = vor.u32 %v5169_v44, %v631_v60 }
  0x45   : > { %v1751_v20 = vsel %vm1720_vm3, %v1746_v28, %v1750_v11  ;;  %v518_v24 = vadd.f32 %v3936_v47, %v476_v13  ;;  %v3941_v25 = vunpack.c.h.bf16 %v4072_v52  ;;  %v436_v33 = vmax.f32 %v4024_v17, 0.0 }
  0x46   : > { %4439 = vmatprep.mubr.msk.bf16.mxu0 %vm713_vm2, %v1751_v20  ;;  %v5186_v26 = vshll.u32 %v5179_v14, 16  ;;  %v5189_v30 = vshrl.u32 %v5179_v14, 16  ;;  %v519_v32 = vadd.f32 %v3937_v5, %v477_v15  ;;  %v437_v35 = vmax.f32 %v4025_v18, 0.0 }
  0x47   : > { %v2076_v39 = vrot.slane %v5026_v55, 2  ;;  %v2077_v28 = vrot.slane %v5030_v58, 2  ;;  %v3944_v41 = vunpack.c.l.bf16 %v4073_v19  ;;  %v478_v47 = vmin.f32 %v436_v33, 6.0  ;;  %v4094_v33 = vld [vmem:[%s4999_s6 + $0x68] sm:$0xff]  }
  0x48   : > { %6144 = vst [vmem:[#allocation8_spill] sm:$0xff] %v5186_v26  ;;  %6145 = vst [vmem:[#allocation9_spill] sm:$0xff] %v5189_v30  ;;  %v1752_v10 = vrot.slane %v5189_v30, 1  ;;  %v1753_v45 = vrot.slane %v5186_v26, 2  ;;  %v639_v46 = vrot.slane %v5186_v26, 1  ;;  %v5197_v42 = vpack.c.bf16 %v519_v32, %v518_v24  ;;  %v4074_v32 = vld [vmem:[%s5004_s9 + $0x68] sm:$0xff]  }
  0x49   : > { %v479_v51 = vmin.f32 %v437_v35, 6.0  ;;  %v4028_v52 = vunpack.c.l.bf16 %v4093_v34  ;;  %v4029_v53 = vunpack.c.h.bf16 %v4093_v34  ;;  %v520_v0 = vadd.f32 %v3940_v9, %v478_v47  ;;  %v4077_v26 = vld [vmem:[%s5004_s9 + $0x80] sm:$0xff]  }
  0x4a   : > { %v1754_v59 = vor.u32 %v1753_v45, %v1752_v10  ;;  %v640_v60 = vsel %vm564_vm1, %v635_v21, %v639_v46  ;;  %v5201_v57 = vshll.u32 %v5197_v42, 16  ;;  %v5204_v61 = vshrl.u32 %v5197_v42, 16 }
  0x4b   : > { %4291 = vmatprep.mubr.msk.bf16.mxu1 %vm713_vm2, %v640_v60  ;;  %v643_v62 = vor.u32 %v5189_v30, %v639_v46  ;;  %v521_v5 = vadd.f32 %v3941_v25, %v479_v51  ;;  %v438_v8 = vmax.f32 %v4028_v52, 0.0  ;;  %v3945_v20 = vunpack.c.h.bf16 %v4073_v19 }
  0x4c   : > { %v1755_v12 = vsel %vm1720_vm3, %v1750_v11, %v1754_v59  ;;  %v1756_v13 = vrot.slane %v5204_v61, 1  ;;  %v1757_v15 = vrot.slane %v5201_v57, 2  ;;  %v647_v17 = vrot.slane %v5201_v57, 1 }
  0x4d   : > { %4440 = vmatmul.mubr.msk.bf16.gmra.mrb[12].mxu0 %vm713_vm2, %v1755_v12  ;;  %v5213_v18 = vpack.c.bf16 %v521_v5, %v520_v0  ;;  %v439_v21 = vmax.f32 %v4029_v53, 0.0  ;;  %v480_v24 = vmin.f32 %v438_v8, 6.0  ;;  %v2079_v34 = vrot.slane %v5045_v16, 2  ;;  %v4075_v5 = vld [vmem:[%s5004_s9 + $0x70] sm:$0xff]  }
  0x4e   : > { %v1758_v9 = vor.u32 %v1757_v15, %v1756_v13  ;;  %v648_v25 = vsel %vm564_vm1, %v643_v62, %v647_v17  ;;  %v651_v11 = vor.u32 %v5204_v61, %v647_v17  ;;  %v2078_v47 = vsel %vm2075_vm4, %v2076_v39, %v2077_v28 }
  0x4f   : > { %4292 = vmatmul.mubr.msk.bf16.gmra.mrb[16].mxu1 %vm713_vm2, %v648_v25  ;;  %v5222_v35 = vshll.u32 %v5213_v18, 16  ;;  %v5225_v10 = vshrl.u32 %v5213_v18, 16  ;;  %v481_v19 = vmin.f32 %v439_v21, 6.0  ;;  %v522_v45 = vadd.f32 %v3944_v41, %v480_v24 }
  0x50   : > { %v1759_v46 = vsel %vm1720_vm3, %v1754_v59, %v1758_v9  ;;  %v3948_v51 = vunpack.c.l.bf16 %v4074_v32  ;;  %v4032_v52 = vunpack.c.l.bf16 %v4094_v33  ;;  %v5235_v8 = vsel %vm2075_vm4, %v2077_v28, %v2079_v34  ;;  %v4095_v59 = vld [vmem:[%s4999_s6 + $0x70] sm:$0xff]  }
  0x51   : > { %4443 = vmatprep.mubr.msk.bf16.mxu0 %vm713_vm2, %v1759_v46  ;;  %v1760_v53 = vrot.slane %v5225_v10, 1  ;;  %v1761_v60 = vrot.slane %v5222_v35, 2  ;;  %v655_v62 = vrot.slane %v5222_v35, 1  ;;  %v523_v0 = vadd.f32 %v3945_v20, %v481_v19 }
  0x52   : > { %v4033_v41 = vunpack.c.h.bf16 %v4094_v33  ;;  %v440_v12 = vmax.f32 %v4032_v52, 0.0  ;;  %v2081_v39 = vrot.slane %v5087_v56, 2  ;;  %v3949_v21 = vunpack.c.h.bf16 %v4074_v32  ;;  %v4096_v52 = vld [vmem:[%s4999_s6 + $0x78] sm:$0xff]  }
  0x53   : > { %v5239_v13 = vor.u32 %v1761_v60, %v1760_v53  ;;  %v656_v15 = vsel %vm564_vm1, %v651_v11, %v655_v62  ;;  %v5242_v17 = vpack.c.bf16 %v523_v0, %v522_v45  ;;  %v659_v20 = vor.u32 %v5225_v10, %v655_v62  ;;  %v4076_v45 = vld [vmem:[%s5004_s9 + $0x78] sm:$0xff]  }
  0x54   : > { %4295 = vmatprep.mubr.msk.bf16.mxu1 %vm713_vm2, %v656_v15  ;;  %v441_v28 = vmax.f32 %v4033_v41, 0.0  ;;  %v482_v24 = vmin.f32 %v440_v12, 6.0  ;;  %v3952_v33 = vunpack.c.l.bf16 %v4075_v5  ;;  %v5252_v46 = vsel %vm2075_vm4, %v2079_v34, %v2081_v39 }
  0x55   : > { %6146 = vst [vmem:[#allocation10_spill] sm:$0xff] %v5239_v13  ;;  %v1763_v25 = vsel %vm1720_vm3, %v1758_v9, %v5239_v13  ;;  %v5249_v19 = vshll.u32 %v5242_v17, 16  ;;  %v4036_v11 = vunpack.c.l.bf16 %v4095_v59  ;;  %v4037_v60 = vunpack.c.h.bf16 %v4095_v59 }
  0x56   : > { %4444 = vmatmul.mubr.msk.bf16.gmra.mrb[16].mxu0 %vm713_vm2, %v1763_v25  ;;  %v483_v32 = vmin.f32 %v441_v28, 6.0  ;;  %v524_v53 = vadd.f32 %v3948_v51, %v482_v24  ;;  %v2083_v62 = vrot.slane %v5103_v29, 2  ;;  %v5261_v0 = vshrl.u32 %v5242_v17, 16 }
  0x57   : > { %6147 = vst [vmem:[#allocation11_spill] sm:$0xff] %v5249_v19  ;;  %4465 = vmatprep.mubr.msk.bf16.mxu0 %vm713_vm2, %v2078_v47  ;;  %v663_v9 = vrot.slane %v5249_v19, 1  ;;  %v3953_v34 = vunpack.c.h.bf16 %v4075_v5  ;;  %v442_v41 = vmax.f32 %v4036_v11, 0.0  ;;  %v443_v15 = vmax.f32 %v4037_v60, 0.0  ;;  %v4097_v11 = vld [vmem:[%s4999_s6 + $0x80] sm:$0xff]  }
  0x58   : > { %6148 = vst [vmem:[#allocation12_spill] sm:$0xff] %v5261_v0  ;;  %v525_v12 = vadd.f32 %v3949_v21, %v483_v32  ;;  %v3956_v13 = vunpack.c.l.bf16 %v4076_v45  ;;  %v4040_v25 = vunpack.c.l.bf16 %v4096_v52  ;;  %v3957_v28 = vunpack.c.h.bf16 %v4076_v45 }
  0x59   : > { %v664_v51 = vsel %vm564_vm1, %v659_v20, %v663_v9  ;;  %v484_v59 = vmin.f32 %v442_v41, 6.0  ;;  %v4041_v24 = vunpack.c.h.bf16 %v4096_v52  ;;  %v485_v2 = vmin.f32 %v443_v15, 6.0 }
  0x5a   : > { %4296 = vmatmul.mubr.msk.bf16.gmra.mrb[20].mxu1 %vm713_vm2, %v664_v51  ;;  %v5265_v47 = vpack.c.bf16 %v525_v12, %v524_v53  ;;  %v5268_v19 = vsel %vm2075_vm4, %v2081_v39, %v2083_v62  ;;  %v444_v5 = vmax.f32 %v4040_v25, 0.0  ;;  %v667_v21 = vor.u32 %v5261_v0, %v663_v9  ;;  %v4098_v0 = vld [vmem:[%s4999_s6 + $0x88] sm:$0xff]  }
  0x5b   : > { %v526_v32 = vadd.f32 %v3952_v33, %v484_v59  ;;  %v445_v60 = vmax.f32 %v4041_v24, 0.0  ;;  %v6107_v20 = vrot.slane %v5116_v40, 2  ;;  %v527_v52 = vadd.f32 %v3953_v34, %v485_v2  ;;  %v5283_v33 = vld [vmem:[%s6096_s2 + $0xe] sm:$0x3] }
  0x5c   : > { %v5275_v45 = vshll.u32 %v5265_v47, 16  ;;  %v5278_v53 = vshrl.u32 %v5265_v47, 16  ;;  %v486_v41 = vmin.f32 %v444_v5, 6.0  ;;  %v3960_v12 = vunpack.c.l.bf16 %v4077_v26  ;;  %v4078_v59 = vld [vmem:[%s5004_s9 + $0x88] sm:$0xff]  }
  0x5d   : > { %v487_v39 = vmin.f32 %v445_v60, 6.0  ;;  %v4044_v15 = vunpack.c.l.bf16 %v4097_v11  ;;  %v4045_v25 = vunpack.c.h.bf16 %v4097_v11  ;;  %v5288_v2 = vpack.c.bf16 %v527_v52, %v526_v32 }
  0x5e   : > { %6149 = vst [vmem:[#allocation13_spill] sm:$0xff] %v5275_v45  ;;  %6150 = vst [vmem:[#allocation14_spill] sm:$0xff] %v5278_v53  ;;  %4466 = vmatmul.mubr.msk.bf16.vlgmr.msra.gmra.mrb[0].mxu0 %vm713_vm2, %v5235_v8  ;;  %v671_v9 = vrot.slane %v5275_v45, 1  ;;  %v528_v34 = vadd.f32 %v3956_v13, %v486_v41  ;;  %v3961_v51 = vunpack.c.h.bf16 %v4077_v26  ;;  %v5297_v5 = vsel %vm2075_vm4, %v2083_v62, %v6107_v20 }
  0x5f   : > { %4502 = vmatpush3.bf16.msra.mxu0 %v5155_v27  ;;  %4469 = vmatprep.mubr.msk.bf16.mxu0 %vm713_vm2, %v5252_v46  ;;  %v529_v24 = vadd.f32 %v3957_v28, %v487_v39  ;;  %v446_v11 = vmax.f32 %v4044_v15, 0.0  ;;  %v447_v60 = vmax.f32 %v4045_v25, 0.0  ;;  %v5303_v26 = vshll.u32 %v5288_v2, 16 }
  0x60   : > { %v672_v32 = vsel %vm564_vm1, %v667_v21, %v671_v9  ;;  %v675_v13 = vor.u32 %v5278_v53, %v671_v9  ;;  %v5306_v27 = vshrl.u32 %v5288_v2, 16  ;;  %4913 = vmatprep.subr.msk.bf16.mxu0 %vm768_vm0, %v5283_v33  ;;  %v3964_v41 = vunpack.c.l.bf16 %v4078_v59 }
  0x61   : > { %6151 = vst [vmem:[#allocation15_spill] sm:$0xff] %v5303_v26  ;;  %4299 = vmatprep.mubr.msk.bf16.mxu1 %vm713_vm2, %v672_v32  ;;  %v5311_v62 = vpack.c.bf16 %v529_v24, %v528_v34  ;;  %v488_v28 = vmin.f32 %v446_v11, 6.0  ;;  %v489_v52 = vmin.f32 %v447_v60, 6.0  ;;  %v679_v21 = vrot.slane %v5303_v26, 1  ;;  %v4099_v32 = vld [vmem:[%s4999_s6 + $0x90] sm:$0xff]  }
  0x62   : > { %6152 = vst [vmem:[#allocation16_spill] sm:$0xff] %v5306_v27  ;;  %v3965_v39 = vunpack.c.h.bf16 %v4078_v59  ;;  %v4048_v15 = vunpack.c.l.bf16 %v4098_v0  ;;  %v4049_v25 = vunpack.c.h.bf16 %v4098_v0  ;;  %v4052_v26 = vunpack.c.l.bf16 %v4099_v32 }
  0x63   : > { %v5315_v9 = vshll.u32 %v5311_v62, 16  ;;  %v530_v20 = vadd.f32 %v3960_v12, %v488_v28  ;;  %v531_v45 = vadd.f32 %v3961_v51, %v489_v52  ;;  %v5318_v53 = vshrl.u32 %v5311_v62, 16  ;;  %v4079_v52 = vld [vmem:[%s5004_s9 + $0x90] sm:$0xff]  }
  0x64   : > { %v680_v34 = vsel %vm564_vm1, %v675_v13, %v679_v21  ;;  %v683_v24 = vor.u32 %v5306_v27, %v679_v21  ;;  %v448_v11 = vmax.f32 %v4048_v15, 0.0  ;;  %v449_v60 = vmax.f32 %v4049_v25, 0.0 }
  0x65   : > { %6153 = vst [vmem:[#allocation17_spill] sm:$0xff] %v5315_v9  ;;  %6154 = vst [vmem:[#allocation18_spill] sm:$0xff] %v5318_v53  ;;  %4300 = vmatmul.mubr.msk.bf16.gmra.mrb[24].mxu1 %vm713_vm2, %v680_v34  ;;  %v687_v0 = vrot.slane %v5315_v9, 1  ;;  %v5325_v59 = vpack.c.bf16 %v531_v45, %v530_v20  ;;  %v2087_v12 = vrot.slane %v5127_v50, 2  ;;  %v2089_v20 = vrot.slane %v5159_v31, 2 }
  0x66   : > { %4470 = vmatmul.mubr.msk.bf16.gmra.mrb[4].mxu0 %vm713_vm2, %v5268_v19  ;;  %v490_v51 = vmin.f32 %v448_v11, 6.0  ;;  %v491_v28 = vmin.f32 %v449_v60, 6.0  ;;  %v4053_v11 = vunpack.c.h.bf16 %v4099_v32  ;;  %v3968_v60 = vunpack.c.l.bf16 %v4079_v52 }
  0x67   : > { %v688_v13 = vsel %vm564_vm1, %v683_v24, %v687_v0  ;;  %4473 = vmatprep.mubr.msk.bf16.mxu0 %vm713_vm2, %v5297_v5  ;;  %v691_v21 = vor.u32 %v5318_v53, %v687_v0  ;;  %v5336_v15 = vshll.u32 %v5325_v59, 16  ;;  %v5341_v34 = vshrl.u32 %v5325_v59, 16 }
  0x68   : > { %4303 = vmatprep.mubr.msk.bf16.mxu1 %vm713_vm2, %v688_v13  ;;  %v532_v45 = vadd.f32 %v3964_v41, %v490_v51  ;;  %v533_v25 = vadd.f32 %v3965_v39, %v491_v28  ;;  %v450_v9 = vmax.f32 %v4052_v26, 0.0  ;;  %v3969_v0 = vunpack.c.h.bf16 %v4079_v52 }
  0x69   : > { %6155 = vst [vmem:[#allocation19_spill] sm:$0xff] %v5336_v15  ;;  %6156 = vst [vmem:[#allocation20_spill] sm:$0xff] %v5341_v34  ;;  %v695_v24 = vrot.slane %v5336_v15, 1  ;;  %v451_v53 = vmax.f32 %v4053_v11, 0.0  ;;  %v6157_v43 = vrot.slane %v5116_v40, 2  ;;  %v5357_v51 = vsel %vm2075_vm4, %v2087_v12, %v2089_v20 }
  0x6a   : > { %v5344_v27 = vpack.c.bf16 %v533_v25, %v532_v45  ;;  %v492_v41 = vmin.f32 %v450_v9, 6.0  ;;  %v2642_v15 = vrot.slane %v5201_v57, 3  ;;  %v2645_v63 = vrot.slane %v5225_v10, 2 }
  0x6b   : > { %v696_v30 = vsel %vm564_vm1, %v691_v21, %v695_v24  ;;  %v5350_v13 = vsel %vm2075_vm4, %v6157_v43, %v2087_v12  ;;  %v699_v39 = vor.u32 %v5341_v34, %v695_v24  ;;  %v493_v26 = vmin.f32 %v451_v53, 6.0 }
  0x6c   : > { %v5354_v32 = vshll.u32 %v5344_v27, 16  ;;  %v534_v28 = vadd.f32 %v3968_v60, %v492_v41  ;;  %v5364_v9 = vshrl.u32 %v5344_v27, 16  ;;  %v2091_v21 = vrot.slane %v5179_v14, 2 }
  0x6d   : > { %4304 = vmatmul.mubr.msk.bf16.gmra.mrb[28].mxu1 %vm713_vm2, %v696_v30  ;;  %v535_v43 = vadd.f32 %v3969_v0, %v493_v26  ;;  %v2093_v30 = vrot.slane %v5197_v42, 2  ;;  %v2095_v41 = vrot.slane %v5213_v18, 2  ;;  %v2107_v57 = vrot.slane %v5344_v27, 2 }
  0x6e   : > { %6158 = vst [vmem:[#allocation21_spill] sm:$0xff] %v5354_v32  ;;  %4474 = vmatmul.mubr.msk.bf16.gmra.mrb[8].mxu0 %vm713_vm2, %v5350_v13  ;;  %v703_v52 = vrot.slane %v5354_v32, 1  ;;  %6159 = vst [vmem:[#allocation22_spill] sm:$0xff] %v5364_v9  ;;  %v5379_v11 = vsel %vm2075_vm4, %v2089_v20, %v2091_v21  ;;  %v2097_v20 = vrot.slane %v5242_v17, 2 }
  0x6f   : > { %4477 = vmatprep.mubr.msk.bf16.mxu0 %vm713_vm2, %v5357_v51  ;;  %v5370_v53 = vpack.c.bf16 %v535_v43, %v534_v28  ;;  %v5383_v60 = vsel %vm2075_vm4, %v2091_v21, %v2093_v30  ;;  %v1279_v28 = vsel %vm768_vm0, %v5067_v36, 0  ;;  %v2099_v43 = vrot.slane %v5265_v47, 2  ;;  %v4100_v21 = vld [vmem:[%s4999_s6 + $0x98] sm:$0xff]  }
  0x70   : > { %v704_v12 = vsel %vm564_vm1, %v699_v39, %v703_v52  ;;  %v707_v45 = vor.u32 %v5364_v9, %v703_v52  ;;  %v5396_v39 = vsel %vm2075_vm4, %v2093_v30, %v2095_v41  ;;  %v5399_v26 = vsel %vm2075_vm4, %v2095_v41, %v2097_v20  ;;  %v5408_v52 = vld [vmem:[%s6096_s2 + $0x6] sm:$0x3]  ;;  %v4080_v41 = vld [vmem:[%s5004_s9 + $0x98] sm:$0xff]  }
  0x71   : > { %4307 = vmatprep.mubr.msk.bf16.mxu1 %vm713_vm2, %v704_v12  ;;  %v5376_v25 = vshll.u32 %v5370_v53, 16  ;;  %v2101_v36 = vrot.slane %v5288_v2, 2  ;;  %v5422_v12 = vsel %vm2075_vm4, %v2097_v20, %v2099_v43  ;;  %v4056_v30 = vunpack.c.l.bf16 %v4100_v21 }
  0x72   : > { %v3973_v32 = vunpack.c.h.bf16 %v4080_v41  ;;  %v2641_v9 = vrot.slane %v5204_v61, 2 }
  0x73   : > { %6160 = vst [vmem:[#allocation23_spill] sm:$0xff] %v5376_v25  ;;  %v711_v24 = vrot.slane %v5376_v25, 1 }
  0x74   : > { %v5448_v1 = vor.u32 %v2642_v15, %v2641_v9 }
  0x75   : > { %v712_v0 = vsel %vm564_vm1, %v707_v45, %v711_v24  ;;  %v4057_v45 = vunpack.c.h.bf16 %v4100_v21  ;;  %v5425_v24 = vsel %vm2075_vm4, %v2099_v43, %v2101_v36  ;;  %v2105_v43 = vrot.slane %v5325_v59, 2 }
  0x76   : > { %4478 = vmatmul.mubr.msk.bf16.gmra.mrb[12].mxu0 %vm713_vm2, %v5379_v11  ;;  %4308 = vmatmul.mubr.msk.bf16.gmra.mrb[32].mxu1 %vm713_vm2, %v712_v0  ;;  %v2103_v0 = vrot.slane %v5311_v62, 2  ;;  %v3972_v21 = vunpack.c.l.bf16 %v4080_v41 }
  0x77   : > { %4481 = vmatprep.mubr.msk.bf16.mxu0 %vm713_vm2, %v5383_v60  ;;  %4313 = vmatprep.mubr.msk.bf16.mxu1 %vm713_vm2, %v5024_v54  ;;  %v453_v20 = vmax.f32 %v4057_v45, 0.0  ;;  %v5468_v15 = vsel %vm2075_vm4, %v2105_v43, %v2107_v57 }
  0x78   : > { %v5439_v25 = vsel %vm2075_vm4, %v2101_v36, %v2103_v0  ;;  %v5446_v45 = vsel %vm2075_vm4, %v2103_v0, %v2105_v43  ;;  %v5504_v0 = vld [vmem:[%s6096_s2 + $0x10] sm:$0x3]  ;;  %v1198_v43 = vrot.slane %v5116_v40, 1 }
  0x79   : > { %v495_v44 = vmin.f32 %v453_v20, 6.0 }
  0x7e   : > { %4482 = vmatmul.mubr.msk.bf16.gmra.mrb[16].mxu0 %vm713_vm2, %v5396_v39  ;;  %4314 = vmatmul.mubr.msk.bf16.vlgmr.msra.gmra.mrb[0].mxu1 %vm713_vm2, %v5026_v55 }
  0x7f   : > { %4485 = vmatprep.mubr.msk.bf16.mxu0 %vm713_vm2, %v5399_v26  ;;  %4317 = vmatprep.mubr.msk.bf16.mxu1 %vm713_vm2, %v5030_v58 }
  0x80   : > { %4350 = vmatpush3.bf16.msra.mxu1 %v1279_v28  ;;  %v452_v28 = vmax.f32 %v4056_v30, 0.0  ;;  %v2646_v30 = vrot.slane %v5222_v35, 3  ;;  %v537_v35 = vadd.f32 %v3973_v32, %v495_v44  ;;  %v2745_v32 = vsel %vm768_vm0, %v5283_v33, 0 }
  0x81   : > { %4908 = vmatprep.subr.msk.bf16.mxu1 %vm768_vm0, %v5408_v52  ;;  %v1190_v33 = vrot.slane %v5030_v58, 1 }
  0x82   : > { %v494_v34 = vmin.f32 %v452_v28, 6.0  ;;  %v5450_v48 = vor.u32 %v2646_v30, %v2645_v63  ;;  %v2109_v63 = vrot.slane %v5370_v53, 2  ;;  %v1200_v30 = vrot.slane %v5127_v50, 1 }
  0x84   : > { %v536_v61 = vadd.f32 %v3972_v21, %v494_v34  ;;  %v5462_v10 = vsel %vm2609_vm5, %v5448_v1, %v5450_v48  ;;  %v5473_v36 = vsel %vm2075_vm4, %v2107_v57, %v2109_v63  ;;  %v4081_v21 = vld [vmem:[%s5004_s9 + $0xa0] sm:$0xff]  }
  0x85   : > { %v3976_v57 = vunpack.c.l.bf16 %v4081_v21 }
  0x86   : > { %4486 = vmatmul.mubr.msk.bf16.gmra.mrb[20].mxu0 %vm713_vm2, %v5422_v12  ;;  %4318 = vmatmul.mubr.msk.bf16.gmra.mrb[4].mxu1 %vm713_vm2, %v5045_v16  ;;  %v5470_v9 = vpack.c.bf16 %v537_v35, %v536_v61  ;;  %v3977_v61 = vunpack.c.h.bf16 %v4081_v21  ;;  %v1210_v21 = vrot.slane %v5242_v17, 1 }
  0x87   : > { %4489 = vmatprep.mubr.msk.bf16.mxu0 %vm713_vm2, %v5425_v24  ;;  %4321 = vmatprep.mubr.msk.bf16.mxu1 %vm713_vm2, %v5087_v56 }
  0x88   : > { %v2111_v44 = vrot.slane %v5470_v9, 2 }
  0x8a   : > { %v5487_v34 = vsel %vm2075_vm4, %v2109_v63, %v2111_v44 }
  0x8e   : > { %4490 = vmatmul.mubr.msk.bf16.gmra.mrb[24].mxu0 %vm713_vm2, %v5439_v25  ;;  %4322 = vmatmul.mubr.msk.bf16.gmra.mrb[8].mxu1 %vm713_vm2, %v5103_v29 }
  0x8f   : > { %4493 = vmatprep.mubr.msk.bf16.mxu0 %vm713_vm2, %v5446_v45  ;;  %4325 = vmatprep.mubr.msk.bf16.mxu1 %vm713_vm2, %v5116_v40 }
  0x96   : > { %4494 = vmatmul.mubr.msk.bf16.gmra.mrb[28].mxu0 %vm713_vm2, %v5468_v15  ;;  %4326 = vmatmul.mubr.msk.bf16.gmra.mrb[12].mxu1 %vm713_vm2, %v5127_v50 }
  0x97   : > { %4497 = vmatprep.mubr.msk.bf16.mxu0 %vm713_vm2, %v5473_v36  ;;  %4329 = vmatprep.mubr.msk.bf16.mxu1 %vm713_vm2, %v5159_v31 }
  0x9e   : > { %4498 = vmatmul.mubr.msk.bf16.gmra.mrb[32].mxu0 %vm713_vm2, %v5487_v34  ;;  %4330 = vmatmul.mubr.msk.bf16.gmra.mrb[16].mxu1 %vm713_vm2, %v5179_v14 }
  0x9f   : > { %4503 = vmatprep.mubr.msk.bf16.mxu0 %vm713_vm2, %v5235_v8  ;;  %4333 = vmatprep.mubr.msk.bf16.mxu1 %vm713_vm2, %v5197_v42  ;;  %v1187_v8 = vrot.slane %v5024_v54, 1  ;;  %v1192_v54 = vrot.slane %v5045_v16, 1 }
  0xa6   : > { %4504 = vmatmul.mubr.msk.bf16.vlgmr.msra.gmra.mrb[0].mxu0 %vm713_vm2, %v5252_v46  ;;  %4334 = vmatmul.mubr.msk.bf16.gmra.mrb[20].mxu1 %vm713_vm2, %v5213_v18 }
  0xa7   : > { %4540 = vmatpush3.bf16.msra.mxu0 %v2745_v32  ;;  %4337 = vmatprep.mubr.msk.bf16.mxu1 %vm713_vm2, %v5242_v17  ;;  %v5586_v32 = vsel %vm1186_vm6, %v1198_v43, %v1200_v30 }
  0xa8   : > { %4507 = vmatprep.mubr.msk.bf16.mxu0 %vm713_vm2, %v5268_v19  ;;  %4914 = vmatprep.subr.msk.bf16.mxu0 %vm768_vm0, %v5504_v0  ;;  %v1188_v19 = vrot.slane %v5026_v55, 1 }
  0xaa   : > { %v1189_v46 = vsel %vm1186_vm6, %v1187_v8, %v1188_v19  ;;  %v5543_v55 = vsel %vm1186_vm6, %v1188_v19, %v1190_v33 }
  0xae   : > { %4508 = vmatmul.mubr.msk.bf16.gmra.mrb[4].mxu0 %vm713_vm2, %v5297_v5  ;;  %4338 = vmatmul.mubr.msk.bf16.gmra.mrb[24].mxu1 %vm713_vm2, %v5265_v47  ;;  %v5546_v5 = vsel %vm1186_vm6, %v1190_v33, %v1192_v54 }
  0xaf   : > { %4511 = vmatprep.mubr.msk.bf16.mxu0 %vm713_vm2, %v5350_v13  ;;  %4341 = vmatprep.mubr.msk.bf16.mxu1 %vm713_vm2, %v5288_v2  ;;  %v1503_v13 = vsel %vm768_vm0, %v5408_v52, 0 }
  0xb6   : > { %4512 = vmatmul.mubr.msk.bf16.gmra.mrb[8].mxu0 %vm713_vm2, %v5357_v51  ;;  %4342 = vmatmul.mubr.msk.bf16.gmra.mrb[28].mxu1 %vm713_vm2, %v5311_v62  ;;  %v1194_v51 = vrot.slane %v5087_v56, 1 }
  0xb7   : > { %4515 = vmatprep.mubr.msk.bf16.mxu0 %vm713_vm2, %v5379_v11  ;;  %4345 = vmatprep.mubr.msk.bf16.mxu1 %vm713_vm2, %v5325_v59  ;;  %v4101_v11 = vld [vmem:[%s4999_s6 + $0xa0] sm:$0xff]   ;;  %s5940_s6 = scalar_lea.vmem %s6099_s5, %s4916_s28 }
  0xb8   : > { %v4061_v52 = vunpack.c.h.bf16 %v4101_v11 }
  0xba   : > { %v455_v20 = vmax.f32 %v4061_v52, 0.0 }
  0xbe   : > { %4516 = vmatmul.mubr.msk.bf16.gmra.mrb[12].mxu0 %vm713_vm2, %v5383_v60  ;;  %4346 = vmatmul.mubr.msk.bf16.gmra.mrb[32].mxu1 %vm713_vm2, %v5344_v27  ;;  %v1196_v60 = vrot.slane %v5103_v29, 1 }
  0xbf   : > { %4519 = vmatprep.mubr.msk.bf16.mxu0 %vm713_vm2, %v5396_v39  ;;  %4351 = vmatprep.mubr.msk.bf16.mxu1 %vm713_vm2, %v1189_v46  ;;  %v4925_v39 = vld [vmem:[%s6096_s2 + $0x8] sm:$0x3]  ;;  %v1204_v46 = vrot.slane %v5179_v14, 1 }
  0xc0   : > { %v5569_v41 = vsel %vm1186_vm6, %v1194_v51, %v1196_v60  ;;  %v5583_v63 = vsel %vm1186_vm6, %v1196_v60, %v1198_v43  ;;  %v1208_v60 = vrot.slane %v5213_v18, 1  ;;  %v2622_v43 = vrot.slane %v5110_v37, 3 }
  0xc6   : > { %4520 = vmatmul.mubr.msk.bf16.gmra.mrb[16].mxu0 %vm713_vm2, %v5399_v26  ;;  %4352 = vmatmul.mubr.msk.bf16.vlgmr.msra.gmra.mrb[0].mxu1 %vm713_vm2, %v5543_v55  ;;  %v4060_v26 = vunpack.c.l.bf16 %v4101_v11 }
  0xc7   : > { %4523 = vmatprep.mubr.msk.bf16.mxu0 %vm713_vm2, %v5422_v12  ;;  %4355 = vmatprep.mubr.msk.bf16.mxu1 %vm713_vm2, %v5546_v5  ;;  %v5566_v12 = vsel %vm1186_vm6, %v1192_v54, %v1194_v51  ;;  %v2614_v51 = vrot.slane %v5048_v22, 3 }
  0xc8   : > { %4388 = vmatpush3.bf16.msra.mxu1 %v1503_v13  ;;  %v454_v28 = vmax.f32 %v4060_v26, 0.0  ;;  %v2611_v13 = vrot.slane %v5037_v3, 3  ;;  %v1206_v3 = vrot.slane %v5197_v42, 1  ;;  %v2618_v26 = vrot.slane %v5091_v6, 3 }
  0xc9   : > { %4910 = vmatprep.subr.msk.bf16.mxu1 %vm768_vm0, %v4925_v39  ;;  %v2617_v39 = vrot.slane %v5094_v7, 2  ;;  %v6137_v7 = vshll.u32 %v5470_v9, 16 }
  0xca   : > { %v496_v35 = vmin.f32 %v454_v28, 6.0  ;;  %v5631_v28 = vsel %vm1186_vm6, %v1206_v3, %v1208_v60 }
  0xcb   : > { %v2619_v6 = vor.u32 %v2618_v26, %v2617_v39  ;;  %v6165_v26 = vld [vmem:[#allocation6_spill] sm:$0xff] }
  0xcc   : > { %v538_v8 = vadd.f32 %v3976_v57, %v496_v35 }
  0xce   : > { %4524 = vmatmul.mubr.msk.bf16.gmra.mrb[20].mxu0 %vm713_vm2, %v5425_v24  ;;  %4356 = vmatmul.mubr.msk.bf16.gmra.mrb[4].mxu1 %vm713_vm2, %v5566_v12  ;;  %v497_v24 = vmin.f32 %v455_v20, 6.0  ;;  %v2621_v20 = vrot.slane %v5113_v38, 2  ;;  %v5650_v38 = vrot.slane %v6137_v7, 2 }
  0xcf   : > { %4527 = vmatprep.mubr.msk.bf16.mxu0 %vm713_vm2, %v5439_v25  ;;  %4359 = vmatprep.mubr.msk.bf16.mxu1 %vm713_vm2, %v5569_v41  ;;  %v1202_v25 = vrot.slane %v5159_v31, 1 }
  0xd0   : > { %v539_v19 = vadd.f32 %v3977_v61, %v497_v24  ;;  %v2623_v57 = vor.u32 %v2622_v43, %v2621_v20  ;;  %v2625_v24 = vrot.slane %v5125_v49, 2  ;;  %v6179_v61 = vld [vmem:[#allocation22_spill] sm:$0xff] }
  0xd1   : > { %v5599_v33 = vsel %vm1186_vm6, %v1200_v30, %v1202_v25  ;;  %v5608_v11 = vsel %vm1186_vm6, %v1202_v25, %v1204_v46  ;;  %v1212_v30 = vrot.slane %v5265_v47, 1  ;;  %v6161_v25 = vld [vmem:[#allocation3_spill] sm:$0xff] }
  0xd2   : > { %v5601_v54 = vpack.c.bf16 %v539_v19, %v538_v8  ;;  %v2626_v8 = vrot.slane %v6161_v25, 3  ;;  %v5659_v19 = vsel %vm1186_vm6, %v1208_v60, %v1210_v21 }
  0xd4   : > { %v2627_v49 = vor.u32 %v2626_v8, %v2625_v24 }
  0xd6   : > { %4528 = vmatmul.mubr.msk.bf16.gmra.mrb[24].mxu0 %vm713_vm2, %v5446_v45  ;;  %4360 = vmatmul.mubr.msk.bf16.gmra.mrb[8].mxu1 %vm713_vm2, %v5583_v63  ;;  %v2610_v45 = vrot.slane %v5040_v4, 2  ;;  %v2386_v4 = vrot.slane %v5601_v54, 2  ;;  %v2628_v60 = vsel %vm2609_vm5, %v2623_v57, %v2627_v49 }
  0xd7   : > { %4531 = vmatprep.mubr.msk.bf16.mxu0 %vm713_vm2, %v5468_v15  ;;  %4363 = vmatprep.mubr.msk.bf16.mxu1 %vm713_vm2, %v5586_v32  ;;  %v2613_v15 = vrot.slane %v5051_v23, 2 }
  0xd8   : > { %v2612_v22 = vor.u32 %v2611_v13, %v2610_v45  ;;  %v6162_v45 = vld [vmem:[#allocation5_spill] sm:$0xff] }
  0xd9   : > { %v2615_v23 = vor.u32 %v2614_v51, %v2613_v15  ;;  %v2629_v13 = vrot.slane %v6162_v45, 2  ;;  %v6163_v15 = vld [vmem:[#allocation4_spill] sm:$0xff] }
  0xda   : > { %v2630_v51 = vrot.slane %v6163_v15, 3 }
  0xdb   : > { %v2616_v52 = vsel %vm2609_vm5, %v2612_v22, %v2615_v23  ;;  %v2620_v35 = vsel %vm2609_vm5, %v2615_v23, %v2619_v6  ;;  %v1216_v23 = vrot.slane %v5311_v62, 1 }
  0xdc   : > { %v2631_v22 = vor.u32 %v2630_v51, %v2629_v13 }
  0xde   : > { %4532 = vmatmul.mubr.msk.bf16.gmra.mrb[28].mxu0 %vm713_vm2, %v5473_v36  ;;  %4364 = vmatmul.mubr.msk.bf16.gmra.mrb[12].mxu1 %vm713_vm2, %v5599_v33  ;;  %v2387_v36 = vsel %vm2075_vm4, %v2111_v44, %v2386_v4  ;;  %v1795_v44 = vshrl.u32 %v5470_v9, 16  ;;  %v5666_v4 = vsel %vm1186_vm6, %v1210_v21, %v1212_v30  ;;  %v2632_v43 = vsel %vm2609_vm5, %v2627_v49, %v2631_v22 }
  0xdf   : > { %4535 = vmatprep.mubr.msk.bf16.mxu0 %vm713_vm2, %v5487_v34  ;;  %4367 = vmatprep.mubr.msk.bf16.mxu1 %vm713_vm2, %v5608_v11  ;;  %v5627_v34 = vsel %vm1186_vm6, %v1204_v46, %v1206_v3  ;;  %v3055_v46 = vsel %vm768_vm0, %v5504_v0, 0  ;;  %v2624_v3 = vsel %vm2609_vm5, %v2619_v6, %v2623_v57  ;;  %v1214_v0 = vrot.slane %v5288_v2, 1  ;;  %v6166_v6 = vld [vmem:[#allocation9_spill] sm:$0xff] }
  0xe0   : > { %v5646_v37 = vrot.slane %v1795_v44, 1  ;;  %v2637_v21 = vrot.slane %v6166_v6, 2 }
  0xe1   : > { %v5681_v20 = vsel %vm1186_vm6, %v1212_v30, %v1214_v0  ;;  %v5687_v25 = vsel %vm1186_vm6, %v1214_v0, %v1216_v23  ;;  %v1218_v30 = vrot.slane %v5325_v59, 1  ;;  %v6168_v0 = vld [vmem:[#allocation12_spill] sm:$0xff] }
  0xe3   : > { %v5699_v13 = vsel %vm1186_vm6, %v1216_v23, %v1218_v30  ;;  %v6169_v23 = vld [vmem:[#allocation11_spill] sm:$0xff] }
  0xe6   : > { %4536 = vmatmul.mubr.msk.bf16.gmra.mrb[32].mxu0 %vm713_vm2, %v2387_v36  ;;  %4368 = vmatmul.mubr.msk.bf16.gmra.mrb[16].mxu1 %vm713_vm2, %v5627_v34  ;;  %v6164_v36 = vld [vmem:[#allocation7_spill] sm:$0xff] }
  0xe7   : > { %4541 = vmatprep.mubr.msk.bf16.mxu0 %vm713_vm2, %v2616_v52  ;;  %4371 = vmatprep.mubr.msk.bf16.mxu1 %vm713_vm2, %v5631_v28  ;;  %v2633_v39 = vrot.slane %v6164_v36, 2  ;;  %v2634_v52 = vrot.slane %v6165_v26, 3 }
  0xe9   : > { %v2635_v57 = vor.u32 %v2634_v52, %v2633_v39  ;;  %v6170_v39 = vld [vmem:[#allocation14_spill] sm:$0xff]  ;;  %v6171_v52 = vld [vmem:[#allocation13_spill] sm:$0xff] }
  0xea   : > { %v2653_v26 = vrot.slane %v6170_v39, 2 }
  0xeb   : > { %v2636_v45 = vsel %vm2609_vm5, %v2631_v22, %v2635_v57  ;;  %v2649_v22 = vrot.slane %v6168_v0, 2 }
  0xee   : > { %4542 = vmatmul.mubr.msk.bf16.vlgmr.msra.gmra.mrb[0].mxu0 %vm713_vm2, %v2620_v35  ;;  %4372 = vmatmul.mubr.msk.bf16.gmra.mrb[20].mxu1 %vm713_vm2, %v5659_v19  ;;  %v6167_v35 = vld [vmem:[#allocation8_spill] sm:$0xff] }
  0xef   : > { %4578 = vmatpush3.bf16.msra.mxu0 %v3055_v46  ;;  %4375 = vmatprep.mubr.msk.bf16.mxu1 %vm713_vm2, %v5666_v4  ;;  %v2638_v24 = vrot.slane %v6167_v35, 3  ;;  %v1220_v46 = vrot.slane %v5344_v27, 1  ;;  %v6172_v35 = vld [vmem:[#allocation16_spill] sm:$0xff] }
  0xf0   : > { %4545 = vmatprep.mubr.msk.bf16.mxu0 %vm713_vm2, %v2624_v3  ;;  %v6136_v3 = vrot.slane %v5370_v53, 1 }
  0xf1   : > { %v2639_v8 = vor.u32 %v2638_v24, %v2637_v21  ;;  %v5703_v51 = vsel %vm1186_vm6, %v1218_v30, %v1220_v46  ;;  %v2657_v24 = vrot.slane %v6172_v35, 2 }
  0xf2   : > { %v5719_v36 = vsel %vm1186_vm6, %v1220_v46, %v6136_v3  ;;  %v6174_v46 = vld [vmem:[#allocation18_spill] sm:$0xff]  ;;  %v2669_v3 = vrot.slane %v6179_v61, 2 }
  0xf3   : > { %v2640_v15 = vsel %vm2609_vm5, %v2635_v57, %v2639_v8  ;;  %v2644_v49 = vsel %vm2609_vm5, %v2639_v8, %v5448_v1  ;;  %v6173_v57 = vld [vmem:[#allocation15_spill] sm:$0xff] }
  0xf4   : > { %v2658_v30 = vrot.slane %v6173_v57, 3 }
  0xf6   : > { %4546 = vmatmul.mubr.msk.bf16.gmra.mrb[4].mxu0 %vm713_vm2, %v2628_v60  ;;  %4376 = vmatmul.mubr.msk.bf16.gmra.mrb[24].mxu1 %vm713_vm2, %v5681_v20  ;;  %v2650_v60 = vrot.slane %v6169_v23, 3 }
  0xf7   : > { %4549 = vmatprep.mubr.msk.bf16.mxu0 %vm713_vm2, %v2632_v43  ;;  %4379 = vmatprep.mubr.msk.bf16.mxu1 %vm713_vm2, %v5687_v25  ;;  %v2654_v43 = vrot.slane %v6171_v52, 3 }
  0xf8   : > { %v2651_v1 = vor.u32 %v2650_v60, %v2649_v22  ;;  %v6177_v60 = vld [vmem:[#allocation20_spill] sm:$0xff] }
  0xf9   : > { %v2655_v6 = vor.u32 %v2654_v43, %v2653_v26  ;;  %v2665_v26 = vrot.slane %v6177_v60, 2  ;;  %v6178_v43 = vld [vmem:[#allocation19_spill] sm:$0xff] }
  0xfa   : > { %v2652_v21 = vsel %vm2609_vm5, %v5450_v48, %v2651_v1  ;;  %v6176_v48 = vld [vmem:[#allocation2_spill] sm:$0xff] }
  0xfb   : > { %v2656_v8 = vsel %vm2609_vm5, %v2651_v1, %v2655_v6  ;;  %v2666_v1 = vrot.slane %v6178_v43, 3 }
  0xfe   : > { %4550 = vmatmul.mubr.msk.bf16.gmra.mrb[8].mxu0 %vm713_vm2, %v2636_v45  ;;  %4380 = vmatmul.mubr.msk.bf16.gmra.mrb[28].mxu1 %vm713_vm2, %v5699_v13  ;;  %v2661_v45 = vrot.slane %v6174_v46, 2 }
  0xff   : > { %4553 = vmatprep.mubr.msk.bf16.mxu0 %vm713_vm2, %v2640_v15  ;;  %4383 = vmatprep.mubr.msk.bf16.mxu1 %vm713_vm2, %v5703_v51  ;;  %v6175_v15 = vld [vmem:[#allocation17_spill] sm:$0xff] }
 0x106   : > { %4554 = vmatmul.mubr.msk.bf16.gmra.mrb[12].mxu0 %vm713_vm2, %v2644_v49  ;;  %4384 = vmatmul.mubr.msk.bf16.gmra.mrb[32].mxu1 %vm713_vm2, %v5719_v36  ;;  %v2662_v49 = vrot.slane %v6175_v15, 3 }
 0x107   : > { %4557 = vmatprep.mubr.msk.bf16.mxu0 %vm713_vm2, %v5462_v10  ;;  %4389 = vmatprep.mubr.msk.bf16.mxu1 %vm713_vm2, %v5543_v55  ;;  %v2659_v10 = vor.u32 %v2658_v30, %v2657_v24 }
 0x108   : > { %v2663_v55 = vor.u32 %v2662_v49, %v2661_v45  ;;  %v6181_v45 = vld [vmem:[#allocation23_spill] sm:$0xff] }
 0x109   : > { %v2660_v22 = vsel %vm2609_vm5, %v2655_v6, %v2659_v10  ;;  %v1788_v6 = vshrl.u32 %v5370_v53, 16  ;;  %v2674_v49 = vrot.slane %v6181_v45, 3 }
 0x10e   : > { %4558 = vmatmul.mubr.msk.bf16.gmra.mrb[16].mxu0 %vm713_vm2, %v2652_v21  ;;  %4390 = vmatmul.mubr.msk.bf16.vlgmr.msra.gmra.mrb[0].mxu1 %vm713_vm2, %v5546_v5  ;;  %v2664_v21 = vsel %vm2609_vm5, %v2659_v10, %v2663_v55  ;;  %v6180_v5 = vld [vmem:[#allocation21_spill] sm:$0xff] }
 0x10f   : > { %4561 = vmatprep.mubr.msk.bf16.mxu0 %vm713_vm2, %v2656_v8  ;;  %4393 = vmatprep.mubr.msk.bf16.mxu1 %vm713_vm2, %v5566_v12  ;;  %v2670_v7 = vrot.slane %v6180_v5, 3  ;;  %v2667_v12 = vor.u32 %v2666_v1, %v2665_v26  ;;  %v2673_v8 = vrot.slane %v1788_v6, 2 }
 0x110   : > { %4616 = vmatpush3.bf16.msra.mxu1 %v6176_v48  ;;  %v6182_v48 = vshll.u32 %v5470_v9, 16 }
 0x111   : > { %v2671_v24 = vor.u32 %v2670_v7, %v2669_v3  ;;  %v2668_v30 = vsel %vm2609_vm5, %v2663_v55, %v2667_v12  ;;  %v2682_v7 = vshrl.u32 %v5601_v54, 16  ;;  %v2685_v3 = vshll.u32 %v5601_v54, 16 }
 0x113   : > { %v2672_v10 = vsel %vm2609_vm5, %v2667_v12, %v2671_v24  ;;  %v2684_v26 = vrot.slane %v2682_v7, 2  ;;  %v2687_v1 = vrot.slane %v2685_v3, 3  ;;  %v2964_v12 = vrot.slane %v5045_v16, 3 }
 0x116   : > { %4562 = vmatmul.mubr.msk.bf16.gmra.mrb[20].mxu0 %vm713_vm2, %v2660_v22  ;;  %4394 = vmatmul.mubr.msk.bf16.gmra.mrb[4].mxu1 %vm713_vm2, %v5569_v41  ;;  %v2677_v41 = vrot.slane %v1795_v44, 2  ;;  %v2678_v22 = vrot.slane %v6182_v48, 3  ;;  %v6184_v48 = vld [vmem:[#allocation10_spill] sm:$0xff] }
 0x117   : > { %4565 = vmatprep.mubr.msk.bf16.mxu0 %vm713_vm2, %v2664_v21  ;;  %4397 = vmatprep.mubr.msk.bf16.mxu1 %vm713_vm2, %v5583_v63  ;;  %v2675_v63 = vor.u32 %v2674_v49, %v2673_v8  ;;  %v1764_v8 = vrot.slane %v6168_v0, 1  ;;  %v1765_v49 = vrot.slane %v6169_v23, 2  ;;  %v6183_v23 = vrot.slane %v5370_v53, 1 }
 0x118   : > { %v2679_v55 = vor.u32 %v2678_v22, %v2677_v41  ;;  %v1768_v41 = vrot.slane %v6170_v39, 1  ;;  %v1772_v22 = vrot.slane %v6172_v35, 1 }
 0x119   : > { %v2676_v44 = vsel %vm2609_vm5, %v2671_v24, %v2675_v63 }
 0x11a   : > { %v2680_v21 = vsel %vm2609_vm5, %v2675_v63, %v2679_v55  ;;  %v2982_v63 = vrot.slane %v5242_v17, 3  ;;  %v1780_v17 = vrot.slane %v6177_v60, 1 }
 0x11e   : > { %4566 = vmatmul.mubr.msk.bf16.gmra.mrb[24].mxu0 %vm713_vm2, %v2668_v30  ;;  %4398 = vmatmul.mubr.msk.bf16.gmra.mrb[8].mxu1 %vm713_vm2, %v5586_v32  ;;  %v2688_v32 = vor.u32 %v2687_v1, %v2684_v26  ;;  %v1781_v1 = vrot.slane %v6178_v43, 2 }
 0x11f   : > { %4569 = vmatprep.mubr.msk.bf16.mxu0 %vm713_vm2, %v2672_v10  ;;  %4401 = vmatprep.mubr.msk.bf16.mxu1 %vm713_vm2, %v5599_v33  ;;  %v2963_v33 = vrot.slane %v5030_v58, 3  ;;  %v2968_v58 = vrot.slane %v5103_v29, 3 }
 0x120   : > { %v2689_v24 = vsel %vm2609_vm5, %v2679_v55, %v2688_v32  ;;  %v1776_v55 = vrot.slane %v6174_v46, 1  ;;  %v2988_v46 = vrot.slane %v5311_v62, 3  ;;  %v2990_v62 = vrot.slane %v5325_v59, 3 }
 0x121   : > { %v2965_v30 = vsel %vm2962_vm7, %v2963_v33, %v2964_v12  ;;  %v1784_v33 = vrot.slane %v6179_v61, 1  ;;  %v2994_v59 = vrot.slane %v5370_v53, 3  ;;  %v2998_v53 = vrot.slane %v5601_v54, 3 }
 0x126   : > { %4570 = vmatmul.mubr.msk.bf16.gmra.mrb[28].mxu0 %vm713_vm2, %v2676_v44  ;;  %4402 = vmatmul.mubr.msk.bf16.gmra.mrb[12].mxu1 %vm713_vm2, %v5608_v11  ;;  %v2966_v11 = vrot.slane %v5087_v56, 3  ;;  %v2972_v56 = vrot.slane %v5127_v50, 3  ;;  %v1777_v44 = vrot.slane %v6175_v15, 2  ;;  %v1782_v15 = vor.u32 %v1781_v1, %v1780_v17 }
 0x127   : > { %4573 = vmatprep.mubr.msk.bf16.mxu0 %vm713_vm2, %v2680_v21  ;;  %4405 = vmatprep.mubr.msk.bf16.mxu1 %vm713_vm2, %v5627_v34 }
 0x128   : > { %v2967_v16 = vsel %vm2962_vm7, %v2964_v12, %v2966_v11  ;;  %v2969_v34 = vsel %vm2962_vm7, %v2966_v11, %v2968_v58  ;;  %v1778_v21 = vor.u32 %v1777_v44, %v1776_v55  ;;  %v1785_v12 = vrot.slane %v6180_v5, 2 }
 0x129   : > { %v2992_v5 = vrot.slane %v5344_v27, 3  ;;  %v2996_v27 = vrot.slane %v5470_v9, 3 }
 0x12a   : > { %v1786_v61 = vor.u32 %v1785_v12, %v1784_v33 }
 0x12e   : > { %4574 = vmatmul.mubr.msk.bf16.gmra.mrb[32].mxu0 %vm713_vm2, %v2689_v24  ;;  %4406 = vmatmul.mubr.msk.bf16.gmra.mrb[16].mxu1 %vm713_vm2, %v5631_v28  ;;  %v2970_v28 = vrot.slane %v5116_v40, 3  ;;  %v2976_v40 = vrot.slane %v5179_v14, 3  ;;  %v1497_v14 = vrot.slane %v5470_v9, 1  ;;  %v1783_v24 = vsel %vm1720_vm3, %v1778_v21, %v1782_v15 }
 0x12f   : > { %4579 = vmatprep.mubr.msk.bf16.mxu0 %vm713_vm2, %v2965_v30  ;;  %4409 = vmatprep.mubr.msk.bf16.mxu1 %vm713_vm2, %v5659_v19  ;;  %v1791_v30 = vrot.slane %v6181_v45, 2  ;;  %v2993_v45 = vsel %vm2962_vm7, %v2990_v62, %v2992_v5 }
 0x130   : > { %v2971_v29 = vsel %vm2962_vm7, %v2968_v58, %v2970_v28  ;;  %v2973_v19 = vsel %vm2962_vm7, %v2970_v28, %v2972_v56  ;;  %v1498_v10 = vsel %vm1186_vm6, %v6183_v23, %v1497_v14  ;;  %v2991_v58 = vsel %vm2962_vm7, %v2988_v46, %v2990_v62 }
 0x131   : > { %v6185_v28 = vor.u32 %v5650_v38, %v5646_v37 }
 0x136   : > { %4580 = vmatmul.mubr.msk.bf16.vlgmr.msra.gmra.mrb[0].mxu0 %vm713_vm2, %v2967_v16  ;;  %4410 = vmatmul.mubr.msk.bf16.gmra.mrb[20].mxu1 %vm713_vm2, %v5666_v4  ;;  %v2974_v4 = vrot.slane %v5159_v31, 3  ;;  %v2978_v31 = vrot.slane %v5197_v42, 3  ;;  %v1769_v42 = vrot.slane %v6171_v52, 2  ;;  %v2984_v52 = vrot.slane %v5265_v47, 3 }
 0x137   : > { %4583 = vmatprep.mubr.msk.bf16.mxu0 %vm713_vm2, %v2969_v34  ;;  %4413 = vmatprep.mubr.msk.bf16.mxu1 %vm713_vm2, %v5681_v20  ;;  %v2986_v47 = vrot.slane %v5288_v2, 3  ;;  %v1790_v2 = vrot.slane %v1788_v6, 1  ;;  %v1787_v6 = vsel %vm1720_vm3, %v1782_v15, %v1786_v61  ;;  %v2995_v34 = vsel %vm2962_vm7, %v2992_v5, %v2994_v59 }
 0x138   : > { %v2975_v50 = vsel %vm2962_vm7, %v2972_v56, %v2974_v4  ;;  %v2977_v20 = vsel %vm2962_vm7, %v2974_v4, %v2976_v40  ;;  %v2979_v0 = vsel %vm2962_vm7, %v2976_v40, %v2978_v31  ;;  %v1770_v39 = vor.u32 %v1769_v42, %v1768_v41 }
 0x139   : > { %v2987_v32 = vsel %vm2962_vm7, %v2984_v52, %v2986_v47  ;;  %v2989_v43 = vsel %vm2962_vm7, %v2986_v47, %v2988_v46  ;;  %v1792_v11 = vor.u32 %v1791_v30, %v1790_v2 }
 0x13b   : > { %v1793_v16 = vsel %vm1720_vm3, %v1786_v61, %v1792_v11  ;;  %v1802_v56 = vsel %vm1720_vm3, %v1792_v11, %v6185_v28 }
 0x13e   : > { %4584 = vmatmul.mubr.msk.bf16.gmra.mrb[4].mxu0 %vm713_vm2, %v2971_v29  ;;  %4414 = vmatmul.mubr.msk.bf16.gmra.mrb[24].mxu1 %vm713_vm2, %v5687_v25  ;;  %v2980_v25 = vrot.slane %v5213_v18, 3  ;;  %v1773_v18 = vrot.slane %v6173_v57, 2  ;;  %v2985_v57 = vsel %vm2962_vm7, %v2982_v63, %v2984_v52  ;;  %v2997_v29 = vsel %vm2962_vm7, %v2994_v59, %v2996_v27 }
 0x13f   : > { %4587 = vmatprep.mubr.msk.bf16.mxu0 %vm713_vm2, %v2973_v19  ;;  %4417 = vmatprep.mubr.msk.bf16.mxu1 %vm713_vm2, %v5699_v13  ;;  %v1766_v13 = vor.u32 %v1765_v49, %v1764_v8  ;;  %v2999_v19 = vsel %vm2962_vm7, %v2996_v27, %v2998_v53 }
 0x140   : > { %v1774_v7 = vor.u32 %v1773_v18, %v1772_v22  ;;  %v2983_v3 = vsel %vm2962_vm7, %v2980_v25, %v2982_v63  ;;  %v5927_v63 = vld [vmem:[%s6098_s4] ss:$0 sm:$0xff] }
 0x141   : > { %v1771_v35 = vsel %vm1720_vm3, %v1766_v13, %v1770_v39 }
 0x142   : > { %v1775_v26 = vsel %vm1720_vm3, %v1770_v39, %v1774_v7  ;;  %v1779_v60 = vsel %vm1720_vm3, %v1774_v7, %v1778_v21 }
 0x146   : > { %4588 = vmatmul.mubr.msk.bf16.gmra.mrb[8].mxu0 %vm713_vm2, %v2975_v50  ;;  %4418 = vmatmul.mubr.msk.bf16.gmra.mrb[28].mxu1 %vm713_vm2, %v5703_v51  ;;  %v2981_v51 = vsel %vm2962_vm7, %v2978_v31, %v2980_v25 }
 0x147   : > { %4591 = vmatprep.mubr.msk.bf16.mxu0 %vm713_vm2, %v2977_v20  ;;  %4421 = vmatprep.mubr.msk.bf16.mxu1 %vm713_vm2, %v5719_v36  ;;  %v1767_v36 = vsel %vm1720_vm3, %v6184_v48, %v1766_v13 }
 0x14e   : > { %4592 = vmatmul.mubr.msk.bf16.gmra.mrb[12].mxu0 %vm713_vm2, %v2979_v0  ;;  %4422 = vmatmul.mubr.msk.bf16.gmra.mrb[32].mxu1 %vm713_vm2, %v1498_v10 }
 0x14f   : > { %4595 = vmatprep.mubr.msk.bf16.mxu0 %vm713_vm2, %v2981_v51  ;;  %4447 = vmatprep.mubr.msk.bf16.mxu1 %vm713_vm2, %v1767_v36  ;;  %v5922_v36 = vld [vmem:[%s6097_s3] ss:$0 sm:$0xff] }
 0x156   : > { %4596 = vmatmul.mubr.msk.bf16.gmra.mrb[16].mxu0 %vm713_vm2, %v2983_v3  ;;  %4448 = vmatmul.mubr.msk.bf16.vlgmr.msra.gmra.mrb[20].mxu1 %vm713_vm2, %v1771_v35 }
 0x157   : > { %4599 = vmatprep.mubr.msk.bf16.mxu0 %vm713_vm2, %v2985_v57  ;;  %4451 = vmatprep.mubr.msk.bf16.mxu1 %vm713_vm2, %v1775_v26 }
 0x15e   : > { %4600 = vmatmul.mubr.msk.bf16.gmra.mrb[20].mxu0 %vm713_vm2, %v2987_v32  ;;  %4452 = vmatmul.mubr.msk.bf16.gmra.mrb[24].mxu1 %vm713_vm2, %v1779_v60 }
 0x15f   : > { %4603 = vmatprep.mubr.msk.bf16.mxu0 %vm713_vm2, %v2989_v43  ;;  %4455 = vmatprep.mubr.msk.bf16.mxu1 %vm713_vm2, %v1783_v24 }
 0x166   : > { %4604 = vmatmul.mubr.msk.bf16.gmra.mrb[24].mxu0 %vm713_vm2, %v2991_v58  ;;  %4456 = vmatmul.mubr.msk.bf16.gmra.mrb[28].mxu1 %vm713_vm2, %v1787_v6 }
 0x167   : > { %4607 = vmatprep.mubr.msk.bf16.mxu0 %vm713_vm2, %v2993_v45  ;;  %4459 = vmatprep.mubr.msk.bf16.mxu1 %vm713_vm2, %v1793_v16 }
 0x16e   : > { %4608 = vmatmul.mubr.msk.bf16.gmra.mrb[28].mxu0 %vm713_vm2, %v2995_v34  ;;  %4460 = vmatmul.mubr.msk.bf16.gmra.mrb[32].mxu1 %vm713_vm2, %v1802_v56 }
 0x16f   : > { %4611 = vmatprep.mubr.msk.bf16.mxu0 %vm713_vm2, %v2997_v29 }
 0x176   : > { %4612 = vmatmul.mubr.msk.bf16.gmra.mrb[32].mxu0 %vm713_vm2, %v2999_v19 }
 0x1e1   : > { %v4391_v9 = vpop.f32.mrb[0].mxu1 }
 0x1e2   : > { %v1539_v4 = vpop.f32.mrb[1].mxu1 }
 0x1e3   : > { %v4392_v40 = vpop.f32.mrb[2].mxu1 }
 0x1e4   : > { %v1542_v37 = vpop.f32.mrb[3].mxu1 }
 0x1e9   : > { %v4395_v38 = vpop.f32.mrb[4].mxu1 }
 0x1ea   : > { %v1555_v50 = vpop.f32.mrb[5].mxu1 }
 0x1eb   : > { %v4396_v20 = vpop.f32.mrb[6].mxu1 }
 0x1ec   : > { %v1558_v8 = vpop.f32.mrb[7].mxu1 }
 0x1f1   : > { %v5895_v49 = vpop.f32.mrb[8].mxu1 }
 0x1f2   : > { %v5897_v31 = vpop.f32.mrb[9].mxu1 }
 0x1f3   : > { %v5899_v14 = vpop.f32.mrb[10].mxu1 }
 0x1f4   : > { %v5901_v25 = vpop.f32.mrb[11].mxu1 }
 0x1f9   : > { %v5903_v54 = vpop.f32.mrb[12].mxu1 }
 0x1fa   : > { %v5905_v13 = vpop.f32.mrb[13].mxu1 }
 0x1fb   : > { %v5907_v0 = vpop.f32.mrb[14].mxu1 }
 0x1fc   : > { %v5909_v23 = vpop.f32.mrb[15].mxu1 }
 0x201   : > { %v5911_v10 = vpop.f32.mrb[16].mxu1 }
 0x202   : > { %v5913_v51 = vpop.f32.mrb[17].mxu1 }
 0x203   : > { %v5915_v41 = vpop.f32.mrb[18].mxu1 }
 0x204   : > { %v5917_v42 = vpop.f32.mrb[19].mxu1 }
 0x209   : > { %v4581_v48 = vpop.f32.mrb[0].mxu0 }
 0x20a   : > { %v4617_v22 = vadd.f32 %v4581_v48, %v4391_v9  ;;  %v3091_v18 = vpop.f32.mrb[1].mxu0 }
 0x20b   : > { %v4618_v39 = vadd.f32 %v3091_v18, %v1539_v4  ;;  %v4582_v52 = vpop.f32.mrb[2].mxu0 }
 0x20c   : > { %v3279_v7 = vmul.f32 %v4617_v22, %v5922_v36  ;;  %v4619_v3 = vadd.f32 %v4582_v52, %v4392_v40  ;;  %v3094_v35 = vpop.f32.mrb[3].mxu0 }
 0x20d   : > { %v3277_v57 = vmul.f32 %v4618_v39, %v5922_v36  ;;  %v4620_v55 = vadd.f32 %v3094_v35, %v1542_v37 }
 0x20e   : > { %v3322_v44 = vadd.f32 %v5927_v63, %v3279_v7  ;;  %v3280_v26 = vmul.f32 %v4619_v3, %v5922_v36 }
 0x20f   : > { %v3320_v17 = vadd.f32 %v5927_v63, %v3277_v57  ;;  %v3278_v1 = vmul.f32 %v4620_v55, %v5922_v36 }
 0x210   : > { %v3358_v47 = vmax.f32 %v3322_v44, 0.0  ;;  %v3323_v21 = vadd.f32 %v5927_v63, %v3280_v26 }
 0x211   : > { %v3356_v46 = vmax.f32 %v3320_v17, 0.0  ;;  %v3321_v15 = vadd.f32 %v5927_v63, %v3278_v1  ;;  %v4585_v32 = vpop.f32.mrb[4].mxu0 }
 0x212   : > { %v3860_v60 = vpack.c.bf16 %v3358_v47, %v3358_v47  ;;  %v3359_v43 = vmax.f32 %v3323_v21, 0.0  ;;  %v4621_v33 = vadd.f32 %v4585_v32, %v4395_v38  ;;  %v3107_v12 = vpop.f32.mrb[5].mxu0 }
 0x213   : > { %v3858_v24 = vpack.c.bf16 %v3356_v46, %v3356_v46  ;;  %v3357_v2 = vmax.f32 %v3321_v15, 0.0  ;;  %v4622_v30 = vadd.f32 %v3107_v12, %v1555_v50  ;;  %v4586_v62 = vpop.f32.mrb[6].mxu0 }
 0x214   : > { %3539 = vst.msk [vmem:[%s5940_s6 + $0x8] sm:$0xf] %vm3536_vm8, %v3860_v60  ;;  %v3861_v61 = vpack.c.bf16 %v3359_v43, %v3359_v43  ;;  %v3283_v5 = vmul.f32 %v4621_v33, %v5922_v36  ;;  %v4623_v11 = vadd.f32 %v4586_v62, %v4396_v20  ;;  %v3110_v58 = vpop.f32.mrb[7].mxu0 }
 0x215   : > { %3537 = vst.msk [vmem:[%s5940_s6] sm:$0xf] %vm3536_vm8, %v3858_v24  ;;  %v3859_v6 = vpack.c.bf16 %v3357_v2, %v3357_v2  ;;  %v3281_v45 = vmul.f32 %v4622_v30, %v5922_v36  ;;  %v4624_v16 = vadd.f32 %v3110_v58, %v1558_v8 }
 0x216   : > { %3540 = vst.msk [vmem:[%s5940_s6 + $0xc] sm:$0xf] %vm3536_vm8, %v3861_v61  ;;  %v3326_v59 = vadd.f32 %v5927_v63, %v3283_v5  ;;  %v3284_v27 = vmul.f32 %v4623_v11, %v5922_v36 }
 0x217   : > { %3538 = vst.msk [vmem:[%s5940_s6 + $0x4] sm:$0xf] %vm3536_vm8, %v3859_v6  ;;  %v3324_v34 = vadd.f32 %v5927_v63, %v3281_v45  ;;  %v3282_v28 = vmul.f32 %v4624_v16, %v5922_v36 }
 0x218   : > { %v3362_v56 = vmax.f32 %v3326_v59, 0.0  ;;  %v3327_v29 = vadd.f32 %v5927_v63, %v3284_v27 }
 0x219   : > { %v3360_v53 = vmax.f32 %v3324_v34, 0.0  ;;  %v3325_v19 = vadd.f32 %v5927_v63, %v3282_v28  ;;  %v4589_v9 = vpop.f32.mrb[8].mxu0 }
 0x21a   : > { %v3864_v4 = vpack.c.bf16 %v3362_v56, %v3362_v56  ;;  %v3363_v40 = vmax.f32 %v3327_v29, 0.0  ;;  %v4625_v37 = vadd.f32 %v4589_v9, %v5895_v49  ;;  %v3123_v38 = vpop.f32.mrb[9].mxu0 }
 0x21b   : > { %v3862_v50 = vpack.c.bf16 %v3360_v53, %v3360_v53  ;;  %v3361_v20 = vmax.f32 %v3325_v19, 0.0  ;;  %v4626_v8 = vadd.f32 %v3123_v38, %v5897_v31  ;;  %v4590_v48 = vpop.f32.mrb[10].mxu0 }
 0x21c   : > { %3543 = vst.msk [vmem:[%s5940_s6 + $0x18] sm:$0xf] %vm3536_vm8, %v3864_v4  ;;  %v3865_v22 = vpack.c.bf16 %v3363_v40, %v3363_v40  ;;  %v3287_v18 = vmul.f32 %v4625_v37, %v5922_v36  ;;  %v4627_v39 = vadd.f32 %v4590_v48, %v5899_v14  ;;  %v3126_v52 = vpop.f32.mrb[11].mxu0 }
 0x21d   : > { %3541 = vst.msk [vmem:[%s5940_s6 + $0x10] sm:$0xf] %vm3536_vm8, %v3862_v50  ;;  %v3863_v7 = vpack.c.bf16 %v3361_v20, %v3361_v20  ;;  %v3285_v49 = vmul.f32 %v4626_v8, %v5922_v36  ;;  %v4628_v3 = vadd.f32 %v3126_v52, %v5901_v25 }
 0x21e   : > { %3544 = vst.msk [vmem:[%s5940_s6 + $0x1c] sm:$0xf] %vm3536_vm8, %v3865_v22  ;;  %v3330_v31 = vadd.f32 %v5927_v63, %v3287_v18  ;;  %v3288_v35 = vmul.f32 %v4627_v39, %v5922_v36 }
 0x21f   : > { %3542 = vst.msk [vmem:[%s5940_s6 + $0x14] sm:$0xf] %vm3536_vm8, %v3863_v7  ;;  %v3328_v57 = vadd.f32 %v5927_v63, %v3285_v49  ;;  %v3286_v14 = vmul.f32 %v4628_v3, %v5922_v36 }
 0x220   : > { %v3366_v55 = vmax.f32 %v3330_v31, 0.0  ;;  %v3331_v44 = vadd.f32 %v5927_v63, %v3288_v35 }
 0x221   : > { %v3364_v26 = vmax.f32 %v3328_v57, 0.0  ;;  %v3329_v25 = vadd.f32 %v5927_v63, %v3286_v14  ;;  %v4593_v17 = vpop.f32.mrb[12].mxu0 }
 0x222   : > { %v3868_v1 = vpack.c.bf16 %v3366_v55, %v3366_v55  ;;  %v3367_v47 = vmax.f32 %v3331_v44, 0.0  ;;  %v4629_v21 = vadd.f32 %v4593_v17, %v5903_v54  ;;  %v3139_v46 = vpop.f32.mrb[13].mxu0 }
 0x223   : > { %v3866_v15 = vpack.c.bf16 %v3364_v26, %v3364_v26  ;;  %v3365_v32 = vmax.f32 %v3329_v25, 0.0  ;;  %v4630_v60 = vadd.f32 %v3139_v46, %v5905_v13  ;;  %v4594_v43 = vpop.f32.mrb[14].mxu0 }
 0x224   : > { %3547 = vst.msk [vmem:[%s5940_s6 + $0x28] sm:$0xf] %vm3536_vm8, %v3868_v1  ;;  %v3869_v33 = vpack.c.bf16 %v3367_v47, %v3367_v47  ;;  %v3291_v12 = vmul.f32 %v4629_v21, %v5922_v36  ;;  %v4631_v24 = vadd.f32 %v4594_v43, %v5907_v0  ;;  %v3142_v2 = vpop.f32.mrb[15].mxu0 }
 0x225   : > { %3545 = vst.msk [vmem:[%s5940_s6 + $0x20] sm:$0xf] %vm3536_vm8, %v3866_v15  ;;  %v3867_v30 = vpack.c.bf16 %v3365_v32, %v3365_v32  ;;  %v3289_v54 = vmul.f32 %v4630_v60, %v5922_v36  ;;  %v4632_v62 = vadd.f32 %v3142_v2, %v5909_v23 }
 0x226   : > { %3548 = vst.msk [vmem:[%s5940_s6 + $0x2c] sm:$0xf] %vm3536_vm8, %v3869_v33  ;;  %v3334_v13 = vadd.f32 %v5927_v63, %v3291_v12  ;;  %v3292_v61 = vmul.f32 %v4631_v24, %v5922_v36 }
 0x227   : > { %3546 = vst.msk [vmem:[%s5940_s6 + $0x24] sm:$0xf] %vm3536_vm8, %v3867_v30  ;;  %v3332_v5 = vadd.f32 %v5927_v63, %v3289_v54  ;;  %v3290_v0 = vmul.f32 %v4632_v62, %v5922_v36 }
 0x228   : > { %v3370_v11 = vmax.f32 %v3334_v13, 0.0  ;;  %v3335_v58 = vadd.f32 %v5927_v63, %v3292_v61 }
 0x229   : > { %v3368_v6 = vmax.f32 %v3332_v5, 0.0  ;;  %v3333_v45 = vadd.f32 %v5927_v63, %v3290_v0  ;;  %v4597_v23 = vpop.f32.mrb[16].mxu0  ;;  %v4449_v27 = vpop.f32.mrb[20].mxu1 }
 0x22a   : > { %v3872_v16 = vpack.c.bf16 %v3370_v11, %v3370_v11  ;;  %v3371_v59 = vmax.f32 %v3335_v58, 0.0  ;;  %v4633_v34 = vadd.f32 %v4597_v23, %v5911_v10  ;;  %v3155_v28 = vpop.f32.mrb[17].mxu0  ;;  %v1974_v53 = vpop.f32.mrb[21].mxu1 }
 0x22b   : > { %v3870_v56 = vpack.c.bf16 %v3368_v6, %v3368_v6  ;;  %v3369_v29 = vmax.f32 %v3333_v45, 0.0  ;;  %v4634_v19 = vadd.f32 %v3155_v28, %v5913_v51  ;;  %v4598_v9 = vpop.f32.mrb[18].mxu0  ;;  %v4450_v37 = vpop.f32.mrb[22].mxu1 }
 0x22c   : > { %3551 = vst.msk [vmem:[%s5940_s6 + $0x38] sm:$0xf] %vm3536_vm8, %v3872_v16  ;;  %v3873_v4 = vpack.c.bf16 %v3371_v59, %v3371_v59  ;;  %v3295_v40 = vmul.f32 %v4633_v34, %v5922_v36  ;;  %v4635_v38 = vadd.f32 %v4598_v9, %v5915_v41  ;;  %v3158_v50 = vpop.f32.mrb[19].mxu0  ;;  %v1977_v8 = vpop.f32.mrb[23].mxu1 }
 0x22d   : > { %3549 = vst.msk [vmem:[%s5940_s6 + $0x30] sm:$0xf] %vm3536_vm8, %v3870_v56  ;;  %v3871_v10 = vpack.c.bf16 %v3369_v29, %v3369_v29  ;;  %v3293_v20 = vmul.f32 %v4634_v19, %v5922_v36  ;;  %v4636_v48 = vadd.f32 %v3158_v50, %v5917_v42 }
 0x22e   : > { %3552 = vst.msk [vmem:[%s5940_s6 + $0x3c] sm:$0xf] %vm3536_vm8, %v3873_v4  ;;  %v3338_v51 = vadd.f32 %v5927_v63, %v3295_v40  ;;  %v3296_v22 = vmul.f32 %v4635_v38, %v5922_v36 }
 0x22f   : > { %3550 = vst.msk [vmem:[%s5940_s6 + $0x34] sm:$0xf] %vm3536_vm8, %v3871_v10  ;;  %v3336_v18 = vadd.f32 %v5927_v63, %v3293_v20  ;;  %v3294_v41 = vmul.f32 %v4636_v48, %v5922_v36 }
 0x230   : > { %v3374_v39 = vmax.f32 %v3338_v51, 0.0  ;;  %v3339_v52 = vadd.f32 %v5927_v63, %v3296_v22 }
 0x231   : > { %v3372_v7 = vmax.f32 %v3336_v18, 0.0  ;;  %v3337_v49 = vadd.f32 %v5927_v63, %v3294_v41  ;;  %v4601_v42 = vpop.f32.mrb[20].mxu0  ;;  %v4453_v35 = vpop.f32.mrb[24].mxu1 }
 0x232   : > { %v3876_v3 = vpack.c.bf16 %v3374_v39, %v3374_v39  ;;  %v3375_v31 = vmax.f32 %v3339_v52, 0.0  ;;  %v4637_v57 = vadd.f32 %v4601_v42, %v4449_v27  ;;  %v3171_v14 = vpop.f32.mrb[21].mxu0  ;;  %v1990_v26 = vpop.f32.mrb[25].mxu1 }
 0x233   : > { %v3874_v55 = vpack.c.bf16 %v3372_v7, %v3372_v7  ;;  %v3373_v44 = vmax.f32 %v3337_v49, 0.0  ;;  %v4638_v25 = vadd.f32 %v3171_v14, %v1974_v53  ;;  %v4602_v17 = vpop.f32.mrb[22].mxu0  ;;  %v4454_v21 = vpop.f32.mrb[26].mxu1 }
 0x234   : > { %3555 = vst.msk [vmem:[%s5940_s6 + $0x48] sm:$0xf] %vm3536_vm8, %v3876_v3  ;;  %v3877_v1 = vpack.c.bf16 %v3375_v31, %v3375_v31  ;;  %v3299_v47 = vmul.f32 %v4637_v57, %v5922_v36  ;;  %v4639_v46 = vadd.f32 %v4602_v17, %v4450_v37  ;;  %v3174_v15 = vpop.f32.mrb[23].mxu0  ;;  %v1993_v43 = vpop.f32.mrb[27].mxu1 }
 0x235   : > { %3553 = vst.msk [vmem:[%s5940_s6 + $0x40] sm:$0xf] %vm3536_vm8, %v3874_v55  ;;  %v3875_v32 = vpack.c.bf16 %v3373_v44, %v3373_v44  ;;  %v3297_v60 = vmul.f32 %v4638_v25, %v5922_v36  ;;  %v4640_v33 = vadd.f32 %v3174_v15, %v1977_v8 }
 0x236   : > { %3556 = vst.msk [vmem:[%s5940_s6 + $0x4c] sm:$0xf] %vm3536_vm8, %v3877_v1  ;;  %v3342_v12 = vadd.f32 %v5927_v63, %v3299_v47  ;;  %v3300_v24 = vmul.f32 %v4639_v46, %v5922_v36 }
 0x237   : > { %3554 = vst.msk [vmem:[%s5940_s6 + $0x44] sm:$0xf] %vm3536_vm8, %v3875_v32  ;;  %v3340_v2 = vadd.f32 %v5927_v63, %v3297_v60  ;;  %v3298_v30 = vmul.f32 %v4640_v33, %v5922_v36 }
 0x238   : > { %v3378_v54 = vmax.f32 %v3342_v12, 0.0  ;;  %v3343_v62 = vadd.f32 %v5927_v63, %v3300_v24 }
 0x239   : > { %v3376_v13 = vmax.f32 %v3340_v2, 0.0  ;;  %v3341_v61 = vadd.f32 %v5927_v63, %v3298_v30  ;;  %v4605_v5 = vpop.f32.mrb[24].mxu0  ;;  %v4457_v58 = vpop.f32.mrb[28].mxu1 }
 0x23a   : > { %v3880_v0 = vpack.c.bf16 %v3378_v54, %v3378_v54  ;;  %v3379_v11 = vmax.f32 %v3343_v62, 0.0  ;;  %v4641_v6 = vadd.f32 %v4605_v5, %v4453_v35  ;;  %v3187_v45 = vpop.f32.mrb[25].mxu0  ;;  %v2006_v59 = vpop.f32.mrb[29].mxu1 }
 0x23b   : > { %v3878_v23 = vpack.c.bf16 %v3376_v13, %v3376_v13  ;;  %v3377_v16 = vmax.f32 %v3341_v61, 0.0  ;;  %v4642_v27 = vadd.f32 %v3187_v45, %v1990_v26  ;;  %v4606_v34 = vpop.f32.mrb[26].mxu0  ;;  %v4458_v29 = vpop.f32.mrb[30].mxu1 }
 0x23c   : > { %3559 = vst.msk [vmem:[%s5940_s6 + $0x58] sm:$0xf] %vm3536_vm8, %v3880_v0  ;;  %v3881_v28 = vpack.c.bf16 %v3379_v11, %v3379_v11  ;;  %v3303_v56 = vmul.f32 %v4641_v6, %v5922_v36  ;;  %v4643_v53 = vadd.f32 %v4606_v34, %v4454_v21  ;;  %v3190_v19 = vpop.f32.mrb[27].mxu0  ;;  %v2009_v40 = vpop.f32.mrb[31].mxu1 }
 0x23d   : > { %3557 = vst.msk [vmem:[%s5940_s6 + $0x50] sm:$0xf] %vm3536_vm8, %v3878_v23  ;;  %v3879_v9 = vpack.c.bf16 %v3377_v16, %v3377_v16  ;;  %v3301_v4 = vmul.f32 %v4642_v27, %v5922_v36  ;;  %v4644_v37 = vadd.f32 %v3190_v19, %v1993_v43 }
 0x23e   : > { %3560 = vst.msk [vmem:[%s5940_s6 + $0x5c] sm:$0xf] %vm3536_vm8, %v3881_v28  ;;  %v3346_v38 = vadd.f32 %v5927_v63, %v3303_v56  ;;  %v3304_v50 = vmul.f32 %v4643_v53, %v5922_v36 }
 0x23f   : > { %3558 = vst.msk [vmem:[%s5940_s6 + $0x54] sm:$0xf] %vm3536_vm8, %v3879_v9  ;;  %v3344_v10 = vadd.f32 %v5927_v63, %v3301_v4  ;;  %v3302_v20 = vmul.f32 %v4644_v37, %v5922_v36 }
 0x240   : > { %v3382_v8 = vmax.f32 %v3346_v38, 0.0  ;;  %v3347_v48 = vadd.f32 %v5927_v63, %v3304_v50 }
 0x241   : > { %v3380_v51 = vmax.f32 %v3344_v10, 0.0  ;;  %v3345_v22 = vadd.f32 %v5927_v63, %v3302_v20  ;;  %v4609_v18 = vpop.f32.mrb[28].mxu0  ;;  %v4461_v52 = vpop.f32.mrb[32].mxu1 }
 0x242   : > { %v3884_v41 = vpack.c.bf16 %v3382_v8, %v3382_v8  ;;  %v3383_v39 = vmax.f32 %v3347_v48, 0.0  ;;  %v4645_v7 = vadd.f32 %v4609_v18, %v4457_v58  ;;  %v3203_v49 = vpop.f32.mrb[29].mxu0  ;;  %v2022_v31 = vpop.f32.mrb[33].mxu1 }
 0x243   : > { %v3882_v42 = vpack.c.bf16 %v3380_v51, %v3380_v51  ;;  %v3381_v3 = vmax.f32 %v3345_v22, 0.0  ;;  %v4646_v35 = vadd.f32 %v3203_v49, %v2006_v59  ;;  %v4610_v57 = vpop.f32.mrb[30].mxu0  ;;  %v4462_v44 = vpop.f32.mrb[34].mxu1 }
 0x244   : > { %3563 = vst.msk [vmem:[%s5940_s6 + $0x68] sm:$0xf] %vm3536_vm8, %v3884_v41  ;;  %v3885_v14 = vpack.c.bf16 %v3383_v39, %v3383_v39  ;;  %v3307_v55 = vmul.f32 %v4645_v7, %v5922_v36  ;;  %v4647_v26 = vadd.f32 %v4610_v57, %v4458_v29  ;;  %v3206_v25 = vpop.f32.mrb[31].mxu0  ;;  %v2025_v47 = vpop.f32.mrb[35].mxu1 }
 0x245   : > { %3561 = vst.msk [vmem:[%s5940_s6 + $0x60] sm:$0xf] %vm3536_vm8, %v3882_v42  ;;  %v3883_v17 = vpack.c.bf16 %v3381_v3, %v3381_v3  ;;  %v3305_v1 = vmul.f32 %v4646_v35, %v5922_v36  ;;  %v4648_v21 = vadd.f32 %v3206_v25, %v2009_v40 }
 0x246   : > { %3564 = vst.msk [vmem:[%s5940_s6 + $0x6c] sm:$0xf] %vm3536_vm8, %v3885_v14  ;;  %v3350_v46 = vadd.f32 %v5927_v63, %v3307_v55  ;;  %v3308_v15 = vmul.f32 %v4647_v26, %v5922_v36 }
 0x247   : > { %3562 = vst.msk [vmem:[%s5940_s6 + $0x64] sm:$0xf] %vm3536_vm8, %v3883_v17  ;;  %v3348_v32 = vadd.f32 %v5927_v63, %v3305_v1  ;;  %v3306_v60 = vmul.f32 %v4648_v21, %v5922_v36 }
 0x248   : > { %v3386_v43 = vmax.f32 %v3350_v46, 0.0  ;;  %v3351_v33 = vadd.f32 %v5927_v63, %v3308_v15 }
 0x249   : > { %v3384_v12 = vmax.f32 %v3348_v32, 0.0  ;;  %v3349_v24 = vadd.f32 %v5927_v63, %v3306_v60  ;;  %v4613_v2 = vpop.f32.mrb[32].mxu0 }
 0x24a   : > { %v3888_v30 = vpack.c.bf16 %v3386_v43, %v3386_v43  ;;  %v3387_v54 = vmax.f32 %v3351_v33, 0.0  ;;  %v4649_v62 = vadd.f32 %v4613_v2, %v4461_v52  ;;  %v3219_v13 = vpop.f32.mrb[33].mxu0 }
 0x24b   : > { %v3886_v61 = vpack.c.bf16 %v3384_v12, %v3384_v12  ;;  %v3385_v5 = vmax.f32 %v3349_v24, 0.0  ;;  %v4650_v0 = vadd.f32 %v3219_v13, %v2022_v31  ;;  %v4614_v11 = vpop.f32.mrb[34].mxu0 }
 0x24c   : > { %3567 = vst.msk [vmem:[%s5940_s6 + $0x78] sm:$0xf] %vm3536_vm8, %v3888_v30  ;;  %v3889_v58 = vpack.c.bf16 %v3387_v54, %v3387_v54  ;;  %v3311_v6 = vmul.f32 %v4649_v62, %v5922_v36  ;;  %v4651_v45 = vadd.f32 %v4614_v11, %v4462_v44  ;;  %v3222_v23 = vpop.f32.mrb[35].mxu0 }
 0x24d   : > { %3565 = vst.msk [vmem:[%s5940_s6 + $0x70] sm:$0xf] %vm3536_vm8, %v3886_v61  ;;  %v3887_v16 = vpack.c.bf16 %v3385_v5, %v3385_v5  ;;  %v3309_v59 = vmul.f32 %v4650_v0, %v5922_v36  ;;  %v4652_v27 = vadd.f32 %v3222_v23, %v2025_v47 }
 0x24e   : > { %3568 = vst.msk [vmem:[%s5940_s6 + $0x7c] sm:$0xf] %vm3536_vm8, %v3889_v58  ;;  %v3354_v34 = vadd.f32 %v5927_v63, %v3311_v6  ;;  %v3312_v28 = vmul.f32 %v4651_v45, %v5922_v36 }
 0x24f   : > { %3566 = vst.msk [vmem:[%s5940_s6 + $0x74] sm:$0xf] %vm3536_vm8, %v3887_v16  ;;  %v3352_v56 = vadd.f32 %v5927_v63, %v3309_v59  ;;  %v3310_v29 = vmul.f32 %v4652_v27, %v5922_v36 }
 0x250   : > { %v3390_v53 = vmax.f32 %v3354_v34, 0.0  ;;  %v3355_v19 = vadd.f32 %v5927_v63, %v3312_v28 }
 0x251   : > { %v3388_v9 = vmax.f32 %v3352_v56, 0.0  ;;  %v3353_v4 = vadd.f32 %v5927_v63, %v3310_v29 }
 0x252   : > { %v3892_v40 = vpack.c.bf16 %v3390_v53, %v3390_v53  ;;  %v3391_v37 = vmax.f32 %v3355_v19, 0.0 }
 0x253   : > { %v3890_v38 = vpack.c.bf16 %v3388_v9, %v3388_v9  ;;  %v3389_v50 = vmax.f32 %v3353_v4, 0.0 }
 0x254   : > { %3571 = vst.msk [vmem:[%s5940_s6 + $0x88] sm:$0xf] %vm3536_vm8, %v3892_v40  ;;  %v3893_v10 = vpack.c.bf16 %v3391_v37, %v3391_v37 }
 0x255   : > { %3569 = vst.msk [vmem:[%s5940_s6 + $0x80] sm:$0xf] %vm3536_vm8, %v3890_v38  ;;  %v3891_v20 = vpack.c.bf16 %v3389_v50, %v3389_v50 }
 0x256   : > { %3572 = vst.msk [vmem:[%s5940_s6 + $0x8c] sm:$0xf] %vm3536_vm8, %v3893_v10 }
 0x257   : > { %3570 = vst.msk [vmem:[%s5940_s6 + $0x84] sm:$0xf] %vm3536_vm8, %v3891_v20 }
 0x258 PF: > { %s15_s18 = sadd.s32 1, %s4932_s18  }
 0x259   : > { %p12_p4 = scmp.ge.s32.totalorder %s15_s18, 4  }
 0x25b   :  { %14 = sbr.rel (!%p12_p4) target bundleno = 1 (0x1), region = 81 }

// kernel: up_forward.5
= control target key start
LH: loop header
LB: loop body
LE: loop exit
PB: predicated region body
PF: predicated region fallthrough
CT: control target
= control target key end

     0   :  { %s4347_s15 = smov 0   ;;  %s5458_s0 = inlined_call_operand.vmem [shape: bf16[2,342,4], index: 0, kind: input, shape index: {}]   ;;  %s5459_s1 = inlined_call_operand.vmem [shape: bf16[9,4,4], index: 1, kind: input, shape index: {}]   ;;  %s5460_s2 = inlined_call_operand.vmem [shape: f32[1,4], index: 2, kind: input, shape index: {}]   ;;  %s5461_s3 = inlined_call_operand.vmem [shape: f32[1,4], index: 3, kind: input, shape index: {}]   ;;  %s5462_s4 = inlined_call_operand.vmem [shape: f32[2,288,4], index: 4, kind: output, shape index: {}]  }
   0x1 LB: > { %s3264_s16 = sadd.s32 4294967295, %s4320_s15   ;;  %p3268_p0 = scmp.ge.s32.totalorder %s4320_s15, 1  ;;  %s4320_s15 = sphi %s4347_s15, %s14_s15  }
   0x2   : > { %p162_p1 = scmp.lt.s32.totalorder %s4320_s15, 3 }
   0x4   : > { %p163_p2 = pnand %p3268_p0, %p162_p1 }
   0x6   : > { %166 = sbr.rel (%p163_p2) target bundleno = 574 (0x23e), region = 36 }
   0xd   : > { %vm540_vm0 = vcmask 1041408   ;;  %v4358_v0 = vld [vmem:[%s5459_s1 + $0x8] sm:$0x3]  ;;  %v3271_v1 = vld [vmem:[%s5459_s1 + $0x2] sm:$0x3]  ;;  %p188_p3 = scmp.lt.s32.totalorder %s3264_s16, 1 }
   0xe   : > { %4275 = vmatprep.subr.msk.bf16.mxu0 %vm540_vm0, %v4358_v0  ;;  %4271 = vmatprep.subr.msk.bf16.mxu1 %vm540_vm0, %v3271_v1  ;;  %v4368_v2 = vsel %vm540_vm0, %v4358_v0, 0  ;;  %v542_v3 = vsel %vm540_vm0, %v3271_v1, 0  ;;  %v3386_v4 = vld [vmem:[%s5459_s1 + $0xa] sm:$0x3]  ;;  %v240_v5 = vld [vmem:[%s5459_s1] sm:$0x3] }
   0xf   : > { %5494 = vst [vmem:[#allocation2_spill] sm:$0xff] %v4368_v2  ;;  %3792 = vmatpush3.bf16.msra.mxu0 %v4368_v2  ;;  %3640 = vmatpush3.bf16.msra.mxu1 %v542_v3  ;;  %s5531_s16 = smov (!%p188_p3, %s3264_s16), 1  ;;  %vm336_vm1 = vsmask.f32 7424  ;;  %vm1483_vm2 = vsmask.f32 6400 }
  0x10   : > { %4277 = vmatprep.subr.msk.bf16.mxu0 %vm540_vm0, %v3386_v4  ;;  %s4281_s25 = smul.u32 172, %s5531_s16  ;;  %4272 = vmatprep.subr.msk.bf16.mxu1 %vm540_vm0, %v240_v5  ;;  %vm485_vm3 = vcmask 31744   ;;  %v1934_v8 = vsel %vm540_vm0, %v3386_v4, 0  ;;  %v758_v10 = vsel %vm540_vm0, %v240_v5, 0  ;;  %v4433_v36 = vld [vmem:[%s5459_s1 + $0x4] sm:$0x3] }
  0x11   : > { %v4464_v51 = vld [vmem:[%s5459_s1 + $0xc] sm:$0x3]  ;;  %vm1841_vm4 = vcmask 1045504   ;;  %vm2385_vm5 = vsmask.f32 5376  ;;  %vm939_vm6 = vcmask 1046528  }
  0x12   : > { %s4386_s28 = scalar_lea.vmem %s5458_s0, %s4281_s25  ;;  %vm2743_vm7 = vcmask 1044480   ;;  %s4282_s17 = smul.u32 288, %s5531_s16 }
  0x13   : > { %v4389_v6 = vld [vmem:[%s4386_s28] sm:$0xff]   ;;  %v4392_v7 = vld [vmem:[%s4386_s28 + $0x8] sm:$0xff]   ;;  %v4396_v9 = vld [vmem:[%s4386_s28 + $0x10] sm:$0xff]  }
  0x14   : > { %v338_v11 = vshrl.u32 %v4389_v6, 16  ;;  %v340_v12 = vshll.u32 %v4389_v6, 16  ;;  %v345_v13 = vshll.u32 %v4392_v7, 16  ;;  %v349_v14 = vshrl.u32 %v4392_v7, 16  ;;  %v4410_v17 = vld [vmem:[%s4386_s28 + $0x18] sm:$0xff]   ;;  %v4413_v18 = vld [vmem:[%s4386_s28 + $0x20] sm:$0xff]   ;;  %s5302_s21 = scalar_lea.vmem %s5462_s4, %s4282_s17 }
  0x15   : > { %v4404_v15 = vshll.u32 %v4396_v9, 16  ;;  %v4407_v16 = vshrl.u32 %v4396_v9, 16  ;;  %v4419_v26 = vshll.u32 %v4410_v17, 16  ;;  %v4422_v30 = vshrl.u32 %v4410_v17, 16  ;;  %v4425_v31 = vld [vmem:[%s4386_s28 + $0x28] sm:$0xff]   ;;  %v4442_v41 = vld [vmem:[%s4386_s28 + $0x30] sm:$0xff]  }
  0x16   : > { %v342_v19 = vrot.slane %v340_v12, 1  ;;  %v347_v20 = vrot.slane %v345_v13, 1  ;;  %v1484_v21 = vrot.slane %v349_v14, 1  ;;  %v1485_v22 = vrot.slane %v345_v13, 2  ;;  %v4459_v50 = vld [vmem:[%s4386_s28 + $0x38] sm:$0xff]   ;;  %v4487_v63 = vld [vmem:[%s4386_s28 + $0x40] sm:$0xff]  }
  0x17   : > { %v1487_v23 = vrot.slane %v4407_v16, 1  ;;  %v1488_v24 = vrot.slane %v4404_v15, 2  ;;  %v355_v25 = vrot.slane %v4404_v15, 1  ;;  %v1492_v33 = vrot.slane %v4419_v26, 2 }
  0x18   : > { %v343_v27 = vor.u32 %v342_v19, %v338_v11  ;;  %v351_v28 = vor.u32 %v349_v14, %v347_v20  ;;  %v1486_v29 = vor.u32 %v1485_v22, %v1484_v21  ;;  %v363_v35 = vrot.slane %v4419_v26, 1 }
  0x19   : > { %v1489_v32 = vor.u32 %v1488_v24, %v1487_v23  ;;  %v359_v34 = vor.u32 %v4407_v16, %v355_v25  ;;  %v1491_v39 = vrot.slane %v4422_v30, 1  ;;  %v4439_v40 = vshll.u32 %v4413_v18, 16  ;;  %v4514_v23 = vld [vmem:[%s4386_s28 + $0x48] sm:$0xff]  }
  0x1a   : > { %v348_v37 = vsel %vm336_vm1, %v343_v27, %v347_v20  ;;  %v356_v38 = vsel %vm336_vm1, %v351_v28, %v355_v25  ;;  %v4448_v44 = vshrl.u32 %v4413_v18, 16  ;;  %v367_v45 = vor.u32 %v4422_v30, %v363_v35  ;;  %v4521_v28 = vld [vmem:[%s4386_s28 + $0x50] sm:$0xff]  }
  0x1b   : > { %3641 = vmatprep.mubr.msk.bf16.mxu1 %vm485_vm3, %v348_v37  ;;  %v1490_v42 = vsel %vm1483_vm2, %v1486_v29, %v1489_v32  ;;  %v364_v43 = vsel %vm336_vm1, %v359_v34, %v363_v35  ;;  %v1493_v46 = vor.u32 %v1492_v33, %v1491_v39  ;;  %v1496_v47 = vrot.slane %v4439_v40, 2 }
  0x1c   : > { %3793 = vmatprep.mubr.msk.bf16.mxu0 %vm485_vm3, %v1490_v42  ;;  %3642 = vmatmul.mubr.msk.bf16.vlgmr.msra.gmra.mrb[0].mxu1 %vm485_vm3, %v356_v38  ;;  %v371_v48 = vrot.slane %v4439_v40, 1  ;;  %v4456_v49 = vshll.u32 %v4425_v31, 16  ;;  %v1495_v52 = vrot.slane %v4448_v44, 1  ;;  %v4469_v53 = vshrl.u32 %v4425_v31, 16 }
  0x1d   : > { %3645 = vmatprep.mubr.msk.bf16.mxu1 %vm485_vm3, %v364_v43  ;;  %3678 = vmatpush3.bf16.msra.mxu1 %v758_v10  ;;  %v4472_v54 = vshll.u32 %v4442_v41, 16  ;;  %v4475_v55 = vshrl.u32 %v4442_v41, 16  ;;  %v1494_v56 = vsel %vm1483_vm2, %v1489_v32, %v1493_v46  ;;  %v4491_v3 = vshll.u32 %v4459_v50, 16 }
  0x1e   : > { %v1500_v57 = vrot.slane %v4456_v49, 2  ;;  %v375_v58 = vor.u32 %v4448_v44, %v371_v48  ;;  %4273 = vmatprep.subr.msk.bf16.mxu1 %vm540_vm0, %v4433_v36  ;;  %3794 = vmatmul.mubr.msk.bf16.vlgmr.msra.gmra.mrb[0].mxu0 %vm485_vm3, %v1494_v56  ;;  %v1497_v59 = vor.u32 %v1496_v47, %v1495_v52  ;;  %v1499_v60 = vrot.slane %v4469_v53, 1  ;;  %v4548_v56 = vld [vmem:[%s4386_s28 + $0x58] sm:$0xff]  }
  0x1f   : > { %v379_v61 = vrot.slane %v4456_v49, 1  ;;  %v1503_v62 = vrot.slane %v4475_v55, 1  ;;  %3830 = vmatpush3.bf16.msra.mxu0 %v1934_v8  ;;  %v1504_v1 = vrot.slane %v4472_v54, 2  ;;  %v4494_v4 = vshrl.u32 %v4459_v50, 16 }
  0x20   : > { %v1498_v5 = vsel %vm1483_vm2, %v1493_v46, %v1497_v59  ;;  %v372_v10 = vsel %vm336_vm1, %v367_v45, %v371_v48  ;;  %v1501_v11 = vor.u32 %v1500_v57, %v1499_v60  ;;  %4278 = vmatprep.subr.msk.bf16.mxu0 %vm540_vm0, %v4464_v51  ;;  %v387_v13 = vrot.slane %v4472_v54, 1 }
  0x21   : > { %3797 = vmatprep.mubr.msk.bf16.mxu0 %vm485_vm3, %v1498_v5  ;;  %v380_v8 = vsel %vm336_vm1, %v375_v58, %v379_v61  ;;  %v1505_v12 = vor.u32 %v1504_v1, %v1503_v62  ;;  %v4504_v14 = vshll.u32 %v4487_v63, 16  ;;  %v1507_v20 = vrot.slane %v4494_v4, 1 }
  0x22   : > { %v1502_v19 = vsel %vm1483_vm2, %v1497_v59, %v1501_v11  ;;  %v1508_v21 = vrot.slane %v4491_v3, 2  ;;  %v4511_v22 = vshrl.u32 %v4487_v63, 16  ;;  %v383_v25 = vor.u32 %v4469_v53, %v379_v61 }
  0x23   : > { %v1506_v24 = vsel %vm1483_vm2, %v1501_v11, %v1505_v12  ;;  %v1512_v27 = vrot.slane %v4504_v14, 2  ;;  %v391_v29 = vor.u32 %v4475_v55, %v387_v13  ;;  %v395_v32 = vrot.slane %v4491_v3, 1 }
  0x24   : > { %3646 = vmatmul.mubr.msk.bf16.gmra.mrb[4].mxu1 %vm485_vm3, %v372_v10  ;;  %v1511_v33 = vrot.slane %v4511_v22, 1  ;;  %v1509_v34 = vor.u32 %v1508_v21, %v1507_v20  ;;  %v4529_v35 = vshll.u32 %v4514_v23, 16  ;;  %v4532_v37 = vshrl.u32 %v4514_v23, 16 }
  0x25   : > { %3649 = vmatprep.mubr.msk.bf16.mxu1 %vm485_vm3, %v380_v8  ;;  %v388_v38 = vsel %vm336_vm1, %v383_v25, %v387_v13  ;;  %v4536_v42 = vshll.u32 %v4521_v28, 16  ;;  %v4539_v43 = vshrl.u32 %v4521_v28, 16  ;;  %v396_v45 = vsel %vm336_vm1, %v391_v29, %v395_v32  ;;  %v4568_v13 = vld [vmem:[%s4386_s28 + $0x88] sm:$0xff]   ;;  %v4576_v25 = vld [vmem:[%s4386_s28 + $0x60] sm:$0xff]  }
  0x26   : > { %3798 = vmatmul.mubr.msk.bf16.gmra.mrb[4].mxu0 %vm485_vm3, %v1502_v19  ;;  %v1513_v39 = vor.u32 %v1512_v27, %v1511_v33  ;;  %v1510_v46 = vsel %vm1483_vm2, %v1505_v12, %v1509_v34  ;;  %v403_v47 = vrot.slane %v4504_v14, 1  ;;  %v1515_v48 = vrot.slane %v4532_v37, 1  ;;  %v235_v27 = vld [vmem:[%s4386_s28 + $0x90] sm:$0xf] }
  0x27   : > { %3801 = vmatprep.mubr.msk.bf16.mxu0 %vm485_vm3, %v1506_v24  ;;  %v1516_v52 = vrot.slane %v4529_v35, 2  ;;  %v399_v58 = vor.u32 %v4494_v4, %v395_v32  ;;  %v1519_v59 = vrot.slane %v4539_v43, 1  ;;  %v1520_v60 = vrot.slane %v4536_v42, 2 }
  0x28   : > { %v1514_v57 = vsel %vm1483_vm2, %v1509_v34, %v1513_v39  ;;  %v407_v61 = vor.u32 %v4511_v22, %v403_v47  ;;  %v411_v62 = vrot.slane %v4529_v35, 1  ;;  %v4560_v5 = vshll.u32 %v4548_v56, 16 }
  0x29   : > { %v1517_v1 = vor.u32 %v1516_v52, %v1515_v48  ;;  %v4563_v10 = vshrl.u32 %v4548_v56, 16  ;;  %v404_v11 = vsel %vm336_vm1, %v399_v58, %v403_v47  ;;  %v1521_v8 = vor.u32 %v1520_v60, %v1519_v59 }
  0x2a   : > { %5495 = vst [vmem:[#allocation3_spill] sm:$0xff] %v4560_v5  ;;  %v412_v12 = vsel %vm336_vm1, %v407_v61, %v411_v62  ;;  %v419_v20 = vrot.slane %v4536_v42, 1  ;;  %v1524_v24 = vrot.slane %v4560_v5, 2  ;;  %v415_v32 = vor.u32 %v4532_v37, %v411_v62 }
  0x2b   : > { %5496 = vst [vmem:[#allocation4_spill] sm:$0xff] %v4563_v10  ;;  %v1518_v19 = vsel %vm1483_vm2, %v1513_v39, %v1517_v1  ;;  %v1523_v21 = vrot.slane %v4563_v10, 1  ;;  %v1522_v29 = vsel %vm1483_vm2, %v1517_v1, %v1521_v8  ;;  %v427_v34 = vrot.slane %v4560_v5, 1 }
  0x2c   : > { %3650 = vmatmul.mubr.msk.bf16.gmra.mrb[8].mxu1 %vm485_vm3, %v388_v38  ;;  %v423_v33 = vor.u32 %v4539_v43, %v419_v20  ;;  %v4585_v38 = vld [vmem:[%s4386_s28 + $0x68] sm:$0xff]   ;;  %v4588_v39 = vshll.u32 %v4568_v13, 16  ;;  %v4600_v48 = vshll.u32 %v4576_v25, 16  ;;  %v1842_v58 = vrot.slane %v4392_v7, 2 }
  0x2d   : > { %3653 = vmatprep.mubr.msk.bf16.mxu1 %vm485_vm3, %v396_v45  ;;  %v4591_v45 = vcombine.low %v235_v27, %v235_v27  ;;  %v4597_v47 = vor.u32 %v1524_v24, %v1523_v21  ;;  %v1843_v59 = vrot.slane %v4396_v9, 2  ;;  %v4609_v62 = vshrl.u32 %v4576_v25, 16  ;;  %v4622_v21 = vld [vmem:[%s4386_s28 + $0x70] sm:$0xff]  }
  0x2e   : > { %3802 = vmatmul.mubr.msk.bf16.gmra.mrb[8].mxu0 %vm485_vm3, %v1510_v46  ;;  %v4594_v46 = vshrl.u32 %v4568_v13, 16  ;;  %5500 = vst [vmem:[#allocation8_spill] sm:$0xff] %v4600_v48  ;;  %v5463_v52 = vrot.slane %v4588_v39, 1  ;;  %v428_v61 = vsel %vm336_vm1, %v423_v33, %v427_v34  ;;  %v4612_v1 = vshll.u32 %v4585_v38, 16 }
  0x2f   : > { %3805 = vmatprep.mubr.msk.bf16.mxu0 %vm485_vm3, %v1514_v57  ;;  %5497 = vst [vmem:[#allocation5_spill] sm:$0xff] %v4591_v45  ;;  %5499 = vst [vmem:[#allocation7_spill] sm:$0xff] %v4597_v47  ;;  %v420_v57 = vsel %vm336_vm1, %v415_v32, %v419_v20  ;;  %v481_v60 = vshll.u32 %v4591_v45, 16  ;;  %v435_v20 = vrot.slane %v4600_v48, 1  ;;  %v1844_v24 = vsel %vm1841_vm4, %v1842_v58, %v1843_v59 }
  0x30   : > { %5498 = vst [vmem:[#allocation6_spill] sm:$0xff] %v4594_v46  ;;  %5501 = vst [vmem:[#allocation9_spill] sm:$0xff] %v4609_v62  ;;  %v4639_v58 = vshll.u32 %v4622_v21, 16  ;;  %v5511_v5 = vrot.slane %v4588_v39, 1  ;;  %v2394_v45 = vrot.slane %v4439_v40, 3  ;;  %v1857_v40 = vrot.slane %v4514_v23, 2 }
  0x31   : > { %5502 = vst [vmem:[#allocation10_spill] sm:$0xff] %v4612_v1  ;;  %v439_v33 = vor.u32 %v4609_v62, %v435_v20 }
  0x32   : > { %5503 = vst [vmem:[#allocation11_spill] sm:$0xff] %v4639_v58 }
  0x34   : > { %3654 = vmatmul.mubr.msk.bf16.gmra.mrb[12].mxu1 %vm485_vm3, %v404_v11  ;;  %v479_v11 = vor.u32 %v4594_v46, %v5463_v52  ;;  %v4648_v52 = vshrl.u32 %v4622_v21, 16 }
  0x35   : > { %3657 = vmatprep.mubr.msk.bf16.mxu1 %vm485_vm3, %v412_v12  ;;  %v483_v12 = vrot.slane %v481_v60, 1  ;;  %v1845_v60 = vrot.slane %v4410_v17, 2 }
  0x36   : > { %3806 = vmatmul.mubr.msk.bf16.gmra.mrb[12].mxu0 %vm485_vm3, %v1518_v19  ;;  %v1526_v19 = vsel %vm1483_vm2, %v1521_v8, %v4597_v47  ;;  %v4633_v8 = vld [vmem:[%s4386_s28 + $0x78] sm:$0xff]   ;;  %5505 = vst [vmem:[#allocation13_spill] sm:$0xff] %v4648_v52  ;;  %v4660_v47 = vld [vmem:[%s4386_s28 + $0x80] sm:$0xff]  }
  0x37   : > { %3809 = vmatprep.mubr.msk.bf16.mxu0 %vm485_vm3, %v1522_v29  ;;  %v431_v29 = vor.u32 %v4563_v10, %v427_v34  ;;  %v4628_v32 = vsel %vm336_vm1, %v479_v11, %v483_v12  ;;  %v4644_v11 = vshrl.u32 %v4585_v38, 16  ;;  %v2393_v10 = vrot.slane %v4448_v44, 2 }
  0x38   : > { %v2397_v44 = vrot.slane %v4469_v53, 2 }
  0x39   : > { %v436_v34 = vsel %vm336_vm1, %v431_v29, %v435_v20  ;;  %5504 = vst [vmem:[#allocation12_spill] sm:$0xff] %v4644_v11  ;;  %v4656_v20 = vsel %vm1841_vm4, %v1843_v59, %v1845_v60  ;;  %v451_v29 = vrot.slane %v4639_v58, 1  ;;  %v4676_v58 = vld [vmem:[%s5459_s1 + $0xe] sm:$0x3] }
  0x3c   : > { %3658 = vmatmul.mubr.msk.bf16.gmra.mrb[16].mxu1 %vm485_vm3, %v420_v57  ;;  %v443_v57 = vrot.slane %v4612_v1, 1  ;;  %v455_v1 = vor.u32 %v4648_v52, %v451_v29  ;;  %v4696_v52 = vshrl.u32 %v4633_v8, 16 }
  0x3d   : > { %3661 = vmatprep.mubr.msk.bf16.mxu1 %vm485_vm3, %v428_v61  ;;  %v1847_v61 = vrot.slane %v4413_v18, 2 }
  0x3e   : > { %3810 = vmatmul.mubr.msk.bf16.gmra.mrb[16].mxu0 %vm485_vm3, %v1526_v19  ;;  %v444_v12 = vsel %vm336_vm1, %v439_v33, %v443_v57  ;;  %v4651_v19 = vshll.u32 %v4633_v8, 16  ;;  %v2168_v33 = vsel %vm540_vm0, %v4464_v51, 0  ;;  %v447_v2 = vor.u32 %v4644_v11, %v443_v57  ;;  %v4681_v51 = vld [vmem:[%s4386_s28 + $0x98] sm:$0xf]  ;;  %5509 = vst [vmem:[#allocation17_spill] sm:$0xff] %v4696_v52 }
  0x3f   : > { %3831 = vmatprep.mubr.msk.bf16.mxu0 %vm485_vm3, %v1844_v24  ;;  %v236_v24 = vld [vmem:[%s4386_s28 + $0x94] sm:$0xf]  ;;  %v4666_v46 = vsel %vm1841_vm4, %v1845_v60, %v1847_v61  ;;  %v238_v60 = vld [vmem:[%s4386_s28 + $0x9c] sm:$0xf]  ;;  %v1849_v57 = vrot.slane %v4425_v31, 2  ;;  %v4702_v11 = vshrl.u32 %v4660_v47, 16 }
  0x40   : > { %5506 = vst [vmem:[#allocation14_spill] sm:$0xff] %v4651_v19  ;;  %v4671_v59 = vcombine.low %v235_v27, %v236_v24  ;;  %v4688_v27 = vshll.u32 %v4660_v47, 16  ;;  %v452_v24 = vsel %vm336_vm1, %v447_v2, %v451_v29 }
  0x41   : > { %5510 = vst [vmem:[#allocation18_spill] sm:$0xff] %v4702_v11  ;;  %v4710_v2 = vsel %vm1841_vm4, %v1847_v61, %v1849_v57  ;;  %v2386_v61 = vrot.slane %v4407_v16, 2 }
  0x42   : > { %5507 = vst [vmem:[#allocation15_spill] sm:$0xff] %v4671_v59  ;;  %5508 = vst [vmem:[#allocation16_spill] sm:$0xff] %v4688_v27  ;;  %v4705_v48 = vrot.slane %v4671_v59, 2  ;;  %v467_v29 = vrot.slane %v4688_v27, 1  ;;  %v2387_v27 = vrot.slane %v4404_v15, 3 }
  0x44   : > { %3662 = vmatmul.mubr.msk.bf16.gmra.mrb[20].mxu1 %vm485_vm3, %v436_v34  ;;  %v459_v34 = vrot.slane %v4651_v19, 1  ;;  %v1851_v19 = vrot.slane %v4442_v41, 2 }
  0x45   : > { %3665 = vmatprep.mubr.msk.bf16.mxu1 %vm485_vm3, %v444_v12  ;;  %v4691_v12 = vcombine.low %v4681_v51, %v238_v60 }
  0x46   : > { %3832 = vmatmul.mubr.msk.bf16.vlgmr.msra.gmra.mrb[0].mxu0 %vm485_vm3, %v4656_v20  ;;  %v4721_v59 = vsel %vm1841_vm4, %v1849_v57, %v1851_v19  ;;  %v463_v62 = vor.u32 %v4696_v52, %v459_v34  ;;  %v2390_v57 = vrot.slane %v4419_v26, 3  ;;  %v2388_v52 = vor.u32 %v2387_v27, %v2386_v61 }
  0x47   : > { %3868 = vmatpush3.bf16.msra.mxu0 %v2168_v33  ;;  %3835 = vmatprep.mubr.msk.bf16.mxu0 %vm485_vm3, %v4666_v46  ;;  %v460_v33 = vsel %vm336_vm1, %v455_v1, %v459_v34  ;;  %v5486_v60 = vrot.slane %v4691_v12, 2  ;;  %v1863_v61 = vrot.slane %v4576_v25, 2 }
  0x48   : > { %4279 = vmatprep.subr.msk.bf16.mxu0 %vm540_vm0, %v4676_v58  ;;  %v468_v34 = vsel %vm336_vm1, %v463_v62, %v467_v29  ;;  %v2395_v62 = vor.u32 %v2394_v45, %v2393_v10  ;;  %v2398_v10 = vrot.slane %v4456_v49, 3  ;;  %v1859_v45 = vrot.slane %v4521_v28, 2 }
  0x49   : > { %v4717_v1 = vsel %vm1841_vm4, %v4705_v48, %v5486_v60  ;;  %v1853_v60 = vrot.slane %v4459_v50, 2 }
  0x4a   : > { %v4776_v49 = vsel %vm1841_vm4, %v1857_v40, %v1859_v45 }
  0x4c   : > { %3666 = vmatmul.mubr.msk.bf16.gmra.mrb[24].mxu1 %vm485_vm3, %v452_v24  ;;  %v471_v24 = vor.u32 %v4702_v11, %v467_v29  ;;  %v1855_v11 = vrot.slane %v4487_v63, 2 }
  0x4d   : > { %3669 = vmatprep.mubr.msk.bf16.mxu1 %vm485_vm3, %v460_v33  ;;  %v2389_v33 = vrot.slane %v4422_v30, 2  ;;  %v4743_v30 = vsel %vm1841_vm4, %v1851_v19, %v1853_v60  ;;  %v2401_v19 = vrot.slane %v4475_v55, 2  ;;  %v2405_v55 = vrot.slane %v4494_v4, 2  ;;  %v4796_v4 = vld [vmem:[%s5459_s1 + $0x6] sm:$0x3] }
  0x4e   : > { %3836 = vmatmul.mubr.msk.bf16.gmra.mrb[4].mxu0 %vm485_vm3, %v4710_v2  ;;  %v476_v16 = vsel %vm336_vm1, %v471_v24, %v5511_v5  ;;  %v4750_v27 = vsel %vm1841_vm4, %v1853_v60, %v1855_v11  ;;  %v2402_v60 = vrot.slane %v4472_v54, 3  ;;  %v4768_v29 = vsel %vm1841_vm4, %v1855_v11, %v1857_v40 }
  0x4f   : > { %3839 = vmatprep.mubr.msk.bf16.mxu0 %vm485_vm3, %v4721_v59  ;;  %v2391_v15 = vor.u32 %v2390_v57, %v2389_v33  ;;  %v1861_v11 = vrot.slane %v4548_v56, 2  ;;  %v1032_v57 = vsel %vm540_vm0, %v4433_v36, 0  ;;  %v2414_v40 = vrot.slane %v4529_v35, 3 }
  0x50   : > { %v2403_v53 = vor.u32 %v2402_v60, %v2401_v19  ;;  %v2418_v19 = vrot.slane %v4536_v42, 3 }
  0x51   : > { %v4746_v26 = vsel %vm2385_vm5, %v2388_v52, %v2391_v15  ;;  %v4753_v5 = vsel %vm2385_vm5, %v2391_v15, %v2395_v62  ;;  %v2399_v52 = vor.u32 %v2398_v10, %v2397_v44  ;;  %v4804_v15 = vsel %vm1841_vm4, %v1859_v45, %v1861_v11 }
  0x52   : > { %v4809_v36 = vsel %vm1841_vm4, %v1861_v11, %v1863_v61  ;;  %v1865_v44 = vrot.slane %v4585_v38, 2  ;;  %v1867_v10 = vrot.slane %v4622_v21, 2 }
  0x53   : > { %v4771_v24 = vsel %vm2385_vm5, %v2395_v62, %v2399_v52  ;;  %v4781_v54 = vsel %vm2385_vm5, %v2399_v52, %v2403_v53  ;;  %v2417_v52 = vrot.slane %v4539_v43, 2  ;;  %v1869_v43 = vrot.slane %v4633_v8, 2 }
  0x54   : > { %3670 = vmatmul.mubr.msk.bf16.gmra.mrb[28].mxu1 %vm485_vm3, %v468_v34  ;;  %v2409_v34 = vrot.slane %v4511_v22, 2  ;;  %v2413_v22 = vrot.slane %v4532_v37, 2  ;;  %v4832_v35 = vsel %vm1841_vm4, %v1863_v61, %v1865_v44  ;;  %v1873_v61 = vrot.slane %v4568_v13, 2 }
  0x55   : > { %3673 = vmatprep.mubr.msk.bf16.mxu1 %vm485_vm3, %v476_v16  ;;  %v2410_v16 = vrot.slane %v4504_v14, 3  ;;  %v4834_v37 = vor.u32 %v2418_v19, %v2417_v52  ;;  %v5001_v52 = vld [vmem:[%s4386_s28 + $0xa0] ss:$0 sps:$4 sm:$0xff]   ;;  %v959_v19 = vrot.slane %v4521_v28, 1 }
  0x56   : > { %3840 = vmatmul.mubr.msk.bf16.gmra.mrb[8].mxu0 %vm485_vm3, %v4743_v30  ;;  %v2415_v45 = vor.u32 %v2414_v40, %v2413_v22  ;;  %v955_v40 = vrot.slane %v4487_v63, 1 }
  0x57   : > { %3843 = vmatprep.mubr.msk.bf16.mxu0 %vm485_vm3, %v4750_v27  ;;  %v2411_v62 = vor.u32 %v2410_v16, %v2409_v34  ;;  %v4879_v34 = vsel %vm1841_vm4, %v1873_v61, %v4705_v48 }
  0x58   : > { %v4843_v42 = vsel %vm2385_vm5, %v2415_v45, %v4834_v37 }
  0x59   : > { %v4827_v60 = vsel %vm2385_vm5, %v2411_v62, %v2415_v45 }
  0x5c   : > { %3674 = vmatmul.mubr.msk.bf16.gmra.mrb[32].mxu1 %vm485_vm3, %v4628_v32  ;;  %v2406_v32 = vrot.slane %v4491_v3, 3 }
  0x5d   : > { %3679 = vmatprep.mubr.msk.bf16.mxu1 %vm485_vm3, %v4389_v6 }
  0x5e   : > { %3844 = vmatmul.mubr.msk.bf16.gmra.mrb[12].mxu0 %vm485_vm3, %v4768_v29  ;;  %v2407_v33 = vor.u32 %v2406_v32, %v2405_v55  ;;  %v1871_v55 = vrot.slane %v4660_v47, 2  ;;  %v4854_v32 = vsel %vm1841_vm4, %v1867_v10, %v1869_v43 }
  0x5f   : > { %3847 = vmatprep.mubr.msk.bf16.mxu0 %vm485_vm3, %v4776_v49 }
  0x60   : > { %v4799_v3 = vsel %vm2385_vm5, %v2403_v53, %v2407_v33  ;;  %v4814_v14 = vsel %vm2385_vm5, %v2407_v33, %v2411_v62  ;;  %v4839_v53 = vsel %vm1841_vm4, %v1865_v44, %v1867_v10  ;;  %v4859_v11 = vsel %vm1841_vm4, %v1869_v43, %v1871_v55 }
  0x61   : > { %v4869_v33 = vsel %vm1841_vm4, %v1871_v55, %v1873_v61  ;;  %v2526_v62 = vsel %vm540_vm0, %v4676_v58, 0  ;;  %v941_v58 = vrot.slane %v4392_v7, 1  ;;  %v957_v44 = vrot.slane %v4514_v23, 1 }
  0x62   : > { %v965_v61 = vrot.slane %v4585_v38, 1 }
  0x63   : > { %v4996_v45 = vsel %vm939_vm6, %v955_v40, %v957_v44  ;;  %v5013_v43 = vsel %vm939_vm6, %v957_v44, %v959_v19 }
  0x64   : > { %3680 = vmatmul.mubr.msk.bf16.vlgmr.msra.gmra.mrb[0].mxu1 %vm485_vm3, %v4392_v7 }
  0x65   : > { %3683 = vmatprep.mubr.msk.bf16.mxu1 %vm485_vm3, %v4396_v9  ;;  %3716 = vmatpush3.bf16.msra.mxu1 %v1032_v57  ;;  %v4873_v57 = vcombine.low %v4681_v51, %v4681_v51 }
  0x66   : > { %4274 = vmatprep.subr.msk.bf16.mxu1 %vm540_vm0, %v4796_v4  ;;  %3848 = vmatmul.mubr.msk.bf16.gmra.mrb[16].mxu0 %vm485_vm3, %v4804_v15 }
  0x67   : > { %3851 = vmatprep.mubr.msk.bf16.mxu0 %vm485_vm3, %v4809_v36  ;;  %v1877_v16 = vrot.slane %v4873_v57, 2 }
  0x69   : > { %v1878_v51 = vsel %vm1841_vm4, %v4705_v48, %v1877_v16  ;;  %v4904_v48 = vld [vmem:[%s5459_s1 + $0x10] sm:$0x3] }
  0x6a   : > { %v2836_v16 = vsel %vm540_vm0, %v4904_v48, 0 }
  0x6c   : > { %3684 = vmatmul.mubr.msk.bf16.gmra.mrb[4].mxu1 %vm485_vm3, %v4410_v17 }
  0x6d   : > { %3687 = vmatprep.mubr.msk.bf16.mxu1 %vm485_vm3, %v4413_v18 }
  0x6e   : > { %3852 = vmatmul.mubr.msk.bf16.gmra.mrb[20].mxu0 %vm485_vm3, %v4832_v35 }
  0x6f   : > { %3855 = vmatprep.mubr.msk.bf16.mxu0 %vm485_vm3, %v4839_v53 }
  0x74   : > { %3688 = vmatmul.mubr.msk.bf16.gmra.mrb[8].mxu1 %vm485_vm3, %v4425_v31 }
  0x75   : > { %3691 = vmatprep.mubr.msk.bf16.mxu1 %vm485_vm3, %v4442_v41 }
  0x76   : > { %3856 = vmatmul.mubr.msk.bf16.gmra.mrb[24].mxu0 %vm485_vm3, %v4854_v32 }
  0x77   : > { %3859 = vmatprep.mubr.msk.bf16.mxu0 %vm485_vm3, %v4859_v11 }
  0x7c   : > { %3692 = vmatmul.mubr.msk.bf16.gmra.mrb[12].mxu1 %vm485_vm3, %v4459_v50 }
  0x7d   : > { %3695 = vmatprep.mubr.msk.bf16.mxu1 %vm485_vm3, %v4487_v63 }
  0x7e   : > { %3860 = vmatmul.mubr.msk.bf16.gmra.mrb[28].mxu0 %vm485_vm3, %v4869_v33 }
  0x7f   : > { %3863 = vmatprep.mubr.msk.bf16.mxu0 %vm485_vm3, %v4879_v34 }
  0x84   : > { %3696 = vmatmul.mubr.msk.bf16.gmra.mrb[16].mxu1 %vm485_vm3, %v4514_v23 }
  0x85   : > { %3699 = vmatprep.mubr.msk.bf16.mxu1 %vm485_vm3, %v4521_v28 }
  0x86   : > { %3864 = vmatmul.mubr.msk.bf16.gmra.mrb[32].mxu0 %vm485_vm3, %v1878_v51  ;;  %v967_v51 = vrot.slane %v4622_v21, 1 }
  0x87   : > { %3869 = vmatprep.mubr.msk.bf16.mxu0 %vm485_vm3, %v4656_v20 }
  0x8c   : > { %3700 = vmatmul.mubr.msk.bf16.gmra.mrb[20].mxu1 %vm485_vm3, %v4548_v56 }
  0x8d   : > { %3703 = vmatprep.mubr.msk.bf16.mxu1 %vm485_vm3, %v4576_v25 }
  0x8e   : > { %3870 = vmatmul.mubr.msk.bf16.vlgmr.msra.gmra.mrb[0].mxu0 %vm485_vm3, %v4666_v46  ;;  %v940_v46 = vrot.slane %v4389_v6, 1  ;;  %v945_v6 = vrot.slane %v4410_v17, 1 }
  0x8f   : > { %3906 = vmatpush3.bf16.msra.mxu0 %v2526_v62  ;;  %3873 = vmatprep.mubr.msk.bf16.mxu0 %vm485_vm3, %v4710_v2  ;;  %v969_v62 = vrot.slane %v4633_v8, 1 }
  0x90   : > { %4280 = vmatprep.subr.msk.bf16.mxu0 %vm540_vm0, %v4904_v48  ;;  %v942_v20 = vsel %vm939_vm6, %v940_v46, %v941_v58  ;;  %v971_v48 = vrot.slane %v4660_v47, 1 }
  0x91   : > { %v5052_v46 = vsel %vm939_vm6, %v967_v51, %v969_v62 }
  0x94   : > { %3704 = vmatmul.mubr.msk.bf16.gmra.mrb[24].mxu1 %vm485_vm3, %v4585_v38 }
  0x95   : > { %3707 = vmatprep.mubr.msk.bf16.mxu1 %vm485_vm3, %v4622_v21 }
  0x96   : > { %3874 = vmatmul.mubr.msk.bf16.gmra.mrb[4].mxu0 %vm485_vm3, %v4721_v59  ;;  %v943_v59 = vrot.slane %v4396_v9, 1 }
  0x97   : > { %3877 = vmatprep.mubr.msk.bf16.mxu0 %vm485_vm3, %v4743_v30  ;;  %v1266_v30 = vsel %vm540_vm0, %v4796_v4, 0 }
  0x98   : > { %v4941_v7 = vsel %vm939_vm6, %v941_v58, %v943_v59  ;;  %v4944_v2 = vsel %vm939_vm6, %v943_v59, %v945_v6 }
  0x9c   : > { %3708 = vmatmul.mubr.msk.bf16.gmra.mrb[28].mxu1 %vm485_vm3, %v4633_v8 }
  0x9d   : > { %3711 = vmatprep.mubr.msk.bf16.mxu1 %vm485_vm3, %v4660_v47 }
  0x9e   : > { %3878 = vmatmul.mubr.msk.bf16.gmra.mrb[8].mxu0 %vm485_vm3, %v4750_v27  ;;  %v947_v27 = vrot.slane %v4413_v18, 1 }
  0x9f   : > { %3881 = vmatprep.mubr.msk.bf16.mxu0 %vm485_vm3, %v4768_v29  ;;  %v949_v29 = vrot.slane %v4425_v31, 1 }
  0xa1   : > { %v4964_v4 = vsel %vm939_vm6, %v947_v27, %v949_v29 }
  0xa4   : > { %3712 = vmatmul.mubr.msk.bf16.gmra.mrb[32].mxu1 %vm485_vm3, %v4568_v13 }
  0xa5   : > { %3717 = vmatprep.mubr.msk.bf16.mxu1 %vm485_vm3, %v942_v20  ;;  %v5513_v20 = vld [vmem:[#allocation5_spill] sm:$0xff] }
  0xa6   : > { %3882 = vmatmul.mubr.msk.bf16.gmra.mrb[12].mxu0 %vm485_vm3, %v4776_v49  ;;  %v4961_v49 = vsel %vm939_vm6, %v945_v6, %v947_v27  ;;  %v975_v59 = vrot.slane %v5513_v20, 1  ;;  %v5514_v6 = vld [vmem:[#allocation4_spill] sm:$0xff]  ;;  %v5524_v20 = vld [vmem:[#allocation14_spill] sm:$0xff] }
  0xa7   : > { %3885 = vmatprep.mubr.msk.bf16.mxu0 %vm485_vm3, %v4804_v15  ;;  %v953_v15 = vrot.slane %v4459_v50, 1 }
  0xa9   : > { %v4993_v10 = vsel %vm939_vm6, %v953_v15, %v955_v40  ;;  %v5517_v40 = vld [vmem:[#allocation8_spill] sm:$0xff] }
  0xaa   : > { %v2426_v44 = vrot.slane %v5517_v40, 3 }
  0xac   : > { %3718 = vmatmul.mubr.msk.bf16.vlgmr.msra.gmra.mrb[0].mxu1 %vm485_vm3, %v4941_v7 }
  0xad   : > { %3721 = vmatprep.mubr.msk.bf16.mxu1 %vm485_vm3, %v4944_v2  ;;  %3754 = vmatpush3.bf16.msra.mxu1 %v1266_v30  ;;  %v5515_v30 = vld [vmem:[#allocation3_spill] sm:$0xff] }
  0xae   : > { %4276 = vmatprep.subr.msk.bf16.mxu1 %vm540_vm0, %v4358_v0  ;;  %3886 = vmatmul.mubr.msk.bf16.gmra.mrb[16].mxu0 %vm485_vm3, %v4809_v36  ;;  %v951_v0 = vrot.slane %v4442_v41, 1  ;;  %v2422_v27 = vrot.slane %v5515_v30, 3 }
  0xaf   : > { %3889 = vmatprep.mubr.msk.bf16.mxu0 %vm485_vm3, %v4832_v35  ;;  %v961_v35 = vrot.slane %v4548_v56, 1 }
  0xb0   : > { %v4977_v36 = vsel %vm939_vm6, %v949_v29, %v951_v0  ;;  %v4980_v22 = vsel %vm939_vm6, %v951_v0, %v953_v15  ;;  %v5516_v0 = vld [vmem:[#allocation9_spill] sm:$0xff] }
  0xb1   : > { %v5016_v55 = vsel %vm939_vm6, %v959_v19, %v961_v35  ;;  %v2425_v15 = vrot.slane %v5516_v0, 2 }
  0xb4   : > { %3722 = vmatmul.mubr.msk.bf16.gmra.mrb[4].mxu1 %vm485_vm3, %v4961_v49 }
  0xb5   : > { %3725 = vmatprep.mubr.msk.bf16.mxu1 %vm485_vm3, %v4964_v4 }
  0xb6   : > { %3890 = vmatmul.mubr.msk.bf16.gmra.mrb[20].mxu0 %vm485_vm3, %v4839_v53  ;;  %v2159_v53 = vrot.slane %v5001_v52, 2 }
  0xb7   : > { %3893 = vmatprep.mubr.msk.bf16.mxu0 %vm485_vm3, %v4854_v32  ;;  %v5512_v32 = vrot.slane %v4691_v12, 2 }
  0xbc   : > { %3726 = vmatmul.mubr.msk.bf16.gmra.mrb[8].mxu1 %vm485_vm3, %v4977_v36 }
  0xbd   : > { %3729 = vmatprep.mubr.msk.bf16.mxu1 %vm485_vm3, %v4980_v22 }
  0xbe   : > { %3894 = vmatmul.mubr.msk.bf16.gmra.mrb[24].mxu0 %vm485_vm3, %v4859_v11  ;;  %v2160_v11 = vsel %vm1841_vm4, %v5512_v32, %v2159_v53  ;;  %v5519_v53 = vld [vmem:[#allocation10_spill] sm:$0xff]  ;;  %v2427_v32 = vor.u32 %v2426_v44, %v2425_v15 }
  0xbf   : > { %3897 = vmatprep.mubr.msk.bf16.mxu0 %vm485_vm3, %v4869_v33  ;;  %v5527_v15 = vld [vmem:[#allocation6_spill] sm:$0xff] }
  0xc0   : > { %v2445_v44 = vrot.slane %v5527_v15, 2 }
  0xc4   : > { %3730 = vmatmul.mubr.msk.bf16.gmra.mrb[12].mxu1 %vm485_vm3, %v4993_v10 }
  0xc5   : > { %3733 = vmatprep.mubr.msk.bf16.mxu1 %vm485_vm3, %v4996_v45 }
  0xc6   : > { %3898 = vmatmul.mubr.msk.bf16.gmra.mrb[28].mxu0 %vm485_vm3, %v4879_v34 }
  0xc7   : > { %3901 = vmatprep.mubr.msk.bf16.mxu0 %vm485_vm3, %v4717_v1  ;;  %v963_v1 = vrot.slane %v4576_v25, 1 }
  0xc9   : > { %v5031_v33 = vsel %vm939_vm6, %v961_v35, %v963_v1  ;;  %v5034_v34 = vsel %vm939_vm6, %v963_v1, %v965_v61 }
  0xcc   : > { %3734 = vmatmul.mubr.msk.bf16.gmra.mrb[16].mxu1 %vm485_vm3, %v5013_v43 }
  0xcd   : > { %3737 = vmatprep.mubr.msk.bf16.mxu1 %vm485_vm3, %v5016_v55 }
  0xce   : > { %3902 = vmatmul.mubr.msk.bf16.gmra.mrb[32].mxu0 %vm485_vm3, %v2160_v11 }
  0xcf   : > { %3907 = vmatprep.mubr.msk.bf16.mxu0 %vm485_vm3, %v4746_v26  ;;  %v5049_v26 = vsel %vm939_vm6, %v965_v61, %v967_v51 }
  0xd4   : > { %3738 = vmatmul.mubr.msk.bf16.gmra.mrb[20].mxu1 %vm485_vm3, %v5031_v33 }
  0xd5   : > { %3741 = vmatprep.mubr.msk.bf16.mxu1 %vm485_vm3, %v5034_v34 }
  0xd6   : > { %3908 = vmatmul.mubr.msk.bf16.vlgmr.msra.gmra.mrb[0].mxu0 %vm485_vm3, %v4753_v5  ;;  %v5060_v5 = vrot.slane %v4568_v13, 1 }
  0xd7   : > { %3944 = vmatpush3.bf16.msra.mxu0 %v2836_v16  ;;  %3911 = vmatprep.mubr.msk.bf16.mxu0 %vm485_vm3, %v4771_v24  ;;  %v5067_v24 = vsel %vm939_vm6, %v969_v62, %v971_v48  ;;  %v5521_v16 = vld [vmem:[#allocation11_spill] sm:$0xff]  ;;  %v5522_v62 = vld [vmem:[#allocation2_spill] sm:$0xff] }
  0xd8   : > { %v5071_v58 = vsel %vm939_vm6, %v971_v48, %v5060_v5 }
  0xdc   : > { %3742 = vmatmul.mubr.msk.bf16.gmra.mrb[24].mxu1 %vm485_vm3, %v5049_v26 }
  0xdd   : > { %3745 = vmatprep.mubr.msk.bf16.mxu1 %vm485_vm3, %v5052_v46 }
  0xde   : > { %3912 = vmatmul.mubr.msk.bf16.gmra.mrb[4].mxu0 %vm485_vm3, %v4781_v54  ;;  %v2421_v54 = vrot.slane %v5514_v6, 2 }
  0xdf   : > { %3915 = vmatprep.mubr.msk.bf16.mxu0 %vm485_vm3, %v4799_v3  ;;  %v976_v3 = vsel %vm939_vm6, %v5060_v5, %v975_v59  ;;  %v2438_v59 = vrot.slane %v5524_v20, 3 }
  0xe0   : > { %v2423_v29 = vor.u32 %v2422_v27, %v2421_v54  ;;  %v5526_v27 = vld [vmem:[#allocation16_spill] sm:$0xff] }
  0xe2   : > { %v2424_v19 = vsel %vm2385_vm5, %v4834_v37, %v2423_v29  ;;  %v2428_v1 = vsel %vm2385_vm5, %v2423_v29, %v2427_v32  ;;  %v2434_v37 = vrot.slane %v5521_v16, 3 }
  0xe4   : > { %3746 = vmatmul.mubr.msk.bf16.gmra.mrb[28].mxu1 %vm485_vm3, %v5067_v24 }
  0xe5   : > { %3749 = vmatprep.mubr.msk.bf16.mxu1 %vm485_vm3, %v5071_v58 }
  0xe6   : > { %3916 = vmatmul.mubr.msk.bf16.gmra.mrb[8].mxu0 %vm485_vm3, %v4814_v14  ;;  %v5518_v14 = vld [vmem:[#allocation12_spill] sm:$0xff] }
  0xe7   : > { %3919 = vmatprep.mubr.msk.bf16.mxu0 %vm485_vm3, %v4827_v60  ;;  %v2429_v35 = vrot.slane %v5518_v14, 2  ;;  %v2430_v60 = vrot.slane %v5519_v53, 3 }
  0xe9   : > { %v2431_v11 = vor.u32 %v2430_v60, %v2429_v35  ;;  %v5528_v35 = vld [vmem:[#allocation15_spill] sm:$0xff] }
  0xea   : > { %v1552_v60 = vshrl.u32 %v5528_v35, 16 }
  0xeb   : > { %v2432_v51 = vsel %vm2385_vm5, %v2427_v32, %v2431_v11  ;;  %v1555_v32 = vshll.u32 %v5528_v35, 16 }
  0xec   : > { %3750 = vmatmul.mubr.msk.bf16.gmra.mrb[32].mxu1 %vm485_vm3, %v976_v3  ;;  %v2442_v3 = vrot.slane %v5526_v27, 3 }
  0xed   : > { %3755 = vmatprep.mubr.msk.bf16.mxu1 %vm485_vm3, %v4941_v7  ;;  %v5520_v7 = vld [vmem:[#allocation13_spill] sm:$0xff] }
  0xee   : > { %3920 = vmatmul.mubr.msk.bf16.gmra.mrb[12].mxu0 %vm485_vm3, %v4843_v42  ;;  %v2433_v61 = vrot.slane %v5520_v7, 2  ;;  %v5523_v42 = vld [vmem:[#allocation17_spill] sm:$0xff] }
  0xef   : > { %3923 = vmatprep.mubr.msk.bf16.mxu0 %vm485_vm3, %v2424_v19  ;;  %v2437_v48 = vrot.slane %v5523_v42, 2  ;;  %v2446_v19 = vrot.slane %v4588_v39, 3 }
  0xf1   : > { %v2439_v6 = vor.u32 %v2438_v59, %v2437_v48 }
  0xf4   : > { %3756 = vmatmul.mubr.msk.bf16.vlgmr.msra.gmra.mrb[0].mxu1 %vm485_vm3, %v4944_v2  ;;  %v2435_v2 = vor.u32 %v2434_v37, %v2433_v61  ;;  %v2449_v37 = vrot.slane %v1552_v60, 2 }
  0xf5   : > { %3759 = vmatprep.mubr.msk.bf16.mxu1 %vm485_vm3, %v4961_v49  ;;  %3982 = vmatpush3.bf16.msra.mxu1 %v5522_v62  ;;  %v5525_v49 = vld [vmem:[#allocation18_spill] sm:$0xff] }
  0xf6   : > { %3924 = vmatmul.mubr.msk.bf16.gmra.mrb[16].mxu0 %vm485_vm3, %v2428_v1  ;;  %v2436_v54 = vsel %vm2385_vm5, %v2431_v11, %v2435_v2  ;;  %v2441_v30 = vrot.slane %v5525_v49, 2  ;;  %v2440_v29 = vsel %vm2385_vm5, %v2435_v2, %v2439_v6  ;;  %v2447_v11 = vor.u32 %v2446_v19, %v2445_v44 }
  0xf7   : > { %3927 = vmatprep.mubr.msk.bf16.mxu0 %vm485_vm3, %v2432_v51  ;;  %v2454_v1 = vshrl.u32 %v4691_v12, 16  ;;  %v2450_v51 = vrot.slane %v1555_v32, 3  ;;  %v2463_v2 = vshrl.u32 %v5001_v52, 16  ;;  %v2744_v19 = vrot.slane %v4396_v9, 3 }
  0xf8   : > { %v2749_v9 = vrot.slane %v4425_v31, 3 }
  0xf9   : > { %v2456_v48 = vrot.slane %v2454_v1, 2  ;;  %v1527_v1 = vrot.slane %v5516_v0, 1  ;;  %v2761_v0 = vrot.slane %v4548_v56, 3 }
  0xfc   : > { %3760 = vmatmul.mubr.msk.bf16.gmra.mrb[4].mxu1 %vm485_vm3, %v4964_v4  ;;  %v2443_v4 = vor.u32 %v2442_v3, %v2441_v30 }
  0xfd   : > { %3763 = vmatprep.mubr.msk.bf16.mxu1 %vm485_vm3, %v4977_v36  ;;  %v2457_v36 = vshll.u32 %v4691_v12, 16 }
  0xfe   : > { %3928 = vmatmul.mubr.msk.bf16.gmra.mrb[20].mxu0 %vm485_vm3, %v2436_v54  ;;  %v2444_v61 = vsel %vm2385_vm5, %v2439_v6, %v2443_v4  ;;  %v2448_v62 = vsel %vm2385_vm5, %v2443_v4, %v2447_v11  ;;  %v2466_v6 = vshll.u32 %v5001_v52, 16  ;;  %v2745_v4 = vrot.slane %v4410_v17, 3 }
  0xff   : > { %3931 = vmatprep.mubr.msk.bf16.mxu0 %vm485_vm3, %v2440_v29  ;;  %v2459_v59 = vrot.slane %v2457_v36, 3  ;;  %v1528_v36 = vrot.slane %v5517_v40, 2  ;;  %v1532_v40 = vrot.slane %v5519_v53, 2 }
 0x100   : > { %v2468_v3 = vrot.slane %v2466_v6, 3  ;;  %v1540_v6 = vrot.slane %v5524_v20, 2 }
 0x101   : > { %v2460_v54 = vor.u32 %v2459_v59, %v2456_v48  ;;  %v1535_v48 = vrot.slane %v5520_v7, 1  ;;  %v1536_v59 = vrot.slane %v5521_v16, 2  ;;  %v2765_v7 = vrot.slane %v4585_v38, 3 }
 0x102   : > { %v1539_v16 = vrot.slane %v5523_v42, 1  ;;  %v2767_v42 = vrot.slane %v4622_v21, 3 }
 0x104   : > { %3764 = vmatmul.mubr.msk.bf16.gmra.mrb[8].mxu1 %vm485_vm3, %v4980_v22  ;;  %v2451_v22 = vor.u32 %v2450_v51, %v2449_v37  ;;  %v1529_v37 = vor.u32 %v1528_v36, %v1527_v1  ;;  %v5529_v51 = vld [vmem:[#allocation7_spill] sm:$0xff]  ;;  %v2768_v21 = vsel %vm2743_vm7, %v2765_v7, %v2767_v42 }
 0x105   : > { %3767 = vmatprep.mubr.msk.bf16.mxu1 %vm485_vm3, %v4993_v10  ;;  %v2465_v10 = vrot.slane %v2463_v2, 2  ;;  %v1537_v2 = vor.u32 %v1536_v59, %v1535_v48 }
 0x106   : > { %3932 = vmatmul.mubr.msk.bf16.gmra.mrb[24].mxu0 %vm485_vm3, %v2444_v61  ;;  %v2452_v30 = vsel %vm2385_vm5, %v2447_v11, %v2451_v22  ;;  %v2461_v29 = vsel %vm2385_vm5, %v2451_v22, %v2460_v54  ;;  %v2747_v11 = vrot.slane %v4413_v18, 3  ;;  %v2753_v18 = vrot.slane %v4459_v50, 3 }
 0x107   : > { %3935 = vmatprep.mubr.msk.bf16.mxu0 %vm485_vm3, %v2448_v62  ;;  %v2469_v44 = vor.u32 %v2468_v3, %v2465_v10  ;;  %v2757_v50 = vrot.slane %v4514_v23, 3  ;;  %v2759_v23 = vrot.slane %v4521_v28, 3  ;;  %v1530_v62 = vsel %vm1483_vm2, %v5529_v51, %v1529_v37 }
 0x108   : > { %v2748_v17 = vsel %vm2743_vm7, %v2745_v4, %v2747_v11  ;;  %v1544_v10 = vrot.slane %v5526_v27, 2  ;;  %v1547_v27 = vrot.slane %v5527_v15, 1  ;;  %v1561_v15 = vshrl.u32 %v4873_v57, 16 }
 0x109   : > { %v2760_v22 = vsel %vm2743_vm7, %v2757_v50, %v2759_v23  ;;  %v2762_v28 = vsel %vm2743_vm7, %v2759_v23, %v2761_v0 }
 0x10c   : > { %3768 = vmatmul.mubr.msk.bf16.gmra.mrb[12].mxu1 %vm485_vm3, %v4996_v45  ;;  %v2470_v45 = vsel %vm2385_vm5, %v2460_v54, %v2469_v44  ;;  %v1548_v44 = vrot.slane %v4588_v39, 2  ;;  %v1564_v39 = vshll.u32 %v4873_v57, 16 }
 0x10d   : > { %3771 = vmatprep.mubr.msk.bf16.mxu1 %vm485_vm3, %v5013_v43  ;;  %v2746_v43 = vsel %vm2743_vm7, %v2744_v19, %v2745_v4  ;;  %v1554_v4 = vrot.slane %v1552_v60, 1  ;;  %v2771_v60 = vrot.slane %v4660_v47, 3  ;;  %v2775_v47 = vrot.slane %v5528_v35, 3 }
 0x10e   : > { %3936 = vmatmul.mubr.msk.bf16.gmra.mrb[28].mxu0 %vm485_vm3, %v2452_v30  ;;  %v1543_v30 = vrot.slane %v5525_v49, 1  ;;  %v2769_v49 = vrot.slane %v4633_v8, 3 }
 0x10f   : > { %3939 = vmatprep.mubr.msk.bf16.mxu0 %vm485_vm3, %v2461_v29  ;;  %v1541_v29 = vor.u32 %v1540_v6, %v1539_v16 }
 0x110   : > { %v1545_v38 = vor.u32 %v1544_v10, %v1543_v30  ;;  %v2770_v8 = vsel %vm2743_vm7, %v2767_v42, %v2769_v49 }
 0x111   : > { %v1542_v20 = vsel %vm1483_vm2, %v1537_v2, %v1541_v29 }
 0x112   : > { %v1546_v19 = vsel %vm1483_vm2, %v1541_v29, %v1545_v38 }
 0x114   : > { %3772 = vmatmul.mubr.msk.bf16.gmra.mrb[16].mxu1 %vm485_vm3, %v5016_v55  ;;  %v2750_v55 = vsel %vm2743_vm7, %v2747_v11, %v2749_v9 }
 0x115   : > { %3775 = vmatprep.mubr.msk.bf16.mxu1 %vm485_vm3, %v5031_v33  ;;  %v2751_v33 = vrot.slane %v4442_v41, 3  ;;  %v2755_v41 = vrot.slane %v4487_v63, 3  ;;  %v1257_v63 = vrot.slane %v4873_v57, 1 }
 0x116   : > { %3940 = vmatmul.mubr.msk.bf16.gmra.mrb[32].mxu0 %vm485_vm3, %v2470_v45  ;;  %v1557_v45 = vrot.slane %v1555_v32, 2 }
 0x117   : > { %3945 = vmatprep.mubr.msk.bf16.mxu0 %vm485_vm3, %v2746_v43  ;;  %v2752_v31 = vsel %vm2743_vm7, %v2749_v9, %v2751_v33  ;;  %v2758_v61 = vsel %vm2743_vm7, %v2755_v41, %v2757_v50  ;;  %v1549_v43 = vor.u32 %v1548_v44, %v1547_v27  ;;  %v2773_v9 = vrot.slane %v4568_v13, 3 }
 0x118   : > { %v1558_v11 = vor.u32 %v1557_v45, %v1554_v4  ;;  %v2779_v50 = vrot.slane %v5001_v52, 3 }
 0x119   : > { %v1550_v32 = vsel %vm1483_vm2, %v1545_v38, %v1549_v43  ;;  %v2774_v57 = vsel %vm2743_vm7, %v2771_v60, %v2773_v9 }
 0x11c   : > { %3776 = vmatmul.mubr.msk.bf16.gmra.mrb[20].mxu1 %vm485_vm3, %v5034_v34  ;;  %v2754_v34 = vsel %vm2743_vm7, %v2751_v33, %v2753_v18  ;;  %v1559_v33 = vsel %vm1483_vm2, %v1549_v43, %v1558_v11 }
 0x11d   : > { %3779 = vmatprep.mubr.msk.bf16.mxu1 %vm485_vm3, %v5049_v26  ;;  %v1255_v26 = vrot.slane %v5528_v35, 1 }
 0x11e   : > { %3946 = vmatmul.mubr.msk.bf16.vlgmr.msra.gmra.mrb[0].mxu0 %vm485_vm3, %v2748_v17  ;;  %v1563_v17 = vrot.slane %v1561_v15, 1 }
 0x11f   : > { %3949 = vmatprep.mubr.msk.bf16.mxu0 %vm485_vm3, %v2750_v55  ;;  %v1566_v55 = vrot.slane %v1564_v39, 2 }
 0x124   : > { %3780 = vmatmul.mubr.msk.bf16.gmra.mrb[24].mxu1 %vm485_vm3, %v5052_v46  ;;  %v1256_v46 = vsel %vm939_vm6, %v5060_v5, %v1255_v26  ;;  %v1258_v5 = vsel %vm939_vm6, %v1255_v26, %v1257_v63  ;;  %v2776_v26 = vsel %vm2743_vm7, %v2773_v9, %v2775_v47 }
 0x125   : > { %3783 = vmatprep.mubr.msk.bf16.mxu1 %vm485_vm3, %v5067_v24  ;;  %v2756_v24 = vsel %vm2743_vm7, %v2753_v18, %v2755_v41  ;;  %v2772_v18 = vsel %vm2743_vm7, %v2769_v49, %v2771_v60 }
 0x126   : > { %3950 = vmatmul.mubr.msk.bf16.gmra.mrb[4].mxu0 %vm485_vm3, %v2752_v31  ;;  %v1567_v31 = vor.u32 %v1566_v55, %v1563_v17 }
 0x127   : > { %3953 = vmatprep.mubr.msk.bf16.mxu0 %vm485_vm3, %v2754_v34  ;;  %v2777_v34 = vrot.slane %v4691_v12, 3 }
 0x128   : > { %v1568_v13 = vsel %vm1483_vm2, %v1558_v11, %v1567_v31 }
 0x129   : > { %v2778_v41 = vsel %vm2743_vm7, %v2775_v47, %v2777_v34 }
 0x12c   : > { %3784 = vmatmul.mubr.msk.bf16.gmra.mrb[28].mxu1 %vm485_vm3, %v5071_v58  ;;  %v1531_v58 = vrot.slane %v5518_v14, 1  ;;  %v2763_v14 = vrot.slane %v4576_v25, 3 }
 0x12d   : > { %3787 = vmatprep.mubr.msk.bf16.mxu1 %vm485_vm3, %v1256_v46  ;;  %v2780_v46 = vsel %vm2743_vm7, %v2777_v34, %v2779_v50 }
 0x12e   : > { %3954 = vmatmul.mubr.msk.bf16.gmra.mrb[8].mxu0 %vm485_vm3, %v2756_v24  ;;  %v1533_v56 = vor.u32 %v1532_v40, %v1531_v58  ;;  %v2764_v3 = vsel %vm2743_vm7, %v2761_v0, %v2763_v14  ;;  %v2766_v25 = vsel %vm2743_vm7, %v2763_v14, %v2765_v7  ;;  %v5293_v7 = vld [vmem:[%s5461_s3] ss:$0 sm:$0xff] }
 0x12f   : > { %3957 = vmatprep.mubr.msk.bf16.mxu0 %vm485_vm3, %v2758_v61 }
 0x130   : > { %v1534_v53 = vsel %vm1483_vm2, %v1529_v37, %v1533_v56  ;;  %v1538_v54 = vsel %vm1483_vm2, %v1533_v56, %v1537_v2  ;;  %v5287_v2 = vld [vmem:[%s5460_s2] ss:$0 sm:$0xff] }
 0x134   : > { %3788 = vmatmul.mubr.msk.bf16.gmra.mrb[32].mxu1 %vm485_vm3, %v1258_v5 }
 0x135   : > { %3813 = vmatprep.mubr.msk.bf16.mxu1 %vm485_vm3, %v1530_v62 }
 0x136   : > { %3958 = vmatmul.mubr.msk.bf16.gmra.mrb[12].mxu0 %vm485_vm3, %v2760_v22 }
 0x137   : > { %3961 = vmatprep.mubr.msk.bf16.mxu0 %vm485_vm3, %v2762_v28 }
 0x13c   : > { %3814 = vmatmul.mubr.msk.bf16.vlgmr.msra.gmra.mrb[20].mxu1 %vm485_vm3, %v1534_v53 }
 0x13d   : > { %3817 = vmatprep.mubr.msk.bf16.mxu1 %vm485_vm3, %v1538_v54 }
 0x13e   : > { %3962 = vmatmul.mubr.msk.bf16.gmra.mrb[16].mxu0 %vm485_vm3, %v2764_v3 }
 0x13f   : > { %3965 = vmatprep.mubr.msk.bf16.mxu0 %vm485_vm3, %v2766_v25 }
 0x144   : > { %3818 = vmatmul.mubr.msk.bf16.gmra.mrb[24].mxu1 %vm485_vm3, %v1542_v20 }
 0x145   : > { %3821 = vmatprep.mubr.msk.bf16.mxu1 %vm485_vm3, %v1546_v19 }
 0x146   : > { %3966 = vmatmul.mubr.msk.bf16.gmra.mrb[20].mxu0 %vm485_vm3, %v2768_v21 }
 0x147   : > { %3969 = vmatprep.mubr.msk.bf16.mxu0 %vm485_vm3, %v2770_v8 }
 0x14c   : > { %3822 = vmatmul.mubr.msk.bf16.gmra.mrb[28].mxu1 %vm485_vm3, %v1550_v32 }
 0x14d   : > { %3825 = vmatprep.mubr.msk.bf16.mxu1 %vm485_vm3, %v1559_v33 }
 0x14e   : > { %3970 = vmatmul.mubr.msk.bf16.gmra.mrb[24].mxu0 %vm485_vm3, %v2772_v18 }
 0x14f   : > { %3973 = vmatprep.mubr.msk.bf16.mxu0 %vm485_vm3, %v2774_v57 }
 0x154   : > { %3826 = vmatmul.mubr.msk.bf16.gmra.mrb[32].mxu1 %vm485_vm3, %v1568_v13 }
 0x156   : > { %3974 = vmatmul.mubr.msk.bf16.gmra.mrb[28].mxu0 %vm485_vm3, %v2776_v26 }
 0x157   : > { %3977 = vmatprep.mubr.msk.bf16.mxu0 %vm485_vm3, %v2778_v41 }
 0x15e   : > { %3978 = vmatmul.mubr.msk.bf16.gmra.mrb[32].mxu0 %vm485_vm3, %v2780_v46 }
 0x1c7   : > { %v3757_v35 = vpop.f32.mrb[0].mxu1 }
 0x1c8   : > { %v1302_v1 = vpop.f32.mrb[1].mxu1 }
 0x1c9   : > { %v3758_v36 = vpop.f32.mrb[2].mxu1 }
 0x1ca   : > { %v1305_v12 = vpop.f32.mrb[3].mxu1 }
 0x1cf   : > { %v3761_v24 = vpop.f32.mrb[4].mxu1 }
 0x1d0   : > { %v1318_v61 = vpop.f32.mrb[5].mxu1 }
 0x1d1   : > { %v3762_v63 = vpop.f32.mrb[6].mxu1 }
 0x1d2   : > { %v1321_v37 = vpop.f32.mrb[7].mxu1 }
 0x1d7   : > { %v3765_v23 = vpop.f32.mrb[8].mxu1 }
 0x1d8   : > { %v5262_v5 = vpop.f32.mrb[9].mxu1 }
 0x1d9   : > { %v5264_v0 = vpop.f32.mrb[10].mxu1 }
 0x1da   : > { %v5266_v58 = vpop.f32.mrb[11].mxu1 }
 0x1df   : > { %v5268_v52 = vpop.f32.mrb[12].mxu1 }
 0x1e0   : > { %v5270_v40 = vpop.f32.mrb[13].mxu1 }
 0x1e1   : > { %v5272_v51 = vpop.f32.mrb[14].mxu1 }
 0x1e2   : > { %v5274_v62 = vpop.f32.mrb[15].mxu1 }
 0x1e7   : > { %v5276_v48 = vpop.f32.mrb[16].mxu1 }
 0x1e8   : > { %v5278_v59 = vpop.f32.mrb[17].mxu1 }
 0x1e9   : > { %v5280_v22 = vpop.f32.mrb[18].mxu1 }
 0x1ea   : > { %v5282_v28 = vpop.f32.mrb[19].mxu1 }
 0x1f1   : > { %v3947_v56 = vpop.f32.mrb[0].mxu0 }
 0x1f2   : > { %v3983_v14 = vadd.f32 %v3947_v56, %v3757_v35  ;;  %v2872_v53 = vpop.f32.mrb[1].mxu0 }
 0x1f3   : > { %v3984_v16 = vadd.f32 %v2872_v53, %v1302_v1  ;;  %v3948_v6 = vpop.f32.mrb[2].mxu0 }
 0x1f4   : > { %v3060_v54 = vmul.f32 %v3983_v14, %v5287_v2  ;;  %v3985_v30 = vadd.f32 %v3948_v6, %v3758_v36  ;;  %v2875_v10 = vpop.f32.mrb[3].mxu0 }
 0x1f5   : > { %v3058_v3 = vmul.f32 %v3984_v16, %v5287_v2  ;;  %v3986_v25 = vadd.f32 %v2875_v10, %v1305_v12 }
 0x1f6   : > { %v3103_v29 = vadd.f32 %v5293_v7, %v3060_v54  ;;  %v3061_v38 = vmul.f32 %v3985_v30, %v5287_v2 }
 0x1f7   : > { %v3101_v42 = vadd.f32 %v5293_v7, %v3058_v3  ;;  %v3059_v20 = vmul.f32 %v3986_v25, %v5287_v2 }
 0x1f8   : > { %v3139_v49 = vmax.f32 %v3103_v29, 0.0  ;;  %v3104_v27 = vadd.f32 %v5293_v7, %v3061_v38 }
 0x1f9   : > { %v3137_v44 = vmax.f32 %v3101_v42, 0.0  ;;  %v3102_v19 = vadd.f32 %v5293_v7, %v3059_v20  ;;  %v3951_v4 = vpop.f32.mrb[4].mxu0 }
 0x1fa   : > { %3175 = vst.msk [vmem:[%s5302_s21 + $0x10] sm:$0xff] %vm485_vm3, %v3139_v49  ;;  %v3140_v45 = vmax.f32 %v3104_v27, 0.0  ;;  %v3987_v21 = vadd.f32 %v3951_v4, %v3761_v24  ;;  %v2888_v8 = vpop.f32.mrb[5].mxu0 }
 0x1fb   : > { %3173 = vst.msk [vmem:[%s5302_s21] sm:$0xff] %vm485_vm3, %v3137_v44  ;;  %v3138_v43 = vmax.f32 %v3102_v19, 0.0  ;;  %v3988_v15 = vadd.f32 %v2888_v8, %v1318_v61  ;;  %v3952_v39 = vpop.f32.mrb[6].mxu0 }
 0x1fc   : > { %3176 = vst.msk [vmem:[%s5302_s21 + $0x18] sm:$0xff] %vm485_vm3, %v3140_v45  ;;  %v3064_v11 = vmul.f32 %v3987_v21, %v5287_v2  ;;  %v3989_v60 = vadd.f32 %v3952_v39, %v3762_v63  ;;  %v2891_v32 = vpop.f32.mrb[7].mxu0 }
 0x1fd   : > { %3174 = vst.msk [vmem:[%s5302_s21 + $0x8] sm:$0xff] %vm485_vm3, %v3138_v43  ;;  %v3062_v9 = vmul.f32 %v3988_v15, %v5287_v2  ;;  %v3990_v17 = vadd.f32 %v2891_v32, %v1321_v37 }
 0x1fe   : > { %v3107_v55 = vadd.f32 %v5293_v7, %v3064_v11  ;;  %v3065_v33 = vmul.f32 %v3989_v60, %v5287_v2 }
 0x1ff   : > { %v3105_v18 = vadd.f32 %v5293_v7, %v3062_v9  ;;  %v3063_v57 = vmul.f32 %v3990_v17, %v5287_v2 }
 0x200   : > { %v3143_v31 = vmax.f32 %v3107_v55, 0.0  ;;  %v3108_v47 = vadd.f32 %v5293_v7, %v3065_v33 }
 0x201   : > { %v3141_v13 = vmax.f32 %v3105_v18, 0.0  ;;  %v3106_v34 = vadd.f32 %v5293_v7, %v3063_v57  ;;  %v3955_v26 = vpop.f32.mrb[8].mxu0 }
 0x202   : > { %3179 = vst.msk [vmem:[%s5302_s21 + $0x30] sm:$0xff] %vm485_vm3, %v3143_v31  ;;  %v3144_v41 = vmax.f32 %v3108_v47, 0.0  ;;  %v3991_v50 = vadd.f32 %v3955_v26, %v3765_v23  ;;  %v2904_v46 = vpop.f32.mrb[9].mxu0 }
 0x203   : > { %3177 = vst.msk [vmem:[%s5302_s21 + $0x20] sm:$0xff] %vm485_vm3, %v3141_v13  ;;  %v3142_v35 = vmax.f32 %v3106_v34, 0.0  ;;  %v3992_v1 = vadd.f32 %v2904_v46, %v5262_v5  ;;  %v3956_v36 = vpop.f32.mrb[10].mxu0 }
 0x204   : > { %3180 = vst.msk [vmem:[%s5302_s21 + $0x38] sm:$0xff] %vm485_vm3, %v3144_v41  ;;  %v3068_v12 = vmul.f32 %v3991_v50, %v5287_v2  ;;  %v3993_v24 = vadd.f32 %v3956_v36, %v5264_v0  ;;  %v2907_v61 = vpop.f32.mrb[11].mxu0 }
 0x205   : > { %3178 = vst.msk [vmem:[%s5302_s21 + $0x28] sm:$0xff] %vm485_vm3, %v3142_v35  ;;  %v3066_v63 = vmul.f32 %v3992_v1, %v5287_v2  ;;  %v3994_v37 = vadd.f32 %v2907_v61, %v5266_v58 }
 0x206   : > { %v3111_v23 = vadd.f32 %v5293_v7, %v3068_v12  ;;  %v3069_v5 = vmul.f32 %v3993_v24, %v5287_v2 }
 0x207   : > { %v3109_v56 = vadd.f32 %v5293_v7, %v3066_v63  ;;  %v3067_v14 = vmul.f32 %v3994_v37, %v5287_v2 }
 0x208   : > { %v3147_v53 = vmax.f32 %v3111_v23, 0.0  ;;  %v3112_v0 = vadd.f32 %v5293_v7, %v3069_v5 }
 0x209   : > { %v3145_v16 = vmax.f32 %v3109_v56, 0.0  ;;  %v3110_v6 = vadd.f32 %v5293_v7, %v3067_v14  ;;  %v3959_v54 = vpop.f32.mrb[12].mxu0 }
 0x20a   : > { %3183 = vst.msk [vmem:[%s5302_s21 + $0x50] sm:$0xff] %vm485_vm3, %v3147_v53  ;;  %v3148_v58 = vmax.f32 %v3112_v0, 0.0  ;;  %v3995_v30 = vadd.f32 %v3959_v54, %v5268_v52  ;;  %v2920_v10 = vpop.f32.mrb[13].mxu0 }
 0x20b   : > { %3181 = vst.msk [vmem:[%s5302_s21 + $0x40] sm:$0xff] %vm485_vm3, %v3145_v16  ;;  %v3146_v3 = vmax.f32 %v3110_v6, 0.0  ;;  %v3996_v25 = vadd.f32 %v2920_v10, %v5270_v40  ;;  %v3960_v29 = vpop.f32.mrb[14].mxu0 }
 0x20c   : > { %3184 = vst.msk [vmem:[%s5302_s21 + $0x58] sm:$0xff] %vm485_vm3, %v3148_v58  ;;  %v3072_v38 = vmul.f32 %v3995_v30, %v5287_v2  ;;  %v3997_v42 = vadd.f32 %v3960_v29, %v5272_v51  ;;  %v2923_v20 = vpop.f32.mrb[15].mxu0 }
 0x20d   : > { %3182 = vst.msk [vmem:[%s5302_s21 + $0x48] sm:$0xff] %vm485_vm3, %v3146_v3  ;;  %v3070_v49 = vmul.f32 %v3996_v25, %v5287_v2  ;;  %v3998_v52 = vadd.f32 %v2923_v20, %v5274_v62 }
 0x20e   : > { %v3115_v27 = vadd.f32 %v5293_v7, %v3072_v38  ;;  %v3073_v44 = vmul.f32 %v3997_v42, %v5287_v2 }
 0x20f   : > { %v3815_v40 = vpop.f32.mrb[20].mxu1  ;;  %v3113_v19 = vadd.f32 %v5293_v7, %v3070_v49  ;;  %v3071_v4 = vmul.f32 %v3998_v52, %v5287_v2 }
 0x210   : > { %v1740_v45 = vpop.f32.mrb[21].mxu1  ;;  %v3151_v51 = vmax.f32 %v3115_v27, 0.0  ;;  %v3116_v21 = vadd.f32 %v5293_v7, %v3073_v44 }
 0x211   : > { %v3816_v8 = vpop.f32.mrb[22].mxu1  ;;  %v3149_v43 = vmax.f32 %v3113_v19, 0.0  ;;  %v3114_v62 = vadd.f32 %v5293_v7, %v3071_v4  ;;  %v3963_v15 = vpop.f32.mrb[16].mxu0 }
 0x212   : > { %v1743_v39 = vpop.f32.mrb[23].mxu1  ;;  %3187 = vst.msk [vmem:[%s5302_s21 + $0x70] sm:$0xff] %vm485_vm3, %v3151_v51  ;;  %v3152_v11 = vmax.f32 %v3116_v21, 0.0  ;;  %v3999_v60 = vadd.f32 %v3963_v15, %v5276_v48  ;;  %v2936_v32 = vpop.f32.mrb[17].mxu0 }
 0x213   : > { %3185 = vst.msk [vmem:[%s5302_s21 + $0x60] sm:$0xff] %vm485_vm3, %v3149_v43  ;;  %v3150_v9 = vmax.f32 %v3114_v62, 0.0  ;;  %v4000_v17 = vadd.f32 %v2936_v32, %v5278_v59  ;;  %v3964_v55 = vpop.f32.mrb[18].mxu0 }
 0x214   : > { %3188 = vst.msk [vmem:[%s5302_s21 + $0x78] sm:$0xff] %vm485_vm3, %v3152_v11  ;;  %v3076_v33 = vmul.f32 %v3999_v60, %v5287_v2  ;;  %v4001_v18 = vadd.f32 %v3964_v55, %v5280_v22  ;;  %v2939_v57 = vpop.f32.mrb[19].mxu0 }
 0x215   : > { %3186 = vst.msk [vmem:[%s5302_s21 + $0x68] sm:$0xff] %vm485_vm3, %v3150_v9  ;;  %v3074_v31 = vmul.f32 %v4000_v17, %v5287_v2  ;;  %v4002_v48 = vadd.f32 %v2939_v57, %v5282_v28 }
 0x216   : > { %v3119_v47 = vadd.f32 %v5293_v7, %v3076_v33  ;;  %v3077_v13 = vmul.f32 %v4001_v18, %v5287_v2 }
 0x217   : > { %v3819_v59 = vpop.f32.mrb[24].mxu1  ;;  %v3117_v34 = vadd.f32 %v5293_v7, %v3074_v31  ;;  %v3075_v26 = vmul.f32 %v4002_v48, %v5287_v2 }
 0x218   : > { %v1756_v41 = vpop.f32.mrb[25].mxu1  ;;  %v3155_v22 = vmax.f32 %v3119_v47, 0.0  ;;  %v3120_v50 = vadd.f32 %v5293_v7, %v3077_v13 }
 0x219   : > { %v3820_v46 = vpop.f32.mrb[26].mxu1  ;;  %v3153_v35 = vmax.f32 %v3117_v34, 0.0  ;;  %v3118_v28 = vadd.f32 %v5293_v7, %v3075_v26  ;;  %v3967_v1 = vpop.f32.mrb[20].mxu0 }
 0x21a   : > { %v1759_v36 = vpop.f32.mrb[27].mxu1  ;;  %3191 = vst.msk [vmem:[%s5302_s21 + $0x90] sm:$0xff] %vm485_vm3, %v3155_v22  ;;  %v3156_v12 = vmax.f32 %v3120_v50, 0.0  ;;  %v4003_v24 = vadd.f32 %v3967_v1, %v3815_v40  ;;  %v2952_v61 = vpop.f32.mrb[21].mxu0 }
 0x21b   : > { %3189 = vst.msk [vmem:[%s5302_s21 + $0x80] sm:$0xff] %vm485_vm3, %v3153_v35  ;;  %v3154_v63 = vmax.f32 %v3118_v28, 0.0  ;;  %v4004_v37 = vadd.f32 %v2952_v61, %v1740_v45  ;;  %v3968_v23 = vpop.f32.mrb[22].mxu0 }
 0x21c   : > { %3192 = vst.msk [vmem:[%s5302_s21 + $0x98] sm:$0xff] %vm485_vm3, %v3156_v12  ;;  %v3080_v5 = vmul.f32 %v4003_v24, %v5287_v2  ;;  %v4005_v56 = vadd.f32 %v3968_v23, %v3816_v8  ;;  %v2955_v14 = vpop.f32.mrb[23].mxu0 }
 0x21d   : > { %3190 = vst.msk [vmem:[%s5302_s21 + $0x88] sm:$0xff] %vm485_vm3, %v3154_v63  ;;  %v3078_v53 = vmul.f32 %v4004_v37, %v5287_v2  ;;  %v4006_v0 = vadd.f32 %v2955_v14, %v1743_v39 }
 0x21e   : > { %v3123_v16 = vadd.f32 %v5293_v7, %v3080_v5  ;;  %v3081_v6 = vmul.f32 %v4005_v56, %v5287_v2 }
 0x21f   : > { %v3823_v54 = vpop.f32.mrb[28].mxu1  ;;  %v3121_v58 = vadd.f32 %v5293_v7, %v3078_v53  ;;  %v3079_v30 = vmul.f32 %v4006_v0, %v5287_v2 }
 0x220   : > { %v1772_v10 = vpop.f32.mrb[29].mxu1  ;;  %v3159_v3 = vmax.f32 %v3123_v16, 0.0  ;;  %v3124_v25 = vadd.f32 %v5293_v7, %v3081_v6 }
 0x221   : > { %v3824_v29 = vpop.f32.mrb[30].mxu1  ;;  %v3157_v38 = vmax.f32 %v3121_v58, 0.0  ;;  %v3122_v42 = vadd.f32 %v5293_v7, %v3079_v30  ;;  %v3971_v20 = vpop.f32.mrb[24].mxu0 }
 0x222   : > { %v1775_v49 = vpop.f32.mrb[31].mxu1  ;;  %3195 = vst.msk [vmem:[%s5302_s21 + $0xb0] sm:$0xff] %vm485_vm3, %v3159_v3  ;;  %v3160_v52 = vmax.f32 %v3124_v25, 0.0  ;;  %v4007_v27 = vadd.f32 %v3971_v20, %v3819_v59  ;;  %v2968_v44 = vpop.f32.mrb[25].mxu0 }
 0x223   : > { %3193 = vst.msk [vmem:[%s5302_s21 + $0xa0] sm:$0xff] %vm485_vm3, %v3157_v38  ;;  %v3158_v40 = vmax.f32 %v3122_v42, 0.0  ;;  %v4008_v19 = vadd.f32 %v2968_v44, %v1756_v41  ;;  %v3972_v4 = vpop.f32.mrb[26].mxu0 }
 0x224   : > { %3196 = vst.msk [vmem:[%s5302_s21 + $0xb8] sm:$0xff] %vm485_vm3, %v3160_v52  ;;  %v3084_v45 = vmul.f32 %v4007_v27, %v5287_v2  ;;  %v4009_v51 = vadd.f32 %v3972_v4, %v3820_v46  ;;  %v2971_v21 = vpop.f32.mrb[27].mxu0 }
 0x225   : > { %3194 = vst.msk [vmem:[%s5302_s21 + $0xa8] sm:$0xff] %vm485_vm3, %v3158_v40  ;;  %v3082_v8 = vmul.f32 %v4008_v19, %v5287_v2  ;;  %v4010_v43 = vadd.f32 %v2971_v21, %v1759_v36 }
 0x226   : > { %v3127_v62 = vadd.f32 %v5293_v7, %v3084_v45  ;;  %v3085_v15 = vmul.f32 %v4009_v51, %v5287_v2 }
 0x227   : > { %v3827_v39 = vpop.f32.mrb[32].mxu1  ;;  %v3125_v11 = vadd.f32 %v5293_v7, %v3082_v8  ;;  %v3083_v60 = vmul.f32 %v4010_v43, %v5287_v2 }
 0x228   : > { %v1788_v32 = vpop.f32.mrb[33].mxu1  ;;  %v3163_v9 = vmax.f32 %v3127_v62, 0.0  ;;  %v3128_v17 = vadd.f32 %v5293_v7, %v3085_v15 }
 0x229   : > { %v3828_v55 = vpop.f32.mrb[34].mxu1  ;;  %v3161_v33 = vmax.f32 %v3125_v11, 0.0  ;;  %v3126_v18 = vadd.f32 %v5293_v7, %v3083_v60  ;;  %v3975_v57 = vpop.f32.mrb[28].mxu0 }
 0x22a   : > { %v1791_v31 = vpop.f32.mrb[35].mxu1  ;;  %3199 = vst.msk [vmem:[%s5302_s21 + $0xd0] sm:$0xff] %vm485_vm3, %v3163_v9  ;;  %v3164_v48 = vmax.f32 %v3128_v17, 0.0  ;;  %v4011_v47 = vadd.f32 %v3975_v57, %v3823_v54  ;;  %v2984_v13 = vpop.f32.mrb[29].mxu0 }
 0x22b   : > { %3197 = vst.msk [vmem:[%s5302_s21 + $0xc0] sm:$0xff] %vm485_vm3, %v3161_v33  ;;  %v3162_v59 = vmax.f32 %v3126_v18, 0.0  ;;  %v4012_v34 = vadd.f32 %v2984_v13, %v1772_v10  ;;  %v3976_v26 = vpop.f32.mrb[30].mxu0 }
 0x22c   : > { %3200 = vst.msk [vmem:[%s5302_s21 + $0xd8] sm:$0xff] %vm485_vm3, %v3164_v48  ;;  %v3088_v41 = vmul.f32 %v4011_v47, %v5287_v2  ;;  %v4013_v22 = vadd.f32 %v3976_v26, %v3824_v29  ;;  %v2987_v50 = vpop.f32.mrb[31].mxu0 }
 0x22d   : > { %3198 = vst.msk [vmem:[%s5302_s21 + $0xc8] sm:$0xff] %vm485_vm3, %v3162_v59  ;;  %v3086_v46 = vmul.f32 %v4012_v34, %v5287_v2  ;;  %v4014_v35 = vadd.f32 %v2987_v50, %v1775_v49 }
 0x22e   : > { %v3131_v28 = vadd.f32 %v5293_v7, %v3088_v41  ;;  %v3089_v1 = vmul.f32 %v4013_v22, %v5287_v2 }
 0x22f   : > { %v3129_v36 = vadd.f32 %v5293_v7, %v3086_v46  ;;  %v3087_v12 = vmul.f32 %v4014_v35, %v5287_v2 }
 0x230   : > { %v3167_v24 = vmax.f32 %v3131_v28, 0.0  ;;  %v3132_v61 = vadd.f32 %v5293_v7, %v3089_v1 }
 0x231   : > { %v3165_v63 = vmax.f32 %v3129_v36, 0.0  ;;  %v3130_v37 = vadd.f32 %v5293_v7, %v3087_v12  ;;  %v3979_v23 = vpop.f32.mrb[32].mxu0 }
 0x232   : > { %3203 = vst.msk [vmem:[%s5302_s21 + $0xf0] sm:$0xff] %vm485_vm3, %v3167_v24  ;;  %v3168_v5 = vmax.f32 %v3132_v61, 0.0  ;;  %v4015_v56 = vadd.f32 %v3979_v23, %v3827_v39  ;;  %v3000_v14 = vpop.f32.mrb[33].mxu0 }
 0x233   : > { %3201 = vst.msk [vmem:[%s5302_s21 + $0xe0] sm:$0xff] %vm485_vm3, %v3165_v63  ;;  %v3166_v53 = vmax.f32 %v3130_v37, 0.0  ;;  %v4016_v0 = vadd.f32 %v3000_v14, %v1788_v32  ;;  %v3980_v16 = vpop.f32.mrb[34].mxu0 }
 0x234   : > { %3204 = vst.msk [vmem:[%s5302_s21 + $0xf8] sm:$0xff] %vm485_vm3, %v3168_v5  ;;  %v3092_v6 = vmul.f32 %v4015_v56, %v5287_v2  ;;  %v4017_v54 = vadd.f32 %v3980_v16, %v3828_v55  ;;  %v3003_v58 = vpop.f32.mrb[35].mxu0 }
 0x235   : > { %3202 = vst.msk [vmem:[%s5302_s21 + $0xe8] sm:$0xff] %vm485_vm3, %v3166_v53  ;;  %v3090_v30 = vmul.f32 %v4016_v0, %v5287_v2  ;;  %v4018_v10 = vadd.f32 %v3003_v58, %v1791_v31 }
 0x236   : > { %v3135_v3 = vadd.f32 %v5293_v7, %v3092_v6  ;;  %v3093_v25 = vmul.f32 %v4017_v54, %v5287_v2 }
 0x237   : > { %v3133_v29 = vadd.f32 %v5293_v7, %v3090_v30  ;;  %v3091_v38 = vmul.f32 %v4018_v10, %v5287_v2 }
 0x238   : > { %v3171_v42 = vmax.f32 %v3135_v3, 0.0  ;;  %v3136_v20 = vadd.f32 %v5293_v7, %v3093_v25 }
 0x239   : > { %v3169_v49 = vmax.f32 %v3133_v29, 0.0  ;;  %v3134_v52 = vadd.f32 %v5293_v7, %v3091_v38 }
 0x23a   : > { %3207 = vst.msk [vmem:[%s5302_s21 + $0x110] sm:$0xff] %vm485_vm3, %v3171_v42  ;;  %v3172_v27 = vmax.f32 %v3136_v20, 0.0 }
 0x23b   : > { %3205 = vst.msk [vmem:[%s5302_s21 + $0x100] sm:$0xff] %vm485_vm3, %v3169_v49  ;;  %v3170_v44 = vmax.f32 %v3134_v52, 0.0 }
 0x23c   : > { %3208 = vst.msk [vmem:[%s5302_s21 + $0x118] sm:$0xff] %vm485_vm3, %v3172_v27 }
 0x23d   : > { %3206 = vst.msk [vmem:[%s5302_s21 + $0x108] sm:$0xff] %vm485_vm3, %v3170_v44 }
 0x23e PF: > { %s14_s15 = sadd.s32 1, %s4320_s15  }
 0x23f   : > { %p11_p4 = scmp.ge.s32.totalorder %s14_s15, 4  }
 0x241   :  { %13 = sbr.rel (!%p11_p4) target bundleno = 1 (0x1), region = 74 }

</bundles_post_ra>
